<compile_context>
chip_gen: v7x
topology: tpu7x:2x2x1
jax: 0.10.0
libtpu: 0.0.40
codegen_flags: <defaults>
</compile_context>

<pallas_src>
import functools

import jax
import jax.numpy as jnp
from jax.experimental import pallas as pl
from jax.experimental.pallas import tpu as pltpu

EPS = 1e-5


# ----------------------------------------------------------------------------
# VMEM budget (per-generation) for tile selection + vmem_limit_bytes.
# ----------------------------------------------------------------------------
def _vmem_budget_bytes():
    cap = 128 * 1024 * 1024
    try:
        info = pltpu.get_tpu_info()
        cap = int(getattr(info, "vmem_capacity_bytes", cap))
    except Exception:
        pass
    if cap < 32 * 1024 * 1024:       # defensive: bogus / missing query
        cap = 128 * 1024 * 1024
    # half the physical VMEM, capped at 64 MiB: v5e/v6e -> 64 MiB, v7x -> 32 MiB
    return min(cap // 2, 64 * 1024 * 1024)


_VMEM_BUDGET = _vmem_budget_bytes()


def _round_up(x, mult):
    return ((x + mult - 1) // mult) * mult


def _choose_tiles(cout, k, m, out_bytes, budget):
    """Pick (TM, TK).  TK == k means the full-K fast path (no K grid axis,
    weights resident across all M tiles of a phase)."""
    usable = int(budget * 0.9)
    # Fast path: full-K resident weights.  Footprint accounts for default
    # double-buffering of every BlockSpec operand (conservative for W, whose
    # block index only changes per phase).
    for tm in (2048, 1024, 512, 256, 128):
        if m % tm:
            continue
        foot = 2 * (cout * k * 2) + 2 * (k * tm * 2) + 2 * (cout * tm * out_bytes)
        if foot <= usable:
            return tm, k
    # Fallback: split the reduction axis (only very large Cout*K on small VMEM).
    for tm in (512, 256, 128):
        if m % tm:
            continue
        for tk in (2048, 1024, 512, 256, 128):
            if k % tk:
                continue
            foot = (2 * (cout * tk * 2) + 2 * (tk * tm * 2)
                    + 2 * (cout * tm * out_bytes) + cout * tm * 4)
            if foot <= usable:
                return tm, tk
    # Last resort: smallest aligned tiles.
    return 128, (k if k % 128 != 0 else 128)


# ----------------------------------------------------------------------------
# Fused conv-as-matmul Pallas kernels.
#   out[p] = post_act(W[p] @ A[p] + bias)     out tile (Cout, TM): lane-dense
#   optional per-(phase, M-tile) partial sum / sum-of-squares outputs
#   (training-mode BatchNorm statistics, reduced + folded in XLA).
# ----------------------------------------------------------------------------
def _conv_kernel_fullk(*refs, has_bias, post_act, want_stats):
    it = iter(refs)
    w_ref = next(it)                                   # (Cout, K)   bf16
    a_ref = next(it)                                   # (K, TM)     bf16
    b_ref = next(it) if has_bias else None             # (Cout, 1)   f32
    o_ref = next(it)                                   # (Cout, TM)
    sum_ref = next(it) if want_stats else None         # (Cout, 1)   f32
    ssq_ref = next(it) if want_stats else None         # (Cout, 1)   f32

    acc = jnp.dot(w_ref[...], a_ref[...], preferred_element_type=jnp.float32)

    if want_stats:
        sum_ref[...] = jnp.sum(acc, axis=1, keepdims=True)
        ssq_ref[...] = jnp.sum(acc * acc, axis=1, keepdims=True)

    out = acc
    if has_bias:
        out = out + b_ref[...]
    if post_act == "tanh":
        out = jnp.tanh(out)
    o_ref[...] = out.astype(o_ref.dtype)


def _conv_kernel_splitk(*refs, has_bias, post_act, want_stats):
    it = iter(refs)
    w_ref = next(it)                                   # (Cout, TK)  bf16
    a_ref = next(it)                                   # (TK, TM)    bf16
    b_ref = next(it) if has_bias else None             # (Cout, 1)   f32
    o_ref = next(it)                                   # (Cout, TM)
    sum_ref = next(it) if want_stats else None         # (Cout, 1)   f32
    ssq_ref = next(it) if want_stats else None         # (Cout, 1)   f32
    acc_ref = next(it)                                 # (Cout, TM)  f32 scratch

    k_i = pl.program_id(2)
    n_k = pl.num_programs(2)

    @pl.when(k_i == 0)
    def _():
        acc_ref[...] = jnp.zeros_like(acc_ref)

    acc_ref[...] += jnp.dot(w_ref[...], a_ref[...],
                            preferred_element_type=jnp.float32)

    @pl.when(k_i == n_k - 1)
    def _():
        acc = acc_ref[...]
        if want_stats:
            sum_ref[...] = jnp.sum(acc, axis=1, keepdims=True)
            ssq_ref[...] = jnp.sum(acc * acc, axis=1, keepdims=True)
        out = acc
        if has_bias:
            out = out + b_ref[...]
        if post_act == "tanh":
            out = jnp.tanh(out)
        o_ref[...] = out.astype(o_ref.dtype)


def fused_conv_matmul(w_all, a_all, bias=None, *, post_act="none",
                      want_stats=False, out_dtype=jnp.bfloat16):
    """w_all: (P, Cout, K) bf16, a_all: (P, K, M) bf16 (M % 128 == 0)
    -> ((P, Cout, M), stats) where stats = (sum, sum_sq) per channel or None."""
    P, Cout, K = w_all.shape
    Pa, Ka, M = a_all.shape
    assert P == Pa and K == Ka and M % 128 == 0

    has_bias = bias is not None
    out_bytes = jnp.dtype(out_dtype).itemsize
    TM, TK = _choose_tiles(Cout, K, M, out_bytes, _VMEM_BUDGET)
    n_m = M // TM
    full_k = (TK == K)

    if full_k:
        grid = (P, n_m)
        sem = ("parallel", "parallel")
        w_spec = pl.BlockSpec((None, Cout, K), lambda p, m: (p, 0, 0))
        a_spec = pl.BlockSpec((None, K, TM), lambda p, m: (p, 0, m))
        b_spec = pl.BlockSpec((Cout, 1), lambda p, m: (0, 0))
        o_spec = pl.BlockSpec((None, Cout, TM), lambda p, m: (p, 0, m))
        st_spec = pl.BlockSpec((None, None, Cout, 1), lambda p, m: (p, m, 0, 0))
        scratch = []
        kernel = functools.partial(_conv_kernel_fullk, has_bias=has_bias,
                                   post_act=post_act, want_stats=want_stats)
        w_streams = 1
    else:
        n_k = K // TK
        grid = (P, n_m, n_k)
        sem = ("parallel", "parallel", "arbitrary")
        w_spec = pl.BlockSpec((None, Cout, TK), lambda p, m, k: (p, 0, k))
        a_spec = pl.BlockSpec((None, TK, TM), lambda p, m, k: (p, k, m))
        b_spec = pl.BlockSpec((Cout, 1), lambda p, m, k: (0, 0))
        o_spec = pl.BlockSpec((None, Cout, TM), lambda p, m, k: (p, 0, m))
        st_spec = pl.BlockSpec((None, None, Cout, 1), lambda p, m, k: (p, m, 0, 0))
        scratch = [pltpu.VMEM((Cout, TM), jnp.float32)]
        kernel = functools.partial(_conv_kernel_splitk, has_bias=has_bias,
                                   post_act=post_act, want_stats=want_stats)
        w_streams = n_m

    in_specs = [w_spec, a_spec]
    operands = [w_all, a_all]
    if has_bias:
        in_specs.append(b_spec)
        operands.append(bias.reshape(Cout, 1).astype(jnp.float32))

    out_shape = [jax.ShapeDtypeStruct((P, Cout, M), out_dtype)]
    out_specs = [o_spec]
    if want_stats:
        out_shape += [jax.ShapeDtypeStruct((P, n_m, Cout, 1), jnp.float32)] * 2
        out_specs += [st_spec, st_spec]

    flops = 2 * P * Cout * K * M
    transc = P * Cout * M if post_act == "tanh" else 0
    bytes_acc = (P * Cout * K * 2 * w_streams            # W (re-)streams
                 + P * K * M * 2                         # A
                 + P * Cout * M * out_bytes              # out
                 + (2 * P * n_m * Cout * 4 if want_stats else 0)
                 + (Cout * 4 if has_bias else 0))

    res = pl.pallas_call(
        kernel,
        grid=grid,
        in_specs=in_specs,
        out_specs=out_specs,
        out_shape=out_shape,
        scratch_shapes=scratch,
        compiler_params=pltpu.CompilerParams(
            dimension_semantics=sem,
            vmem_limit_bytes=_VMEM_BUDGET),
        cost_estimate=pl.CostEstimate(flops=int(flops),
                                      transcendentals=int(transc),
                                      bytes_accessed=int(bytes_acc)),
    )(*operands)

    if want_stats:
        out, s_part, q_part = res
        s = jnp.sum(s_part[..., 0], axis=(0, 1))          # (Cout,)
        q = jnp.sum(q_part[..., 0], axis=(0, 1))
        return out, (s, q)
    out = res[0] if isinstance(res, (list, tuple)) else res
    return out, None


# ----------------------------------------------------------------------------
# Conv / ConvTranspose wrappers: tap-slab construction in channel-major layout
# (fused by XLA with the pending BN affine + pre-activation), Pallas matmul.
# ----------------------------------------------------------------------------
def _pad_m(a, m_pad):
    m = a.shape[-1]
    if m_pad == m:
        return a
    return jnp.pad(a, ((0, 0),) * (a.ndim - 1) + ((0, m_pad - m),))


def conv2d_s2(z, w_mat, *, want_stats, out_dtype=jnp.bfloat16):
    """Conv2d(k=4, s=2, p=1, bias=False).  z: activated input (C, N, H, W) bf16,
    w_mat: (1, Cout, 16*C) bf16.  Returns ((Cout, N, H/2, W/2), stats)."""
    C, N, H, W = z.shape
    OH, OW = H // 2, W // 2
    M = N * OH * OW
    Mp = max(_round_up(M, 128), 128)
    Cout = w_mat.shape[1]
    zp = jnp.pad(z, ((0, 0), (0, 0), (1, 1), (1, 1)))
    taps = [zp[:, :, kh:kh + 2 * OH:2, kw:kw + 2 * OW:2].reshape(C, M)
            for kh in range(4) for kw in range(4)]
    a_all = _pad_m(jnp.concatenate(taps, axis=0), Mp)[None]      # (1, 16*C, Mp)
    out, stats = fused_conv_matmul(w_mat, a_all, want_stats=want_stats,
                                   out_dtype=out_dtype)
    return out[0, :, :M].reshape(Cout, N, OH, OW), stats


def conv_transpose2d_s2(z, w_mat, bias=None, *, post_act="none",
                        want_stats, out_dtype=jnp.bfloat16):
    """ConvTranspose2d(k=4, s=2, p=1) via 4-phase (output-parity) decomposition:
    each output phase is a stride-1 2x2 conv over the (pad-1) input, so there is
    no zero-stuffing.  z: (C, N, H, W) bf16 -> (Cout, N, 2H, 2W)."""
    C, N, H, W = z.shape
    M = N * H * W
    Mp = max(_round_up(M, 128), 128)
    Cout = w_mat.shape[1]
    zp = jnp.pad(z, ((0, 0), (0, 0), (1, 1), (1, 1)))
    slabs = []
    for rh in range(2):
        for rw in range(2):
            taps = []
            for a in range(2):
                for b in range(2):
                    taps.append(zp[:, :, rh + a:rh + a + H,
                                   rw + b:rw + b + W].reshape(C, M))
            slabs.append(jnp.concatenate(taps, axis=0))          # (4*C, M)
    a_all = _pad_m(jnp.stack(slabs, axis=0), Mp)                 # (4, 4*C, Mp)
    out, stats = fused_conv_matmul(w_mat, a_all, bias=bias, post_act=post_act,
                                   want_stats=want_stats, out_dtype=out_dtype)
    out = out[:, :, :M]
    # interleave the 4 phases back into (Cout, N, 2H, 2W)
    out = out.reshape(2, 2, Cout, N, H, W)
    out = jnp.transpose(out, (2, 3, 4, 0, 5, 1)).reshape(Cout, N, 2 * H, 2 * W)
    return out, stats


# ----------------------------------------------------------------------------
# Weight layout helpers (precomputed once, bf16).
# ----------------------------------------------------------------------------
def _down_w_mat(w):
    """Conv2d weight (Cout, Cin, 4, 4) -> (1, Cout, 16*Cin), K order (kh,kw,ci)."""
    Cout, Cin = w.shape[:2]
    return (jnp.transpose(w, (0, 2, 3, 1))
            .reshape(1, Cout, 16 * Cin).astype(jnp.bfloat16))


def _up_w_mat(wt):
    """ConvTranspose2d weight (Cin, Cout, 4, 4) -> (4, Cout, 4*Cin) bf16.
    Output phase (rh, rw) uses taps kh = 3-2a-rh, kw = 3-2b-rw (a, b in {0,1})
    at input window offset (rh+a, rw+b) into the pad-1 input."""
    Cin, Cout = wt.shape[:2]
    mats = []
    for rh in range(2):
        for rw in range(2):
            sub = wt[:, :, 3 - rh::-2, 3 - rw::-2]               # (Cin, Cout, 2, 2)
            mats.append(jnp.transpose(sub, (1, 2, 3, 0)).reshape(Cout, 4 * Cin))
    return jnp.stack(mats, axis=0).astype(jnp.bfloat16)


# ----------------------------------------------------------------------------
# Lazy BatchNorm (training-mode batch stats) + pre-activation resolution.
# Activations flow as triples (raw, scale, shift): value = raw*scale + shift.
# ----------------------------------------------------------------------------
def _bn_affine(stats, count, gamma, beta):
    s, q = stats
    mean = s / count
    var = jnp.maximum(q / count - mean * mean, 0.0)              # biased (training)
    scale = gamma * jax.lax.rsqrt(var + EPS)
    return scale, beta - mean * scale


def _identity_affine(c):
    return jnp.ones((c,), jnp.float32), jnp.zeros((c,), jnp.float32)


def _resolve(t, act):
    """Apply pending per-channel BN affine + pre-activation; XLA fuses this into
    the tap-slab gather of the consuming conv (no standalone BN kernel/pass)."""
    raw, scale, shift = t
    x = (raw.astype(jnp.float32) * scale[:, None, None, None]
         + shift[:, None, None, None])
    if act == "leaky":
        x = jnp.where(x >= 0, x, 0.2 * x)
    elif act == "relu":
        x = jnp.maximum(x, 0.0)
    return x.astype(jnp.bfloat16)


def _cat(t1, t2):
    """torch.cat([x, model(x)], 1) on lazy triples (channel axis = 0)."""
    return tuple(jnp.concatenate([a, b], axis=0) for a, b in zip(t1, t2))


# ----------------------------------------------------------------------------
# UnetGenerator parameters + recursive forward (mirrors UnetSkipConnectionBlock)
# ----------------------------------------------------------------------------
def build_unet_params(key, input_nc, output_nc, num_downs, ngf):
    def bn_params(k, c):
        k1, k2 = jax.random.split(k)
        return (1.0 + 0.1 * jax.random.normal(k1, (c,), jnp.float32),
                0.1 * jax.random.normal(k2, (c,), jnp.float32))

    def make_block(k, outer_nc, inner_nc, input_nc=None, submodule=None,
                   outermost=False, innermost=False):
        if input_nc is None:
            input_nc = outer_nc
        ks = jax.random.split(k, 5)
        p = {"outermost": outermost, "innermost": innermost, "sub": submodule}
        # downconv: Conv2d(input_nc, inner_nc, 4, 2, 1, bias=False)
        dw = 0.1 * jax.random.normal(ks[0], (inner_nc, input_nc, 4, 4), jnp.float32)
        p["dwm"] = _down_w_mat(dw)
        # upconv: ConvTranspose2d(inner_nc [*2 unless innermost], outer_nc, 4, 2, 1)
        up_in = inner_nc if innermost else inner_nc * 2
        uw = 0.1 * jax.random.normal(ks[1], (up_in, outer_nc, 4, 4), jnp.float32)
        p["uwm"] = _up_w_mat(uw)
        if outermost:
            p["ub"] = 0.1 * jax.random.normal(ks[2], (outer_nc,), jnp.float32)
        else:
            p["ug"], p["ubeta"] = bn_params(ks[3], outer_nc)
            if not innermost:
                p["dg"], p["dbeta"] = bn_params(ks[4], inner_nc)
        return p

    keys = jax.random.split(key, num_downs + 1)
    ki = iter(range(num_downs + 1))
    blk = make_block(keys[next(ki)], ngf * 8, ngf * 8, innermost=True)
    for _ in range(num_downs - 5):
        blk = make_block(keys[next(ki)], ngf * 8, ngf * 8, submodule=blk)
    blk = make_block(keys[next(ki)], ngf * 4, ngf * 8, submodule=blk)
    blk = make_block(keys[next(ki)], ngf * 2, ngf * 4, submodule=blk)
    blk = make_block(keys[next(ki)], ngf, ngf * 2, submodule=blk)
    blk = make_block(keys[next(ki)], output_nc, ngf, input_nc=input_nc,
                     submodule=blk, outermost=True)
    return blk


def block_forward(p, t):
    if p["outermost"]:
        # model = [downconv] + [submodule] + [ReLU, upconv, Tanh]
        z = _resolve(t, act=None)
        d, _ = conv2d_s2(z, p["dwm"], want_stats=False)
        st = block_forward(p["sub"], (d,) + _identity_affine(d.shape[0]))
        z2 = _resolve(st, act="relu")
        y, _ = conv_transpose2d_s2(z2, p["uwm"], bias=p["ub"], post_act="tanh",
                                   want_stats=False, out_dtype=jnp.float32)
        return y

    # non-outermost blocks start with [LeakyReLU, downconv, ...]
    z = _resolve(t, act="leaky")
    if p["innermost"]:
        # model = [LeakyReLU, downconv] + [ReLU, upconv, BN]
        d, _ = conv2d_s2(z, p["dwm"], want_stats=False)
        inner = (d,) + _identity_affine(d.shape[0])
    else:
        # model = [LeakyReLU, downconv, BN] + [submodule] + [ReLU, upconv, BN]
        d, dstats = conv2d_s2(z, p["dwm"], want_stats=True)
        cnt = d.shape[1] * d.shape[2] * d.shape[3]
        dscale, dshift = _bn_affine(dstats, cnt, p["dg"], p["dbeta"])
        inner = block_forward(p["sub"], (d, dscale, dshift))

    z2 = _resolve(inner, act="relu")
    u, ustats = conv_transpose2d_s2(z2, p["uwm"], want_stats=True)
    ucnt = u.shape[1] * u.shape[2] * u.shape[3]
    uscale, ushift = _bn_affine(ustats, ucnt, p["ug"], p["ubeta"])
    return _cat(t, (u, uscale, ushift))                  # torch.cat([x, model(x)], 1)


def unet_generator_forward(params, x_nchw):
    x = jnp.transpose(x_nchw, (1, 0, 2, 3)).astype(jnp.float32)   # -> (C, N, H, W)
    t = (x,) + _identity_affine(x.shape[0])
    y = block_forward(params, t)                                   # (C, N, H, W) f32
    return jnp.transpose(y, (1, 0, 2, 3))                          # -> NCHW


# ----------------------------------------------------------------------------
if __name__ == "__main__":
    key = jax.random.PRNGKey(0)
    kp, kx = jax.random.split(key)

    # UnetGenerator(input_nc=3, output_nc=3, num_downs=5, ngf=4) at 32x32 input.
    input_nc, output_nc, num_downs, ngf = 3, 3, 5, 4
    params = build_unet_params(kp, input_nc, output_nc, num_downs, ngf)

    x = jax.random.normal(kx, (2, input_nc, 32, 32), jnp.float32)

    fwd = jax.jit(lambda inp: unet_generator_forward(params, inp))
    out = jax.block_until_ready(fwd(x))

    assert out.shape == (2, output_nc, 32, 32), out.shape
    assert bool(jnp.all(jnp.isfinite(out)))
    assert bool(jnp.all(jnp.abs(out) <= 1.0 + 1e-6))   # final Tanh range
    print("KERNEL_OK")
</pallas_src>

<mosaic_0001>
module attributes {stable_mosaic.version = 11 : i64} {
  func.func @_conv_kernel_fullk(%arg0: i32, %arg1: i32, %arg2: memref<1x4x48xbf16, #tpu.memory_space<vmem>>, %arg3: memref<1x48x512xbf16, #tpu.memory_space<vmem>>, %arg4: memref<1x4x512xbf16, #tpu.memory_space<vmem>>) attributes {dimension_semantics = [#tpu.dimension_semantics<parallel>, #tpu.dimension_semantics<parallel>], iteration_bounds = array<i64: 1, 1>, scalar_prefetch = 0 : i64, scratch_operands = 0 : i64, tpu.core_type = #tpu.core_type<tc>, window_params = [{transform_indices = @transform_0, window_bounds = array<i64: 1, 4, 48>}, {transform_indices = @transform_1, window_bounds = array<i64: 1, 48, 512>}, {transform_indices = @transform_2, window_bounds = array<i64: 1, 4, 512>}]} {
    %c0 = arith.constant 0 : index
    %c0_0 = arith.constant 0 : index
    %c0_1 = arith.constant 0 : index
    %0 = vector.load %arg2[%c0, %c0_0, %c0_1] : memref<1x4x48xbf16, #tpu.memory_space<vmem>>, vector<1x4x48xbf16>
    %1 = vector.shape_cast %0 : vector<1x4x48xbf16> to vector<4x48xbf16>
    %c0_2 = arith.constant 0 : index
    %c0_3 = arith.constant 0 : index
    %c0_4 = arith.constant 0 : index
    %2 = vector.load %arg3[%c0_2, %c0_3, %c0_4] : memref<1x48x512xbf16, #tpu.memory_space<vmem>>, vector<1x48x512xbf16>
    %3 = vector.shape_cast %2 : vector<1x48x512xbf16> to vector<48x512xbf16>
    %cst = arith.constant dense<0.000000e+00> : vector<4x512xf32>
    %4 = tpu.matmul %1, %3, %cst {dimension_numbers = #tpu.dot_dimension_numbers<[1], [0], [0], [1], [0, 0, 1, 1], [], []>} : vector<4x48xbf16>, vector<48x512xbf16>, vector<4x512xf32> -> vector<4x512xf32>
    %5 = arith.truncf %4 : vector<4x512xf32> to vector<4x512xbf16>
    %c0_5 = arith.constant 0 : index
    %c0_6 = arith.constant 0 : index
    %c0_7 = arith.constant 0 : index
    %6 = vector.load %arg4[%c0_5, %c0_6, %c0_7] : memref<1x4x512xbf16, #tpu.memory_space<vmem>>, vector<1x4x512xbf16>
    %7 = vector.shape_cast %6 : vector<1x4x512xbf16> to vector<4x512xbf16>
    %8 = vector.shape_cast %5 : vector<4x512xbf16> to vector<1x4x512xbf16>
    tpu.vector_store %arg4[%c0_5, %c0_6, %c0_7], %8 {strides = array<i32>} : memref<1x4x512xbf16, #tpu.memory_space<vmem>>, vector<1x4x512xbf16>,
    return
  }
  func.func @transform_0(%arg0: i32, %arg1: i32) -> (i32, i32, i32) {
    %c0_i32 = arith.constant 0 : i32
    %c0_i32_0 = arith.constant 0 : i32
    %c0_i32_1 = arith.constant 0 : i32
    return %arg0, %c0_i32, %c0_i32_0 : i32, i32, i32
  }
  func.func @transform_1(%arg0: i32, %arg1: i32) -> (i32, i32, i32) {
    %c0_i32 = arith.constant 0 : i32
    %c0_i32_0 = arith.constant 0 : i32
    return %arg0, %c0_i32, %arg1 : i32, i32, i32
  }
  func.func @transform_2(%arg0: i32, %arg1: i32) -> (i32, i32, i32) {
    %c0_i32 = arith.constant 0 : i32
    %c0_i32_0 = arith.constant 0 : i32
    return %arg0, %c0_i32, %arg1 : i32, i32, i32
  }
}

module attributes {stable_mosaic.version = 11 : i64} {
  func.func @_conv_kernel_fullk(%arg0: i32, %arg1: i32, %arg2: memref<1x8x64xbf16, #tpu.memory_space<vmem>>, %arg3: memref<1x64x128xbf16, #tpu.memory_space<vmem>>, %arg4: memref<1x8x128xbf16, #tpu.memory_space<vmem>>, %arg5: memref<1x1x8x1xf32, #tpu.memory_space<vmem>>, %arg6: memref<1x1x8x1xf32, #tpu.memory_space<vmem>>) attributes {dimension_semantics = [#tpu.dimension_semantics<parallel>, #tpu.dimension_semantics<parallel>], iteration_bounds = array<i64: 1, 1>, scalar_prefetch = 0 : i64, scratch_operands = 0 : i64, tpu.core_type = #tpu.core_type<tc>, window_params = [{transform_indices = @transform_0, window_bounds = array<i64: 1, 8, 64>}, {transform_indices = @transform_1, window_bounds = array<i64: 1, 64, 128>}, {transform_indices = @transform_2, window_bounds = array<i64: 1, 8, 128>}, {transform_indices = @transform_3, window_bounds = array<i64: 1, 1, 8, 1>}, {transform_indices = @transform_4, window_bounds = array<i64: 1, 1, 8, 1>}]} {
    %c0 = arith.constant 0 : index
    %c0_0 = arith.constant 0 : index
    %c0_1 = arith.constant 0 : index
    %0 = vector.load %arg2[%c0, %c0_0, %c0_1] : memref<1x8x64xbf16, #tpu.memory_space<vmem>>, vector<1x8x64xbf16>
    %1 = vector.shape_cast %0 : vector<1x8x64xbf16> to vector<8x64xbf16>
    %c0_2 = arith.constant 0 : index
    %c0_3 = arith.constant 0 : index
    %c0_4 = arith.constant 0 : index
    %2 = vector.load %arg3[%c0_2, %c0_3, %c0_4] : memref<1x64x128xbf16, #tpu.memory_space<vmem>>, vector<1x64x128xbf16>
    %3 = vector.shape_cast %2 : vector<1x64x128xbf16> to vector<64x128xbf16>
    %cst = arith.constant dense<0.000000e+00> : vector<8x128xf32>
    %4 = tpu.matmul %1, %3, %cst {dimension_numbers = #tpu.dot_dimension_numbers<[1], [0], [0], [1], [0, 0, 1, 1], [], []>} : vector<8x64xbf16>, vector<64x128xbf16>, vector<8x128xf32> -> vector<8x128xf32>
    %cst_5 = arith.constant dense<0.000000e+00> : vector<8xf32>
    %5 = vector.multi_reduction <add>, %4, %cst_5 [1] : vector<8x128xf32> to vector<8xf32>
    %6 = vector.shape_cast %5 : vector<8xf32> to vector<8x1xf32>
    %c0_6 = arith.constant 0 : index
    %c0_7 = arith.constant 0 : index
    %c0_8 = arith.constant 0 : index
    %c0_9 = arith.constant 0 : index
    %7 = vector.load %arg5[%c0_6, %c0_7, %c0_8, %c0_9] : memref<1x1x8x1xf32, #tpu.memory_space<vmem>>, vector<1x1x8x1xf32>
    %8 = vector.shape_cast %7 : vector<1x1x8x1xf32> to vector<8x1xf32>
    %9 = vector.shape_cast %6 : vector<8x1xf32> to vector<1x1x8x1xf32>
    tpu.vector_store %arg5[%c0_6, %c0_7, %c0_8, %c0_9], %9 {strides = array<i32>} : memref<1x1x8x1xf32, #tpu.memory_space<vmem>>, vector<1x1x8x1xf32>,
    %10 = arith.mulf %4, %4 : vector<8x128xf32>
    %cst_10 = arith.constant dense<0.000000e+00> : vector<8xf32>
    %11 = vector.multi_reduction <add>, %10, %cst_10 [1] : vector<8x128xf32> to vector<8xf32>
    %12 = vector.shape_cast %11 : vector<8xf32> to vector<8x1xf32>
    %c0_11 = arith.constant 0 : index
    %c0_12 = arith.constant 0 : index
    %c0_13 = arith.constant 0 : index
    %c0_14 = arith.constant 0 : index
    %13 = vector.load %arg6[%c0_11, %c0_12, %c0_13, %c0_14] : memref<1x1x8x1xf32, #tpu.memory_space<vmem>>, vector<1x1x8x1xf32>
    %14 = vector.shape_cast %13 : vector<1x1x8x1xf32> to vector<8x1xf32>
    %15 = vector.shape_cast %12 : vector<8x1xf32> to vector<1x1x8x1xf32>
    tpu.vector_store %arg6[%c0_11, %c0_12, %c0_13, %c0_14], %15 {strides = array<i32>} : memref<1x1x8x1xf32, #tpu.memory_space<vmem>>, vector<1x1x8x1xf32>,
    %16 = arith.truncf %4 : vector<8x128xf32> to vector<8x128xbf16>
    %c0_15 = arith.constant 0 : index
    %c0_16 = arith.constant 0 : index
    %c0_17 = arith.constant 0 : index
    %17 = vector.load %arg4[%c0_15, %c0_16, %c0_17] : memref<1x8x128xbf16, #tpu.memory_space<vmem>>, vector<1x8x128xbf16>
    %18 = vector.shape_cast %17 : vector<1x8x128xbf16> to vector<8x128xbf16>
    %19 = vector.shape_cast %16 : vector<8x128xbf16> to vector<1x8x128xbf16>
    tpu.vector_store %arg4[%c0_15, %c0_16, %c0_17], %19 {strides = array<i32>} : memref<1x8x128xbf16, #tpu.memory_space<vmem>>, vector<1x8x128xbf16>,
    return
  }
  func.func @transform_0(%arg0: i32, %arg1: i32) -> (i32, i32, i32) {
    %c0_i32 = arith.constant 0 : i32
    %c0_i32_0 = arith.constant 0 : i32
    %c0_i32_1 = arith.constant 0 : i32
    return %arg0, %c0_i32, %c0_i32_0 : i32, i32, i32
  }
  func.func @transform_1(%arg0: i32, %arg1: i32) -> (i32, i32, i32) {
    %c0_i32 = arith.constant 0 : i32
    %c0_i32_0 = arith.constant 0 : i32
    return %arg0, %c0_i32, %arg1 : i32, i32, i32
  }
  func.func @transform_2(%arg0: i32, %arg1: i32) -> (i32, i32, i32) {
    %c0_i32 = arith.constant 0 : i32
    %c0_i32_0 = arith.constant 0 : i32
    return %arg0, %c0_i32, %arg1 : i32, i32, i32
  }
  func.func @transform_3(%arg0: i32, %arg1: i32) -> (i32, i32, i32, i32) {
    %c0_i32 = arith.constant 0 : i32
    %c0_i32_0 = arith.constant 0 : i32
    %c0_i32_1 = arith.constant 0 : i32
    return %arg0, %arg1, %c0_i32, %c0_i32_0 : i32, i32, i32, i32
  }
  func.func @transform_4(%arg0: i32, %arg1: i32) -> (i32, i32, i32, i32) {
    %c0_i32 = arith.constant 0 : i32
    %c0_i32_0 = arith.constant 0 : i32
    %c0_i32_1 = arith.constant 0 : i32
    return %arg0, %arg1, %c0_i32, %c0_i32_0 : i32, i32, i32, i32
  }
}

module attributes {stable_mosaic.version = 11 : i64} {
  func.func @_conv_kernel_fullk(%arg0: i32, %arg1: i32, %arg2: memref<1x16x128xbf16, #tpu.memory_space<vmem>>, %arg3: memref<1x128x128xbf16, #tpu.memory_space<vmem>>, %arg4: memref<1x16x128xbf16, #tpu.memory_space<vmem>>, %arg5: memref<1x1x16x1xf32, #tpu.memory_space<vmem>>, %arg6: memref<1x1x16x1xf32, #tpu.memory_space<vmem>>) attributes {dimension_semantics = [#tpu.dimension_semantics<parallel>, #tpu.dimension_semantics<parallel>], iteration_bounds = array<i64: 1, 1>, scalar_prefetch = 0 : i64, scratch_operands = 0 : i64, tpu.core_type = #tpu.core_type<tc>, window_params = [{transform_indices = @transform_0, window_bounds = array<i64: 1, 16, 128>}, {transform_indices = @transform_1, window_bounds = array<i64: 1, 128, 128>}, {transform_indices = @transform_2, window_bounds = array<i64: 1, 16, 128>}, {transform_indices = @transform_3, window_bounds = array<i64: 1, 1, 16, 1>}, {transform_indices = @transform_4, window_bounds = array<i64: 1, 1, 16, 1>}]} {
    %c0 = arith.constant 0 : index
    %c0_0 = arith.constant 0 : index
    %c0_1 = arith.constant 0 : index
    %0 = vector.load %arg2[%c0, %c0_0, %c0_1] : memref<1x16x128xbf16, #tpu.memory_space<vmem>>, vector<1x16x128xbf16>
    %1 = vector.shape_cast %0 : vector<1x16x128xbf16> to vector<16x128xbf16>
    %c0_2 = arith.constant 0 : index
    %c0_3 = arith.constant 0 : index
    %c0_4 = arith.constant 0 : index
    %2 = vector.load %arg3[%c0_2, %c0_3, %c0_4] : memref<1x128x128xbf16, #tpu.memory_space<vmem>>, vector<1x128x128xbf16>
    %3 = vector.shape_cast %2 : vector<1x128x128xbf16> to vector<128x128xbf16>
    %cst = arith.constant dense<0.000000e+00> : vector<16x128xf32>
    %4 = tpu.matmul %1, %3, %cst {dimension_numbers = #tpu.dot_dimension_numbers<[1], [0], [0], [1], [0, 0, 1, 1], [], []>} : vector<16x128xbf16>, vector<128x128xbf16>, vector<16x128xf32> -> vector<16x128xf32>
    %cst_5 = arith.constant dense<0.000000e+00> : vector<16xf32>
    %5 = vector.multi_reduction <add>, %4, %cst_5 [1] : vector<16x128xf32> to vector<16xf32>
    %6 = vector.shape_cast %5 : vector<16xf32> to vector<16x1xf32>
    %c0_6 = arith.constant 0 : index
    %c0_7 = arith.constant 0 : index
    %c0_8 = arith.constant 0 : index
    %c0_9 = arith.constant 0 : index
    %7 = vector.load %arg5[%c0_6, %c0_7, %c0_8, %c0_9] : memref<1x1x16x1xf32, #tpu.memory_space<vmem>>, vector<1x1x16x1xf32>
    %8 = vector.shape_cast %7 : vector<1x1x16x1xf32> to vector<16x1xf32>
    %9 = vector.shape_cast %6 : vector<16x1xf32> to vector<1x1x16x1xf32>
    tpu.vector_store %arg5[%c0_6, %c0_7, %c0_8, %c0_9], %9 {strides = array<i32>} : memref<1x1x16x1xf32, #tpu.memory_space<vmem>>, vector<1x1x16x1xf32>,
    %10 = arith.mulf %4, %4 : vector<16x128xf32>
    %cst_10 = arith.constant dense<0.000000e+00> : vector<16xf32>
    %11 = vector.multi_reduction <add>, %10, %cst_10 [1] : vector<16x128xf32> to vector<16xf32>
    %12 = vector.shape_cast %11 : vector<16xf32> to vector<16x1xf32>
    %c0_11 = arith.constant 0 : index
    %c0_12 = arith.constant 0 : index
    %c0_13 = arith.constant 0 : index
    %c0_14 = arith.constant 0 : index
    %13 = vector.load %arg6[%c0_11, %c0_12, %c0_13, %c0_14] : memref<1x1x16x1xf32, #tpu.memory_space<vmem>>, vector<1x1x16x1xf32>
    %14 = vector.shape_cast %13 : vector<1x1x16x1xf32> to vector<16x1xf32>
    %15 = vector.shape_cast %12 : vector<16x1xf32> to vector<1x1x16x1xf32>
    tpu.vector_store %arg6[%c0_11, %c0_12, %c0_13, %c0_14], %15 {strides = array<i32>} : memref<1x1x16x1xf32, #tpu.memory_space<vmem>>, vector<1x1x16x1xf32>,
    %16 = arith.truncf %4 : vector<16x128xf32> to vector<16x128xbf16>
    %c0_15 = arith.constant 0 : index
    %c0_16 = arith.constant 0 : index
    %c0_17 = arith.constant 0 : index
    %17 = vector.load %arg4[%c0_15, %c0_16, %c0_17] : memref<1x16x128xbf16, #tpu.memory_space<vmem>>, vector<1x16x128xbf16>
    %18 = vector.shape_cast %17 : vector<1x16x128xbf16> to vector<16x128xbf16>
    %19 = vector.shape_cast %16 : vector<16x128xbf16> to vector<1x16x128xbf16>
    tpu.vector_store %arg4[%c0_15, %c0_16, %c0_17], %19 {strides = array<i32>} : memref<1x16x128xbf16, #tpu.memory_space<vmem>>, vector<1x16x128xbf16>,
    return
  }
  func.func @transform_0(%arg0: i32, %arg1: i32) -> (i32, i32, i32) {
    %c0_i32 = arith.constant 0 : i32
    %c0_i32_0 = arith.constant 0 : i32
    %c0_i32_1 = arith.constant 0 : i32
    return %arg0, %c0_i32, %c0_i32_0 : i32, i32, i32
  }
  func.func @transform_1(%arg0: i32, %arg1: i32) -> (i32, i32, i32) {
    %c0_i32 = arith.constant 0 : i32
    %c0_i32_0 = arith.constant 0 : i32
    return %arg0, %c0_i32, %arg1 : i32, i32, i32
  }
  func.func @transform_2(%arg0: i32, %arg1: i32) -> (i32, i32, i32) {
    %c0_i32 = arith.constant 0 : i32
    %c0_i32_0 = arith.constant 0 : i32
    return %arg0, %c0_i32, %arg1 : i32, i32, i32
  }
  func.func @transform_3(%arg0: i32, %arg1: i32) -> (i32, i32, i32, i32) {
    %c0_i32 = arith.constant 0 : i32
    %c0_i32_0 = arith.constant 0 : i32
    %c0_i32_1 = arith.constant 0 : i32
    return %arg0, %arg1, %c0_i32, %c0_i32_0 : i32, i32, i32, i32
  }
  func.func @transform_4(%arg0: i32, %arg1: i32) -> (i32, i32, i32, i32) {
    %c0_i32 = arith.constant 0 : i32
    %c0_i32_0 = arith.constant 0 : i32
    %c0_i32_1 = arith.constant 0 : i32
    return %arg0, %arg1, %c0_i32, %c0_i32_0 : i32, i32, i32, i32
  }
}

module attributes {stable_mosaic.version = 11 : i64} {
  func.func @_conv_kernel_fullk(%arg0: i32, %arg1: i32, %arg2: memref<1x32x256xbf16, #tpu.memory_space<vmem>>, %arg3: memref<1x256x128xbf16, #tpu.memory_space<vmem>>, %arg4: memref<1x32x128xbf16, #tpu.memory_space<vmem>>, %arg5: memref<1x1x32x1xf32, #tpu.memory_space<vmem>>, %arg6: memref<1x1x32x1xf32, #tpu.memory_space<vmem>>) attributes {dimension_semantics = [#tpu.dimension_semantics<parallel>, #tpu.dimension_semantics<parallel>], iteration_bounds = array<i64: 1, 1>, scalar_prefetch = 0 : i64, scratch_operands = 0 : i64, tpu.core_type = #tpu.core_type<tc>, window_params = [{transform_indices = @transform_0, window_bounds = array<i64: 1, 32, 256>}, {transform_indices = @transform_1, window_bounds = array<i64: 1, 256, 128>}, {transform_indices = @transform_2, window_bounds = array<i64: 1, 32, 128>}, {transform_indices = @transform_3, window_bounds = array<i64: 1, 1, 32, 1>}, {transform_indices = @transform_4, window_bounds = array<i64: 1, 1, 32, 1>}]} {
    %c0 = arith.constant 0 : index
    %c0_0 = arith.constant 0 : index
    %c0_1 = arith.constant 0 : index
    %0 = vector.load %arg2[%c0, %c0_0, %c0_1] : memref<1x32x256xbf16, #tpu.memory_space<vmem>>, vector<1x32x256xbf16>
    %1 = vector.shape_cast %0 : vector<1x32x256xbf16> to vector<32x256xbf16>
    %c0_2 = arith.constant 0 : index
    %c0_3 = arith.constant 0 : index
    %c0_4 = arith.constant 0 : index
    %2 = vector.load %arg3[%c0_2, %c0_3, %c0_4] : memref<1x256x128xbf16, #tpu.memory_space<vmem>>, vector<1x256x128xbf16>
    %3 = vector.shape_cast %2 : vector<1x256x128xbf16> to vector<256x128xbf16>
    %cst = arith.constant dense<0.000000e+00> : vector<32x128xf32>
    %4 = tpu.matmul %1, %3, %cst {dimension_numbers = #tpu.dot_dimension_numbers<[1], [0], [0], [1], [0, 0, 1, 1], [], []>} : vector<32x256xbf16>, vector<256x128xbf16>, vector<32x128xf32> -> vector<32x128xf32>
    %cst_5 = arith.constant dense<0.000000e+00> : vector<32xf32>
    %5 = vector.multi_reduction <add>, %4, %cst_5 [1] : vector<32x128xf32> to vector<32xf32>
    %6 = vector.shape_cast %5 : vector<32xf32> to vector<32x1xf32>
    %c0_6 = arith.constant 0 : index
    %c0_7 = arith.constant 0 : index
    %c0_8 = arith.constant 0 : index
    %c0_9 = arith.constant 0 : index
    %7 = vector.load %arg5[%c0_6, %c0_7, %c0_8, %c0_9] : memref<1x1x32x1xf32, #tpu.memory_space<vmem>>, vector<1x1x32x1xf32>
    %8 = vector.shape_cast %7 : vector<1x1x32x1xf32> to vector<32x1xf32>
    %9 = vector.shape_cast %6 : vector<32x1xf32> to vector<1x1x32x1xf32>
    tpu.vector_store %arg5[%c0_6, %c0_7, %c0_8, %c0_9], %9 {strides = array<i32>} : memref<1x1x32x1xf32, #tpu.memory_space<vmem>>, vector<1x1x32x1xf32>,
    %10 = arith.mulf %4, %4 : vector<32x128xf32>
    %cst_10 = arith.constant dense<0.000000e+00> : vector<32xf32>
    %11 = vector.multi_reduction <add>, %10, %cst_10 [1] : vector<32x128xf32> to vector<32xf32>
    %12 = vector.shape_cast %11 : vector<32xf32> to vector<32x1xf32>
    %c0_11 = arith.constant 0 : index
    %c0_12 = arith.constant 0 : index
    %c0_13 = arith.constant 0 : index
    %c0_14 = arith.constant 0 : index
    %13 = vector.load %arg6[%c0_11, %c0_12, %c0_13, %c0_14] : memref<1x1x32x1xf32, #tpu.memory_space<vmem>>, vector<1x1x32x1xf32>
    %14 = vector.shape_cast %13 : vector<1x1x32x1xf32> to vector<32x1xf32>
    %15 = vector.shape_cast %12 : vector<32x1xf32> to vector<1x1x32x1xf32>
    tpu.vector_store %arg6[%c0_11, %c0_12, %c0_13, %c0_14], %15 {strides = array<i32>} : memref<1x1x32x1xf32, #tpu.memory_space<vmem>>, vector<1x1x32x1xf32>,
    %16 = arith.truncf %4 : vector<32x128xf32> to vector<32x128xbf16>
    %c0_15 = arith.constant 0 : index
    %c0_16 = arith.constant 0 : index
    %c0_17 = arith.constant 0 : index
    %17 = vector.load %arg4[%c0_15, %c0_16, %c0_17] : memref<1x32x128xbf16, #tpu.memory_space<vmem>>, vector<1x32x128xbf16>
    %18 = vector.shape_cast %17 : vector<1x32x128xbf16> to vector<32x128xbf16>
    %19 = vector.shape_cast %16 : vector<32x128xbf16> to vector<1x32x128xbf16>
    tpu.vector_store %arg4[%c0_15, %c0_16, %c0_17], %19 {strides = array<i32>} : memref<1x32x128xbf16, #tpu.memory_space<vmem>>, vector<1x32x128xbf16>,
    return
  }
  func.func @transform_0(%arg0: i32, %arg1: i32) -> (i32, i32, i32) {
    %c0_i32 = arith.constant 0 : i32
    %c0_i32_0 = arith.constant 0 : i32
    %c0_i32_1 = arith.constant 0 : i32
    return %arg0, %c0_i32, %c0_i32_0 : i32, i32, i32
  }
  func.func @transform_1(%arg0: i32, %arg1: i32) -> (i32, i32, i32) {
    %c0_i32 = arith.constant 0 : i32
    %c0_i32_0 = arith.constant 0 : i32
    return %arg0, %c0_i32, %arg1 : i32, i32, i32
  }
  func.func @transform_2(%arg0: i32, %arg1: i32) -> (i32, i32, i32) {
    %c0_i32 = arith.constant 0 : i32
    %c0_i32_0 = arith.constant 0 : i32
    return %arg0, %c0_i32, %arg1 : i32, i32, i32
  }
  func.func @transform_3(%arg0: i32, %arg1: i32) -> (i32, i32, i32, i32) {
    %c0_i32 = arith.constant 0 : i32
    %c0_i32_0 = arith.constant 0 : i32
    %c0_i32_1 = arith.constant 0 : i32
    return %arg0, %arg1, %c0_i32, %c0_i32_0 : i32, i32, i32, i32
  }
  func.func @transform_4(%arg0: i32, %arg1: i32) -> (i32, i32, i32, i32) {
    %c0_i32 = arith.constant 0 : i32
    %c0_i32_0 = arith.constant 0 : i32
    %c0_i32_1 = arith.constant 0 : i32
    return %arg0, %arg1, %c0_i32, %c0_i32_0 : i32, i32, i32, i32
  }
}

module attributes {stable_mosaic.version = 11 : i64} {
  func.func @_conv_kernel_fullk(%arg0: i32, %arg1: i32, %arg2: memref<1x32x512xbf16, #tpu.memory_space<vmem>>, %arg3: memref<1x512x128xbf16, #tpu.memory_space<vmem>>, %arg4: memref<1x32x128xbf16, #tpu.memory_space<vmem>>) attributes {dimension_semantics = [#tpu.dimension_semantics<parallel>, #tpu.dimension_semantics<parallel>], iteration_bounds = array<i64: 1, 1>, scalar_prefetch = 0 : i64, scratch_operands = 0 : i64, tpu.core_type = #tpu.core_type<tc>, window_params = [{transform_indices = @transform_0, window_bounds = array<i64: 1, 32, 512>}, {transform_indices = @transform_1, window_bounds = array<i64: 1, 512, 128>}, {transform_indices = @transform_2, window_bounds = array<i64: 1, 32, 128>}]} {
    %c0 = arith.constant 0 : index
    %c0_0 = arith.constant 0 : index
    %c0_1 = arith.constant 0 : index
    %0 = vector.load %arg2[%c0, %c0_0, %c0_1] : memref<1x32x512xbf16, #tpu.memory_space<vmem>>, vector<1x32x512xbf16>
    %1 = vector.shape_cast %0 : vector<1x32x512xbf16> to vector<32x512xbf16>
    %c0_2 = arith.constant 0 : index
    %c0_3 = arith.constant 0 : index
    %c0_4 = arith.constant 0 : index
    %2 = vector.load %arg3[%c0_2, %c0_3, %c0_4] : memref<1x512x128xbf16, #tpu.memory_space<vmem>>, vector<1x512x128xbf16>
    %3 = vector.shape_cast %2 : vector<1x512x128xbf16> to vector<512x128xbf16>
    %cst = arith.constant dense<0.000000e+00> : vector<32x128xf32>
    %4 = tpu.matmul %1, %3, %cst {dimension_numbers = #tpu.dot_dimension_numbers<[1], [0], [0], [1], [0, 0, 1, 1], [], []>} : vector<32x512xbf16>, vector<512x128xbf16>, vector<32x128xf32> -> vector<32x128xf32>
    %5 = arith.truncf %4 : vector<32x128xf32> to vector<32x128xbf16>
    %c0_5 = arith.constant 0 : index
    %c0_6 = arith.constant 0 : index
    %c0_7 = arith.constant 0 : index
    %6 = vector.load %arg4[%c0_5, %c0_6, %c0_7] : memref<1x32x128xbf16, #tpu.memory_space<vmem>>, vector<1x32x128xbf16>
    %7 = vector.shape_cast %6 : vector<1x32x128xbf16> to vector<32x128xbf16>
    %8 = vector.shape_cast %5 : vector<32x128xbf16> to vector<1x32x128xbf16>
    tpu.vector_store %arg4[%c0_5, %c0_6, %c0_7], %8 {strides = array<i32>} : memref<1x32x128xbf16, #tpu.memory_space<vmem>>, vector<1x32x128xbf16>,
    return
  }
  func.func @transform_0(%arg0: i32, %arg1: i32) -> (i32, i32, i32) {
    %c0_i32 = arith.constant 0 : i32
    %c0_i32_0 = arith.constant 0 : i32
    %c0_i32_1 = arith.constant 0 : i32
    return %arg0, %c0_i32, %c0_i32_0 : i32, i32, i32
  }
  func.func @transform_1(%arg0: i32, %arg1: i32) -> (i32, i32, i32) {
    %c0_i32 = arith.constant 0 : i32
    %c0_i32_0 = arith.constant 0 : i32
    return %arg0, %c0_i32, %arg1 : i32, i32, i32
  }
  func.func @transform_2(%arg0: i32, %arg1: i32) -> (i32, i32, i32) {
    %c0_i32 = arith.constant 0 : i32
    %c0_i32_0 = arith.constant 0 : i32
    return %arg0, %c0_i32, %arg1 : i32, i32, i32
  }
}

module attributes {stable_mosaic.version = 11 : i64} {
  func.func @_conv_kernel_fullk(%arg0: i32, %arg1: i32, %arg2: memref<1x32x128xbf16, #tpu.memory_space<vmem>>, %arg3: memref<1x128x128xbf16, #tpu.memory_space<vmem>>, %arg4: memref<1x32x128xbf16, #tpu.memory_space<vmem>>, %arg5: memref<1x1x32x1xf32, #tpu.memory_space<vmem>>, %arg6: memref<1x1x32x1xf32, #tpu.memory_space<vmem>>) attributes {dimension_semantics = [#tpu.dimension_semantics<parallel>, #tpu.dimension_semantics<parallel>], iteration_bounds = array<i64: 4, 1>, scalar_prefetch = 0 : i64, scratch_operands = 0 : i64, tpu.core_type = #tpu.core_type<tc>, window_params = [{transform_indices = @transform_0, window_bounds = array<i64: 1, 32, 128>}, {transform_indices = @transform_1, window_bounds = array<i64: 1, 128, 128>}, {transform_indices = @transform_2, window_bounds = array<i64: 1, 32, 128>}, {transform_indices = @transform_3, window_bounds = array<i64: 1, 1, 32, 1>}, {transform_indices = @transform_4, window_bounds = array<i64: 1, 1, 32, 1>}]} {
    %c0 = arith.constant 0 : index
    %c0_0 = arith.constant 0 : index
    %c0_1 = arith.constant 0 : index
    %0 = vector.load %arg2[%c0, %c0_0, %c0_1] : memref<1x32x128xbf16, #tpu.memory_space<vmem>>, vector<1x32x128xbf16>
    %1 = vector.shape_cast %0 : vector<1x32x128xbf16> to vector<32x128xbf16>
    %c0_2 = arith.constant 0 : index
    %c0_3 = arith.constant 0 : index
    %c0_4 = arith.constant 0 : index
    %2 = vector.load %arg3[%c0_2, %c0_3, %c0_4] : memref<1x128x128xbf16, #tpu.memory_space<vmem>>, vector<1x128x128xbf16>
    %3 = vector.shape_cast %2 : vector<1x128x128xbf16> to vector<128x128xbf16>
    %cst = arith.constant dense<0.000000e+00> : vector<32x128xf32>
    %4 = tpu.matmul %1, %3, %cst {dimension_numbers = #tpu.dot_dimension_numbers<[1], [0], [0], [1], [0, 0, 1, 1], [], []>} : vector<32x128xbf16>, vector<128x128xbf16>, vector<32x128xf32> -> vector<32x128xf32>
    %cst_5 = arith.constant dense<0.000000e+00> : vector<32xf32>
    %5 = vector.multi_reduction <add>, %4, %cst_5 [1] : vector<32x128xf32> to vector<32xf32>
    %6 = vector.shape_cast %5 : vector<32xf32> to vector<32x1xf32>
    %c0_6 = arith.constant 0 : index
    %c0_7 = arith.constant 0 : index
    %c0_8 = arith.constant 0 : index
    %c0_9 = arith.constant 0 : index
    %7 = vector.load %arg5[%c0_6, %c0_7, %c0_8, %c0_9] : memref<1x1x32x1xf32, #tpu.memory_space<vmem>>, vector<1x1x32x1xf32>
    %8 = vector.shape_cast %7 : vector<1x1x32x1xf32> to vector<32x1xf32>
    %9 = vector.shape_cast %6 : vector<32x1xf32> to vector<1x1x32x1xf32>
    tpu.vector_store %arg5[%c0_6, %c0_7, %c0_8, %c0_9], %9 {strides = array<i32>} : memref<1x1x32x1xf32, #tpu.memory_space<vmem>>, vector<1x1x32x1xf32>,
    %10 = arith.mulf %4, %4 : vector<32x128xf32>
    %cst_10 = arith.constant dense<0.000000e+00> : vector<32xf32>
    %11 = vector.multi_reduction <add>, %10, %cst_10 [1] : vector<32x128xf32> to vector<32xf32>
    %12 = vector.shape_cast %11 : vector<32xf32> to vector<32x1xf32>
    %c0_11 = arith.constant 0 : index
    %c0_12 = arith.constant 0 : index
    %c0_13 = arith.constant 0 : index
    %c0_14 = arith.constant 0 : index
    %13 = vector.load %arg6[%c0_11, %c0_12, %c0_13, %c0_14] : memref<1x1x32x1xf32, #tpu.memory_space<vmem>>, vector<1x1x32x1xf32>
    %14 = vector.shape_cast %13 : vector<1x1x32x1xf32> to vector<32x1xf32>
    %15 = vector.shape_cast %12 : vector<32x1xf32> to vector<1x1x32x1xf32>
    tpu.vector_store %arg6[%c0_11, %c0_12, %c0_13, %c0_14], %15 {strides = array<i32>} : memref<1x1x32x1xf32, #tpu.memory_space<vmem>>, vector<1x1x32x1xf32>,
    %16 = arith.truncf %4 : vector<32x128xf32> to vector<32x128xbf16>
    %c0_15 = arith.constant 0 : index
    %c0_16 = arith.constant 0 : index
    %c0_17 = arith.constant 0 : index
    %17 = vector.load %arg4[%c0_15, %c0_16, %c0_17] : memref<1x32x128xbf16, #tpu.memory_space<vmem>>, vector<1x32x128xbf16>
    %18 = vector.shape_cast %17 : vector<1x32x128xbf16> to vector<32x128xbf16>
    %19 = vector.shape_cast %16 : vector<32x128xbf16> to vector<1x32x128xbf16>
    tpu.vector_store %arg4[%c0_15, %c0_16, %c0_17], %19 {strides = array<i32>} : memref<1x32x128xbf16, #tpu.memory_space<vmem>>, vector<1x32x128xbf16>,
    return
  }
  func.func @transform_0(%arg0: i32, %arg1: i32) -> (i32, i32, i32) {
    %c0_i32 = arith.constant 0 : i32
    %c0_i32_0 = arith.constant 0 : i32
    %c0_i32_1 = arith.constant 0 : i32
    return %arg0, %c0_i32, %c0_i32_0 : i32, i32, i32
  }
  func.func @transform_1(%arg0: i32, %arg1: i32) -> (i32, i32, i32) {
    %c0_i32 = arith.constant 0 : i32
    %c0_i32_0 = arith.constant 0 : i32
    return %arg0, %c0_i32, %arg1 : i32, i32, i32
  }
  func.func @transform_2(%arg0: i32, %arg1: i32) -> (i32, i32, i32) {
    %c0_i32 = arith.constant 0 : i32
    %c0_i32_0 = arith.constant 0 : i32
    return %arg0, %c0_i32, %arg1 : i32, i32, i32
  }
  func.func @transform_3(%arg0: i32, %arg1: i32) -> (i32, i32, i32, i32) {
    %c0_i32 = arith.constant 0 : i32
    %c0_i32_0 = arith.constant 0 : i32
    %c0_i32_1 = arith.constant 0 : i32
    return %arg0, %arg1, %c0_i32, %c0_i32_0 : i32, i32, i32, i32
  }
  func.func @transform_4(%arg0: i32, %arg1: i32) -> (i32, i32, i32, i32) {
    %c0_i32 = arith.constant 0 : i32
    %c0_i32_0 = arith.constant 0 : i32
    %c0_i32_1 = arith.constant 0 : i32
    return %arg0, %arg1, %c0_i32, %c0_i32_0 : i32, i32, i32, i32
  }
}

module attributes {stable_mosaic.version = 11 : i64} {
  func.func @_conv_kernel_fullk(%arg0: i32, %arg1: i32, %arg2: memref<1x16x256xbf16, #tpu.memory_space<vmem>>, %arg3: memref<1x256x128xbf16, #tpu.memory_space<vmem>>, %arg4: memref<1x16x128xbf16, #tpu.memory_space<vmem>>, %arg5: memref<1x1x16x1xf32, #tpu.memory_space<vmem>>, %arg6: memref<1x1x16x1xf32, #tpu.memory_space<vmem>>) attributes {dimension_semantics = [#tpu.dimension_semantics<parallel>, #tpu.dimension_semantics<parallel>], iteration_bounds = array<i64: 4, 1>, scalar_prefetch = 0 : i64, scratch_operands = 0 : i64, tpu.core_type = #tpu.core_type<tc>, window_params = [{transform_indices = @transform_0, window_bounds = array<i64: 1, 16, 256>}, {transform_indices = @transform_1, window_bounds = array<i64: 1, 256, 128>}, {transform_indices = @transform_2, window_bounds = array<i64: 1, 16, 128>}, {transform_indices = @transform_3, window_bounds = array<i64: 1, 1, 16, 1>}, {transform_indices = @transform_4, window_bounds = array<i64: 1, 1, 16, 1>}]} {
    %c0 = arith.constant 0 : index
    %c0_0 = arith.constant 0 : index
    %c0_1 = arith.constant 0 : index
    %0 = vector.load %arg2[%c0, %c0_0, %c0_1] : memref<1x16x256xbf16, #tpu.memory_space<vmem>>, vector<1x16x256xbf16>
    %1 = vector.shape_cast %0 : vector<1x16x256xbf16> to vector<16x256xbf16>
    %c0_2 = arith.constant 0 : index
    %c0_3 = arith.constant 0 : index
    %c0_4 = arith.constant 0 : index
    %2 = vector.load %arg3[%c0_2, %c0_3, %c0_4] : memref<1x256x128xbf16, #tpu.memory_space<vmem>>, vector<1x256x128xbf16>
    %3 = vector.shape_cast %2 : vector<1x256x128xbf16> to vector<256x128xbf16>
    %cst = arith.constant dense<0.000000e+00> : vector<16x128xf32>
    %4 = tpu.matmul %1, %3, %cst {dimension_numbers = #tpu.dot_dimension_numbers<[1], [0], [0], [1], [0, 0, 1, 1], [], []>} : vector<16x256xbf16>, vector<256x128xbf16>, vector<16x128xf32> -> vector<16x128xf32>
    %cst_5 = arith.constant dense<0.000000e+00> : vector<16xf32>
    %5 = vector.multi_reduction <add>, %4, %cst_5 [1] : vector<16x128xf32> to vector<16xf32>
    %6 = vector.shape_cast %5 : vector<16xf32> to vector<16x1xf32>
    %c0_6 = arith.constant 0 : index
    %c0_7 = arith.constant 0 : index
    %c0_8 = arith.constant 0 : index
    %c0_9 = arith.constant 0 : index
    %7 = vector.load %arg5[%c0_6, %c0_7, %c0_8, %c0_9] : memref<1x1x16x1xf32, #tpu.memory_space<vmem>>, vector<1x1x16x1xf32>
    %8 = vector.shape_cast %7 : vector<1x1x16x1xf32> to vector<16x1xf32>
    %9 = vector.shape_cast %6 : vector<16x1xf32> to vector<1x1x16x1xf32>
    tpu.vector_store %arg5[%c0_6, %c0_7, %c0_8, %c0_9], %9 {strides = array<i32>} : memref<1x1x16x1xf32, #tpu.memory_space<vmem>>, vector<1x1x16x1xf32>,
    %10 = arith.mulf %4, %4 : vector<16x128xf32>
    %cst_10 = arith.constant dense<0.000000e+00> : vector<16xf32>
    %11 = vector.multi_reduction <add>, %10, %cst_10 [1] : vector<16x128xf32> to vector<16xf32>
    %12 = vector.shape_cast %11 : vector<16xf32> to vector<16x1xf32>
    %c0_11 = arith.constant 0 : index
    %c0_12 = arith.constant 0 : index
    %c0_13 = arith.constant 0 : index
    %c0_14 = arith.constant 0 : index
    %13 = vector.load %arg6[%c0_11, %c0_12, %c0_13, %c0_14] : memref<1x1x16x1xf32, #tpu.memory_space<vmem>>, vector<1x1x16x1xf32>
    %14 = vector.shape_cast %13 : vector<1x1x16x1xf32> to vector<16x1xf32>
    %15 = vector.shape_cast %12 : vector<16x1xf32> to vector<1x1x16x1xf32>
    tpu.vector_store %arg6[%c0_11, %c0_12, %c0_13, %c0_14], %15 {strides = array<i32>} : memref<1x1x16x1xf32, #tpu.memory_space<vmem>>, vector<1x1x16x1xf32>,
    %16 = arith.truncf %4 : vector<16x128xf32> to vector<16x128xbf16>
    %c0_15 = arith.constant 0 : index
    %c0_16 = arith.constant 0 : index
    %c0_17 = arith.constant 0 : index
    %17 = vector.load %arg4[%c0_15, %c0_16, %c0_17] : memref<1x16x128xbf16, #tpu.memory_space<vmem>>, vector<1x16x128xbf16>
    %18 = vector.shape_cast %17 : vector<1x16x128xbf16> to vector<16x128xbf16>
    %19 = vector.shape_cast %16 : vector<16x128xbf16> to vector<1x16x128xbf16>
    tpu.vector_store %arg4[%c0_15, %c0_16, %c0_17], %19 {strides = array<i32>} : memref<1x16x128xbf16, #tpu.memory_space<vmem>>, vector<1x16x128xbf16>,
    return
  }
  func.func @transform_0(%arg0: i32, %arg1: i32) -> (i32, i32, i32) {
    %c0_i32 = arith.constant 0 : i32
    %c0_i32_0 = arith.constant 0 : i32
    %c0_i32_1 = arith.constant 0 : i32
    return %arg0, %c0_i32, %c0_i32_0 : i32, i32, i32
  }
  func.func @transform_1(%arg0: i32, %arg1: i32) -> (i32, i32, i32) {
    %c0_i32 = arith.constant 0 : i32
    %c0_i32_0 = arith.constant 0 : i32
    return %arg0, %c0_i32, %arg1 : i32, i32, i32
  }
  func.func @transform_2(%arg0: i32, %arg1: i32) -> (i32, i32, i32) {
    %c0_i32 = arith.constant 0 : i32
    %c0_i32_0 = arith.constant 0 : i32
    return %arg0, %c0_i32, %arg1 : i32, i32, i32
  }
  func.func @transform_3(%arg0: i32, %arg1: i32) -> (i32, i32, i32, i32) {
    %c0_i32 = arith.constant 0 : i32
    %c0_i32_0 = arith.constant 0 : i32
    %c0_i32_1 = arith.constant 0 : i32
    return %arg0, %arg1, %c0_i32, %c0_i32_0 : i32, i32, i32, i32
  }
  func.func @transform_4(%arg0: i32, %arg1: i32) -> (i32, i32, i32, i32) {
    %c0_i32 = arith.constant 0 : i32
    %c0_i32_0 = arith.constant 0 : i32
    %c0_i32_1 = arith.constant 0 : i32
    return %arg0, %arg1, %c0_i32, %c0_i32_0 : i32, i32, i32, i32
  }
}

module attributes {stable_mosaic.version = 11 : i64} {
  func.func @_conv_kernel_fullk(%arg0: i32, %arg1: i32, %arg2: memref<1x8x128xbf16, #tpu.memory_space<vmem>>, %arg3: memref<1x128x128xbf16, #tpu.memory_space<vmem>>, %arg4: memref<1x8x128xbf16, #tpu.memory_space<vmem>>, %arg5: memref<1x1x8x1xf32, #tpu.memory_space<vmem>>, %arg6: memref<1x1x8x1xf32, #tpu.memory_space<vmem>>) attributes {dimension_semantics = [#tpu.dimension_semantics<parallel>, #tpu.dimension_semantics<parallel>], iteration_bounds = array<i64: 4, 1>, scalar_prefetch = 0 : i64, scratch_operands = 0 : i64, tpu.core_type = #tpu.core_type<tc>, window_params = [{transform_indices = @transform_0, window_bounds = array<i64: 1, 8, 128>}, {transform_indices = @transform_1, window_bounds = array<i64: 1, 128, 128>}, {transform_indices = @transform_2, window_bounds = array<i64: 1, 8, 128>}, {transform_indices = @transform_3, window_bounds = array<i64: 1, 1, 8, 1>}, {transform_indices = @transform_4, window_bounds = array<i64: 1, 1, 8, 1>}]} {
    %c0 = arith.constant 0 : index
    %c0_0 = arith.constant 0 : index
    %c0_1 = arith.constant 0 : index
    %0 = vector.load %arg2[%c0, %c0_0, %c0_1] : memref<1x8x128xbf16, #tpu.memory_space<vmem>>, vector<1x8x128xbf16>
    %1 = vector.shape_cast %0 : vector<1x8x128xbf16> to vector<8x128xbf16>
    %c0_2 = arith.constant 0 : index
    %c0_3 = arith.constant 0 : index
    %c0_4 = arith.constant 0 : index
    %2 = vector.load %arg3[%c0_2, %c0_3, %c0_4] : memref<1x128x128xbf16, #tpu.memory_space<vmem>>, vector<1x128x128xbf16>
    %3 = vector.shape_cast %2 : vector<1x128x128xbf16> to vector<128x128xbf16>
    %cst = arith.constant dense<0.000000e+00> : vector<8x128xf32>
    %4 = tpu.matmul %1, %3, %cst {dimension_numbers = #tpu.dot_dimension_numbers<[1], [0], [0], [1], [0, 0, 1, 1], [], []>} : vector<8x128xbf16>, vector<128x128xbf16>, vector<8x128xf32> -> vector<8x128xf32>
    %cst_5 = arith.constant dense<0.000000e+00> : vector<8xf32>
    %5 = vector.multi_reduction <add>, %4, %cst_5 [1] : vector<8x128xf32> to vector<8xf32>
    %6 = vector.shape_cast %5 : vector<8xf32> to vector<8x1xf32>
    %c0_6 = arith.constant 0 : index
    %c0_7 = arith.constant 0 : index
    %c0_8 = arith.constant 0 : index
    %c0_9 = arith.constant 0 : index
    %7 = vector.load %arg5[%c0_6, %c0_7, %c0_8, %c0_9] : memref<1x1x8x1xf32, #tpu.memory_space<vmem>>, vector<1x1x8x1xf32>
    %8 = vector.shape_cast %7 : vector<1x1x8x1xf32> to vector<8x1xf32>
    %9 = vector.shape_cast %6 : vector<8x1xf32> to vector<1x1x8x1xf32>
    tpu.vector_store %arg5[%c0_6, %c0_7, %c0_8, %c0_9], %9 {strides = array<i32>} : memref<1x1x8x1xf32, #tpu.memory_space<vmem>>, vector<1x1x8x1xf32>,
    %10 = arith.mulf %4, %4 : vector<8x128xf32>
    %cst_10 = arith.constant dense<0.000000e+00> : vector<8xf32>
    %11 = vector.multi_reduction <add>, %10, %cst_10 [1] : vector<8x128xf32> to vector<8xf32>
    %12 = vector.shape_cast %11 : vector<8xf32> to vector<8x1xf32>
    %c0_11 = arith.constant 0 : index
    %c0_12 = arith.constant 0 : index
    %c0_13 = arith.constant 0 : index
    %c0_14 = arith.constant 0 : index
    %13 = vector.load %arg6[%c0_11, %c0_12, %c0_13, %c0_14] : memref<1x1x8x1xf32, #tpu.memory_space<vmem>>, vector<1x1x8x1xf32>
    %14 = vector.shape_cast %13 : vector<1x1x8x1xf32> to vector<8x1xf32>
    %15 = vector.shape_cast %12 : vector<8x1xf32> to vector<1x1x8x1xf32>
    tpu.vector_store %arg6[%c0_11, %c0_12, %c0_13, %c0_14], %15 {strides = array<i32>} : memref<1x1x8x1xf32, #tpu.memory_space<vmem>>, vector<1x1x8x1xf32>,
    %16 = arith.truncf %4 : vector<8x128xf32> to vector<8x128xbf16>
    %c0_15 = arith.constant 0 : index
    %c0_16 = arith.constant 0 : index
    %c0_17 = arith.constant 0 : index
    %17 = vector.load %arg4[%c0_15, %c0_16, %c0_17] : memref<1x8x128xbf16, #tpu.memory_space<vmem>>, vector<1x8x128xbf16>
    %18 = vector.shape_cast %17 : vector<1x8x128xbf16> to vector<8x128xbf16>
    %19 = vector.shape_cast %16 : vector<8x128xbf16> to vector<1x8x128xbf16>
    tpu.vector_store %arg4[%c0_15, %c0_16, %c0_17], %19 {strides = array<i32>} : memref<1x8x128xbf16, #tpu.memory_space<vmem>>, vector<1x8x128xbf16>,
    return
  }
  func.func @transform_0(%arg0: i32, %arg1: i32) -> (i32, i32, i32) {
    %c0_i32 = arith.constant 0 : i32
    %c0_i32_0 = arith.constant 0 : i32
    %c0_i32_1 = arith.constant 0 : i32
    return %arg0, %c0_i32, %c0_i32_0 : i32, i32, i32
  }
  func.func @transform_1(%arg0: i32, %arg1: i32) -> (i32, i32, i32) {
    %c0_i32 = arith.constant 0 : i32
    %c0_i32_0 = arith.constant 0 : i32
    return %arg0, %c0_i32, %arg1 : i32, i32, i32
  }
  func.func @transform_2(%arg0: i32, %arg1: i32) -> (i32, i32, i32) {
    %c0_i32 = arith.constant 0 : i32
    %c0_i32_0 = arith.constant 0 : i32
    return %arg0, %c0_i32, %arg1 : i32, i32, i32
  }
  func.func @transform_3(%arg0: i32, %arg1: i32) -> (i32, i32, i32, i32) {
    %c0_i32 = arith.constant 0 : i32
    %c0_i32_0 = arith.constant 0 : i32
    %c0_i32_1 = arith.constant 0 : i32
    return %arg0, %arg1, %c0_i32, %c0_i32_0 : i32, i32, i32, i32
  }
  func.func @transform_4(%arg0: i32, %arg1: i32) -> (i32, i32, i32, i32) {
    %c0_i32 = arith.constant 0 : i32
    %c0_i32_0 = arith.constant 0 : i32
    %c0_i32_1 = arith.constant 0 : i32
    return %arg0, %arg1, %c0_i32, %c0_i32_0 : i32, i32, i32, i32
  }
}

module attributes {stable_mosaic.version = 11 : i64} {
  func.func @_conv_kernel_fullk(%arg0: i32, %arg1: i32, %arg2: memref<1x4x64xbf16, #tpu.memory_space<vmem>>, %arg3: memref<1x64x128xbf16, #tpu.memory_space<vmem>>, %arg4: memref<1x4x128xbf16, #tpu.memory_space<vmem>>, %arg5: memref<1x1x4x1xf32, #tpu.memory_space<vmem>>, %arg6: memref<1x1x4x1xf32, #tpu.memory_space<vmem>>) attributes {dimension_semantics = [#tpu.dimension_semantics<parallel>, #tpu.dimension_semantics<parallel>], iteration_bounds = array<i64: 4, 1>, scalar_prefetch = 0 : i64, scratch_operands = 0 : i64, tpu.core_type = #tpu.core_type<tc>, window_params = [{transform_indices = @transform_0, window_bounds = array<i64: 1, 4, 64>}, {transform_indices = @transform_1, window_bounds = array<i64: 1, 64, 128>}, {transform_indices = @transform_2, window_bounds = array<i64: 1, 4, 128>}, {transform_indices = @transform_3, window_bounds = array<i64: 1, 1, 4, 1>}, {transform_indices = @transform_4, window_bounds = array<i64: 1, 1, 4, 1>}]} {
    %c0 = arith.constant 0 : index
    %c0_0 = arith.constant 0 : index
    %c0_1 = arith.constant 0 : index
    %0 = vector.load %arg2[%c0, %c0_0, %c0_1] : memref<1x4x64xbf16, #tpu.memory_space<vmem>>, vector<1x4x64xbf16>
    %1 = vector.shape_cast %0 : vector<1x4x64xbf16> to vector<4x64xbf16>
    %c0_2 = arith.constant 0 : index
    %c0_3 = arith.constant 0 : index
    %c0_4 = arith.constant 0 : index
    %2 = vector.load %arg3[%c0_2, %c0_3, %c0_4] : memref<1x64x128xbf16, #tpu.memory_space<vmem>>, vector<1x64x128xbf16>
    %3 = vector.shape_cast %2 : vector<1x64x128xbf16> to vector<64x128xbf16>
    %cst = arith.constant dense<0.000000e+00> : vector<4x128xf32>
    %4 = tpu.matmul %1, %3, %cst {dimension_numbers = #tpu.dot_dimension_numbers<[1], [0], [0], [1], [0, 0, 1, 1], [], []>} : vector<4x64xbf16>, vector<64x128xbf16>, vector<4x128xf32> -> vector<4x128xf32>
    %cst_5 = arith.constant dense<0.000000e+00> : vector<4xf32>
    %5 = vector.multi_reduction <add>, %4, %cst_5 [1] : vector<4x128xf32> to vector<4xf32>
    %6 = vector.shape_cast %5 : vector<4xf32> to vector<4x1xf32>
    %c0_6 = arith.constant 0 : index
    %c0_7 = arith.constant 0 : index
    %c0_8 = arith.constant 0 : index
    %c0_9 = arith.constant 0 : index
    %7 = vector.load %arg5[%c0_6, %c0_7, %c0_8, %c0_9] : memref<1x1x4x1xf32, #tpu.memory_space<vmem>>, vector<1x1x4x1xf32>
    %8 = vector.shape_cast %7 : vector<1x1x4x1xf32> to vector<4x1xf32>
    %9 = vector.shape_cast %6 : vector<4x1xf32> to vector<1x1x4x1xf32>
    tpu.vector_store %arg5[%c0_6, %c0_7, %c0_8, %c0_9], %9 {strides = array<i32>} : memref<1x1x4x1xf32, #tpu.memory_space<vmem>>, vector<1x1x4x1xf32>,
    %10 = arith.mulf %4, %4 : vector<4x128xf32>
    %cst_10 = arith.constant dense<0.000000e+00> : vector<4xf32>
    %11 = vector.multi_reduction <add>, %10, %cst_10 [1] : vector<4x128xf32> to vector<4xf32>
    %12 = vector.shape_cast %11 : vector<4xf32> to vector<4x1xf32>
    %c0_11 = arith.constant 0 : index
    %c0_12 = arith.constant 0 : index
    %c0_13 = arith.constant 0 : index
    %c0_14 = arith.constant 0 : index
    %13 = vector.load %arg6[%c0_11, %c0_12, %c0_13, %c0_14] : memref<1x1x4x1xf32, #tpu.memory_space<vmem>>, vector<1x1x4x1xf32>
    %14 = vector.shape_cast %13 : vector<1x1x4x1xf32> to vector<4x1xf32>
    %15 = vector.shape_cast %12 : vector<4x1xf32> to vector<1x1x4x1xf32>
    tpu.vector_store %arg6[%c0_11, %c0_12, %c0_13, %c0_14], %15 {strides = array<i32>} : memref<1x1x4x1xf32, #tpu.memory_space<vmem>>, vector<1x1x4x1xf32>,
    %16 = arith.truncf %4 : vector<4x128xf32> to vector<4x128xbf16>
    %c0_15 = arith.constant 0 : index
    %c0_16 = arith.constant 0 : index
    %c0_17 = arith.constant 0 : index
    %17 = vector.load %arg4[%c0_15, %c0_16, %c0_17] : memref<1x4x128xbf16, #tpu.memory_space<vmem>>, vector<1x4x128xbf16>
    %18 = vector.shape_cast %17 : vector<1x4x128xbf16> to vector<4x128xbf16>
    %19 = vector.shape_cast %16 : vector<4x128xbf16> to vector<1x4x128xbf16>
    tpu.vector_store %arg4[%c0_15, %c0_16, %c0_17], %19 {strides = array<i32>} : memref<1x4x128xbf16, #tpu.memory_space<vmem>>, vector<1x4x128xbf16>,
    return
  }
  func.func @transform_0(%arg0: i32, %arg1: i32) -> (i32, i32, i32) {
    %c0_i32 = arith.constant 0 : i32
    %c0_i32_0 = arith.constant 0 : i32
    %c0_i32_1 = arith.constant 0 : i32
    return %arg0, %c0_i32, %c0_i32_0 : i32, i32, i32
  }
  func.func @transform_1(%arg0: i32, %arg1: i32) -> (i32, i32, i32) {
    %c0_i32 = arith.constant 0 : i32
    %c0_i32_0 = arith.constant 0 : i32
    return %arg0, %c0_i32, %arg1 : i32, i32, i32
  }
  func.func @transform_2(%arg0: i32, %arg1: i32) -> (i32, i32, i32) {
    %c0_i32 = arith.constant 0 : i32
    %c0_i32_0 = arith.constant 0 : i32
    return %arg0, %c0_i32, %arg1 : i32, i32, i32
  }
  func.func @transform_3(%arg0: i32, %arg1: i32) -> (i32, i32, i32, i32) {
    %c0_i32 = arith.constant 0 : i32
    %c0_i32_0 = arith.constant 0 : i32
    %c0_i32_1 = arith.constant 0 : i32
    return %arg0, %arg1, %c0_i32, %c0_i32_0 : i32, i32, i32, i32
  }
  func.func @transform_4(%arg0: i32, %arg1: i32) -> (i32, i32, i32, i32) {
    %c0_i32 = arith.constant 0 : i32
    %c0_i32_0 = arith.constant 0 : i32
    %c0_i32_1 = arith.constant 0 : i32
    return %arg0, %arg1, %c0_i32, %c0_i32_0 : i32, i32, i32, i32
  }
}

module attributes {stable_mosaic.version = 11 : i64} {
  func.func @_conv_kernel_fullk(%arg0: i32, %arg1: i32, %arg2: memref<1x3x32xbf16, #tpu.memory_space<vmem>>, %arg3: memref<1x32x512xbf16, #tpu.memory_space<vmem>>, %arg4: memref<3x1xf32, #tpu.memory_space<vmem>>, %arg5: memref<1x3x512xf32, #tpu.memory_space<vmem>>) attributes {dimension_semantics = [#tpu.dimension_semantics<parallel>, #tpu.dimension_semantics<parallel>], iteration_bounds = array<i64: 4, 1>, scalar_prefetch = 0 : i64, scratch_operands = 0 : i64, tpu.core_type = #tpu.core_type<tc>, window_params = [{transform_indices = @transform_0, window_bounds = array<i64: 1, 3, 32>}, {transform_indices = @transform_1, window_bounds = array<i64: 1, 32, 512>}, {pipeline_mode = #tpu.pipeline_mode<synchronous>, transform_indices = @transform_2, window_bounds = array<i64: 3, 1>}, {transform_indices = @transform_3, window_bounds = array<i64: 1, 3, 512>}]} {
    %c0 = arith.constant 0 : index
    %c0_0 = arith.constant 0 : index
    %c0_1 = arith.constant 0 : index
    %0 = vector.load %arg2[%c0, %c0_0, %c0_1] : memref<1x3x32xbf16, #tpu.memory_space<vmem>>, vector<1x3x32xbf16>
    %1 = vector.shape_cast %0 : vector<1x3x32xbf16> to vector<3x32xbf16>
    %c0_2 = arith.constant 0 : index
    %c0_3 = arith.constant 0 : index
    %c0_4 = arith.constant 0 : index
    %2 = vector.load %arg3[%c0_2, %c0_3, %c0_4] : memref<1x32x512xbf16, #tpu.memory_space<vmem>>, vector<1x32x512xbf16>
    %3 = vector.shape_cast %2 : vector<1x32x512xbf16> to vector<32x512xbf16>
    %cst = arith.constant dense<0.000000e+00> : vector<3x512xf32>
    %4 = tpu.matmul %1, %3, %cst {dimension_numbers = #tpu.dot_dimension_numbers<[1], [0], [0], [1], [0, 0, 1, 1], [], []>} : vector<3x32xbf16>, vector<32x512xbf16>, vector<3x512xf32> -> vector<3x512xf32>
    %c0_5 = arith.constant 0 : index
    %c0_6 = arith.constant 0 : index
    %5 = vector.load %arg4[%c0_5, %c0_6] : memref<3x1xf32, #tpu.memory_space<vmem>>, vector<3x1xf32>
    %6 = vector.broadcast %5 : vector<3x1xf32> to vector<3x512xf32>
    %7 = arith.addf %4, %6 : vector<3x512xf32>
    %8 = math.tanh %7 : vector<3x512xf32>
    %c0_7 = arith.constant 0 : index
    %c0_8 = arith.constant 0 : index
    %c0_9 = arith.constant 0 : index
    %9 = vector.load %arg5[%c0_7, %c0_8, %c0_9] : memref<1x3x512xf32, #tpu.memory_space<vmem>>, vector<1x3x512xf32>
    %10 = vector.shape_cast %9 : vector<1x3x512xf32> to vector<3x512xf32>
    %11 = vector.shape_cast %8 : vector<3x512xf32> to vector<1x3x512xf32>
    tpu.vector_store %arg5[%c0_7, %c0_8, %c0_9], %11 {strides = array<i32>} : memref<1x3x512xf32, #tpu.memory_space<vmem>>, vector<1x3x512xf32>,
    return
  }
  func.func @transform_0(%arg0: i32, %arg1: i32) -> (i32, i32, i32) {
    %c0_i32 = arith.constant 0 : i32
    %c0_i32_0 = arith.constant 0 : i32
    %c0_i32_1 = arith.constant 0 : i32
    return %arg0, %c0_i32, %c0_i32_0 : i32, i32, i32
  }
  func.func @transform_1(%arg0: i32, %arg1: i32) -> (i32, i32, i32) {
    %c0_i32 = arith.constant 0 : i32
    %c0_i32_0 = arith.constant 0 : i32
    return %arg0, %c0_i32, %arg1 : i32, i32, i32
  }
  func.func @transform_2(%arg0: i32, %arg1: i32) -> (i32, i32) {
    %c0_i32 = arith.constant 0 : i32
    %c0_i32_0 = arith.constant 0 : i32
    %c0_i32_1 = arith.constant 0 : i32
    return %c0_i32, %c0_i32_0 : i32, i32
  }
  func.func @transform_3(%arg0: i32, %arg1: i32) -> (i32, i32, i32) {
    %c0_i32 = arith.constant 0 : i32
    %c0_i32_0 = arith.constant 0 : i32
    return %arg0, %c0_i32, %arg1 : i32, i32, i32
  }
}

</mosaic_0001>

<bundles_post_ra>
// kernel: squeeze.19
= control target key start
LH: loop header
LB: loop body
LE: loop exit
PB: predicated region body
PF: predicated region fallthrough
CT: control target
= control target key end

     0   :  { %2 = vsyncpa [#allocation1], 0  ;;  %s515_s6 = smov [#allocation0]   ;;  %s627_s0 = inlined_call_operand.hbm [shape: bf16[1,4,512], index: 0, kind: input, shape index: {}]   ;;  %s628_s1 = inlined_call_operand.vmem [shape: bf16[4,2,16,16], index: 1, kind: output, shape index: {}]  }
   0x1   :  { %s7_s7 = sshll.u32 %s515_s6, 4  ;;  %s491_s10 = scalar_lea.hbm %s627_s0, 128  ;;  %s8_s7 = int_to_ptr.vmem [resolvable:$true] %s7_s7 }
   0x2   :  { %p492_p0 = scmp.ne.s32.totalorder %s627_s0, %s491_s10  ;;  %p495_p1 = scmp.lt.u32.totalorder %s491_s10, %s627_s0 }
   0x4   :  { %p497_p2 = pnand %p495_p1, %p492_p0 }
   0x6   :  { %500 = shalt.err (!%p497_p2)
}
   0x7   :  { %s501_s15 = scalar_lea.vmem %s8_s7, 128  ;;  %p506_p4 = scmp.lt.s32.totalorder %s8_s7, %s8_s7 }
   0x8   :  { %p502_p3 = scmp.ne.s32.totalorder %s8_s7, %s501_s15  ;;  %p507_p5 = scmp.lt.s32.totalorder %s501_s15, %s501_s15 }
   0xa   :  { %p508_p6 = por %p507_p5, %p506_p4 }
   0xc   :  { %p509_p7 = pnand %p508_p6, %p502_p3 }
   0xe   :  { %512 = shalt.err (!%p509_p7)
}
   0xf   :  { %10 = dma.hbm_to_vmem [thread:$0]  %s627_s0, 128, %s8_s7, [#allocation1]  }
  0x10   :  { %513 = dma.done.wait [#allocation1], 128  }
  0x11   :  { %514 = vsyncadd [#allocation1], 4294967168  ;;  %v26_v0 = vld [vmem:[#allocation0] sm:$0xff]   ;;  %vm120_vm0 = vcmask 1047556   ;;  %s516_s0 = smov 96   ;;  %s517_s18 = smov 112  }
  0x12   :  { %v27_v1 = vunpack.c.h.bf16 %v26_v0  ;;  %v58_v2 = vunpack.c.l.bf16 %v26_v0  ;;  %s518_s19 = smov 80   ;;  %vm76_vm1 = vcmask 130048   ;;  %s519_s20 = smov 64  }
  0x13   :  { %s520_s21 = smov 48   ;;  %s521_s22 = smov 32  }
  0x14   :  { %30 = vst [vmem:[#allocation3 + $0x10] ss:$8 sps:$4 sm:$0xff] %v27_v1   ;;  %61 = vst [vmem:[#allocation3] ss:$8 sps:$4 sm:$0xff] %v58_v2   ;;  %s522_s23 = smov 16  }
  0x1b   :  { %v142_v3 = vld [vmem:[#allocation3] ss:$8 sm:$0xf]   ;;  %v144_v4 = vld [vmem:[#allocation3 - $0x1f] ss:$8 sm:$0xf0]  }
  0x1c   :  { %v146_v5 = vsel %vm120_vm0, %v144_v4, %v142_v3  ;;  %v117_v6 = vld [vmem:[#allocation3] ss:$8 sm:$0xf]   ;;  %v119_v7 = vld [vmem:[#allocation3 - $0x1f] ss:$8 sm:$0xf0]  }
  0x1d   :  { %147 = vrot.lane.b32.xlu1 %v146_v5, %s516_s0  ;;  %v121_v8 = vsel %vm120_vm0, %v119_v7, %v117_v6  ;;  %v155_v9 = vld [vmem:[#allocation3 + $0x2] ss:$8 sm:$0xf]   ;;  %v157_v10 = vld [vmem:[#allocation3 - $0x1d] ss:$8 sm:$0xf0]  }
  0x1e   :  { %122 = vrot.lane.b32.xlu0 %v121_v8, %s517_s18  ;;  %v159_v11 = vsel %vm120_vm0, %v157_v10, %v155_v9  ;;  %v130_v12 = vld [vmem:[#allocation3 + $0x2] ss:$8 sm:$0xf]   ;;  %v132_v13 = vld [vmem:[#allocation3 - $0x1d] ss:$8 sm:$0xf0]  }
  0x1f   :  { %v134_v14 = vsel %vm120_vm0, %v132_v13, %v130_v12  ;;  %v180_v15 = vld [vmem:[#allocation3 + $0x2] ss:$8 sm:$0xf]   ;;  %v182_v16 = vld [vmem:[#allocation3 - $0x1d] ss:$8 sm:$0xf0]  }
  0x20   :  { %v167_v17 = vld [vmem:[#allocation3] ss:$8 sm:$0xf]   ;;  %v169_v18 = vld [vmem:[#allocation3 - $0x1f] ss:$8 sm:$0xf0]   ;;  %v184_v19 = vsel %vm120_vm0, %v182_v16, %v180_v15 }
  0x21   :  { %160 = vrot.lane.b32.xlu1 %v159_v11, %s516_s0  ;;  %v171_v20 = vsel %vm120_vm0, %v169_v18, %v167_v17  ;;  %v205_v21 = vld [vmem:[#allocation3 + $0x2] ss:$8 sm:$0xf]   ;;  %v207_v22 = vld [vmem:[#allocation3 - $0x1d] ss:$8 sm:$0xf0]  }
  0x22   :  { %135 = vrot.lane.b32.xlu0 %v134_v14, %s517_s18  ;;  %v192_v23 = vld [vmem:[#allocation3] ss:$8 sm:$0xf]   ;;  %v194_v24 = vld [vmem:[#allocation3 - $0x1f] ss:$8 sm:$0xf0]   ;;  %v209_v25 = vsel %vm120_vm0, %v207_v22, %v205_v21 }
  0x23   :  { %v196_v26 = vsel %vm120_vm0, %v194_v24, %v192_v23  ;;  %v230_v27 = vld [vmem:[#allocation3 + $0x2] ss:$8 sm:$0xf]   ;;  %v232_v28 = vld [vmem:[#allocation3 - $0x1d] ss:$8 sm:$0xf0]  }
  0x24   :  { %v217_v29 = vld [vmem:[#allocation3] ss:$8 sm:$0xf]   ;;  %v219_v30 = vld [vmem:[#allocation3 - $0x1f] ss:$8 sm:$0xf0]   ;;  %v234_v34 = vsel %vm120_vm0, %v232_v28, %v230_v27 }
  0x25   :  { %185 = vrot.lane.b32.xlu1 %v184_v19, %s518_s19  ;;  %v75_v31 = vld [vmem:[#allocation3] sm:$0xf]   ;;  %v85_v32 = vld [vmem:[#allocation3 + $0x8] sm:$0xf]   ;;  %v96_v33 = vld [vmem:[#allocation3 + $0x10] sm:$0xf]   ;;  %v221_v36 = vsel %vm120_vm0, %v219_v30, %v217_v29 }
  0x26   :  { %172 = vrot.lane.b32.xlu0 %v171_v20, %s518_s19  ;;  %77 = vst.msk [vmem:[#allocation2] sm:$0x1] %vm76_vm1, %v75_v31   ;;  %79 = vst.msk [vmem:[#allocation2 + $0x1f] sm:$0x2] %vm76_vm1, %v75_v31   ;;  %v107_v35 = vld [vmem:[#allocation3 + $0x18] sm:$0xf]  }
  0x27   :  { %81 = vst.msk [vmem:[#allocation2 + $0x3e] sm:$0x4] %vm76_vm1, %v75_v31   ;;  %83 = vst.msk [vmem:[#allocation2 + $0x5d] sm:$0x8] %vm76_vm1, %v75_v31  }
  0x28   :  { %88 = vst.msk [vmem:[#allocation2 + $0x8] sm:$0x1] %vm76_vm1, %v85_v32   ;;  %90 = vst.msk [vmem:[#allocation2 + $0x27] sm:$0x2] %vm76_vm1, %v85_v32  }
  0x29   :  { %210 = vrot.lane.b32.xlu1 %v209_v25, %s519_s20  ;;  %92 = vst.msk [vmem:[#allocation2 + $0x46] sm:$0x4] %vm76_vm1, %v85_v32   ;;  %94 = vst.msk [vmem:[#allocation2 + $0x65] sm:$0x8] %vm76_vm1, %v85_v32  }
  0x2a   :  { %197 = vrot.lane.b32.xlu0 %v196_v26, %s519_s20  ;;  %99 = vst.msk [vmem:[#allocation2 + $0x10] sm:$0x1] %vm76_vm1, %v96_v33   ;;  %101 = vst.msk [vmem:[#allocation2 + $0x2f] sm:$0x2] %vm76_vm1, %v96_v33  }
  0x2b   :  { %103 = vst.msk [vmem:[#allocation2 + $0x4e] sm:$0x4] %vm76_vm1, %v96_v33   ;;  %105 = vst.msk [vmem:[#allocation2 + $0x6d] sm:$0x8] %vm76_vm1, %v96_v33  }
  0x2c   :  { %v255_v37 = vld [vmem:[#allocation3 + $0x2] ss:$8 sm:$0xf]   ;;  %v257_v38 = vld [vmem:[#allocation3 - $0x1d] ss:$8 sm:$0xf0]  }
  0x2d   :  { %110 = vst.msk [vmem:[#allocation2 + $0x18] sm:$0x1] %vm76_vm1, %v107_v35   ;;  %112 = vst.msk [vmem:[#allocation2 + $0x37] sm:$0x2] %vm76_vm1, %v107_v35   ;;  %235 = vrot.lane.b32.xlu1 %v234_v34, %s520_s21  ;;  %v259_v41 = vsel %vm120_vm0, %v257_v38, %v255_v37 }
  0x2e   :  { %114 = vst.msk [vmem:[#allocation2 + $0x56] sm:$0x4] %vm76_vm1, %v107_v35   ;;  %116 = vst.msk [vmem:[#allocation2 + $0x75] sm:$0x8] %vm76_vm1, %v107_v35   ;;  %222 = vrot.lane.b32.xlu0 %v221_v36, %s520_s21 }
  0x2f   :  { %v242_v39 = vld [vmem:[#allocation3] ss:$8 sm:$0xf]   ;;  %v244_v40 = vld [vmem:[#allocation3 - $0x1f] ss:$8 sm:$0xf0]  }
  0x30   :  { %v246_v42 = vsel %vm120_vm0, %v244_v40, %v242_v39  ;;  %v280_v43 = vld [vmem:[#allocation3 + $0x2] ss:$8 sm:$0xf]   ;;  %v282_v44 = vld [vmem:[#allocation3 - $0x1d] ss:$8 sm:$0xf0]  }
  0x31   :  { %v267_v45 = vld [vmem:[#allocation3] ss:$8 sm:$0xf]   ;;  %v269_v46 = vld [vmem:[#allocation3 - $0x1f] ss:$8 sm:$0xf0]   ;;  %260 = vrot.lane.b32.xlu1 %v259_v41, %s521_s22  ;;  %v284_v47 = vsel %vm120_vm0, %v282_v44, %v280_v43 }
  0x32   :  { %247 = vrot.lane.b32.xlu0 %v246_v42, %s521_s22  ;;  %v271_v48 = vsel %vm120_vm0, %v269_v46, %v267_v45 }
  0x35   :  { %285 = vrot.lane.b32.xlu1 %v284_v47, %s522_s23 }
  0x36   :  { %272 = vrot.lane.b32.xlu0 %v271_v48, %s522_s23 }
  0x8f   :  { %v148_v49 = vpop.permute.xlu1 %147  }
  0x90   :  { %151 = vst.msk [vmem:[#allocation2 + $0x2] ss:$8 sm:$0xf] %vm76_vm1, %v148_v49   ;;  %153 = vst.msk [vmem:[#allocation2 + $0x2] ss:$8 sm:$0xf0] %vm76_vm1, %v148_v49   ;;  %v123_v50 = vpop.permute.xlu0 %122  }
  0x91   :  { %126 = vst.msk [vmem:[#allocation2 + $0x1] ss:$8 sm:$0xf] %vm76_vm1, %v123_v50   ;;  %128 = vst.msk [vmem:[#allocation2 + $0x1] ss:$8 sm:$0xf0] %vm76_vm1, %v123_v50  }
  0x93   :  { %v161_v51 = vpop.permute.xlu1 %160  }
  0x94   :  { %164 = vst.msk [vmem:[#allocation2 + $0x42] ss:$8 sm:$0xf] %vm76_vm1, %v161_v51   ;;  %166 = vst.msk [vmem:[#allocation2 + $0x42] ss:$8 sm:$0xf0] %vm76_vm1, %v161_v51   ;;  %v136_v52 = vpop.permute.xlu0 %135  }
  0x95   :  { %139 = vst.msk [vmem:[#allocation2 + $0x41] ss:$8 sm:$0xf] %vm76_vm1, %v136_v52   ;;  %141 = vst.msk [vmem:[#allocation2 + $0x41] ss:$8 sm:$0xf0] %vm76_vm1, %v136_v52  }
  0x97   :  { %v186_v53 = vpop.permute.xlu1 %185  }
  0x98   :  { %189 = vst.msk [vmem:[#allocation2 + $0x43] ss:$8 sm:$0xf] %vm76_vm1, %v186_v53   ;;  %191 = vst.msk [vmem:[#allocation2 + $0x43] ss:$8 sm:$0xf0] %vm76_vm1, %v186_v53   ;;  %v173_v54 = vpop.permute.xlu0 %172  }
  0x99   :  { %176 = vst.msk [vmem:[#allocation2 + $0x3] ss:$8 sm:$0xf] %vm76_vm1, %v173_v54   ;;  %178 = vst.msk [vmem:[#allocation2 + $0x3] ss:$8 sm:$0xf0] %vm76_vm1, %v173_v54  }
  0x9b   :  { %v211_v55 = vpop.permute.xlu1 %210  }
  0x9c   :  { %214 = vst.msk [vmem:[#allocation2 + $0x44] ss:$8 sm:$0xf] %vm76_vm1, %v211_v55   ;;  %216 = vst.msk [vmem:[#allocation2 + $0x44] ss:$8 sm:$0xf0] %vm76_vm1, %v211_v55   ;;  %v198_v56 = vpop.permute.xlu0 %197  }
  0x9d   :  { %201 = vst.msk [vmem:[#allocation2 + $0x4] ss:$8 sm:$0xf] %vm76_vm1, %v198_v56   ;;  %203 = vst.msk [vmem:[#allocation2 + $0x4] ss:$8 sm:$0xf0] %vm76_vm1, %v198_v56  }
  0x9f   :  { %v236_v57 = vpop.permute.xlu1 %235  }
  0xa0   :  { %239 = vst.msk [vmem:[#allocation2 + $0x45] ss:$8 sm:$0xf] %vm76_vm1, %v236_v57   ;;  %241 = vst.msk [vmem:[#allocation2 + $0x45] ss:$8 sm:$0xf0] %vm76_vm1, %v236_v57   ;;  %v223_v58 = vpop.permute.xlu0 %222  }
  0xa1   :  { %226 = vst.msk [vmem:[#allocation2 + $0x5] ss:$8 sm:$0xf] %vm76_vm1, %v223_v58   ;;  %228 = vst.msk [vmem:[#allocation2 + $0x5] ss:$8 sm:$0xf0] %vm76_vm1, %v223_v58  }
  0xa3   :  { %v261_v59 = vpop.permute.xlu1 %260  }
  0xa4   :  { %264 = vst.msk [vmem:[#allocation2 + $0x46] ss:$8 sm:$0xf] %vm76_vm1, %v261_v59   ;;  %266 = vst.msk [vmem:[#allocation2 + $0x46] ss:$8 sm:$0xf0] %vm76_vm1, %v261_v59   ;;  %v248_v60 = vpop.permute.xlu0 %247  }
  0xa5   :  { %251 = vst.msk [vmem:[#allocation2 + $0x6] ss:$8 sm:$0xf] %vm76_vm1, %v248_v60   ;;  %253 = vst.msk [vmem:[#allocation2 + $0x6] ss:$8 sm:$0xf0] %vm76_vm1, %v248_v60  }
  0xa7   :  { %v286_v61 = vpop.permute.xlu1 %285  }
  0xa8   :  { %289 = vst.msk [vmem:[#allocation2 + $0x47] ss:$8 sm:$0xf] %vm76_vm1, %v286_v61   ;;  %291 = vst.msk [vmem:[#allocation2 + $0x47] ss:$8 sm:$0xf0] %vm76_vm1, %v286_v61   ;;  %v273_v62 = vpop.permute.xlu0 %272  }
  0xa9   :  { %276 = vst.msk [vmem:[#allocation2 + $0x7] ss:$8 sm:$0xf] %vm76_vm1, %v273_v62   ;;  %278 = vst.msk [vmem:[#allocation2 + $0x7] ss:$8 sm:$0xf0] %vm76_vm1, %v273_v62  }
  0xaf   :  { %v349_v63 = vld [vmem:[#allocation2 + $0x40] sm:$0xff]  ;;  %v356_v0 = vld [vmem:[#allocation2 + $0x48] sm:$0xff]  ;;  %v363_v1 = vld [vmem:[#allocation2 + $0x50] sm:$0xff] }
  0xb0   :  { %v296_v2 = vld [vmem:[#allocation2] sm:$0xff]  ;;  %v301_v3 = vld [vmem:[#allocation2 + $0x8] sm:$0xff]  ;;  %v307_v4 = vld [vmem:[#allocation2 + $0x10] sm:$0xff]  ;;  %v459_v5 = vpack.c.bf16 %v356_v0, %v349_v63 }
  0xb1   :  { %v439_v6 = vpack.c.bf16 %v301_v3, %v296_v2  ;;  %v314_v7 = vld [vmem:[#allocation2 + $0x18] sm:$0xff]  ;;  %v321_v8 = vld [vmem:[#allocation2 + $0x20] sm:$0xff]  ;;  %v328_v9 = vld [vmem:[#allocation2 + $0x28] sm:$0xff] }
  0xb2   :  { %v444_v10 = vpack.c.bf16 %v314_v7, %v307_v4  ;;  %v449_v11 = vpack.c.bf16 %v328_v9, %v321_v8  ;;  %v335_v12 = vld [vmem:[#allocation2 + $0x30] sm:$0xff]  ;;  %v342_v13 = vld [vmem:[#allocation2 + $0x38] sm:$0xff]  ;;  %479 = vst [vmem:[%s628_s1 + $0x20] sm:$0xff] %v459_v5   ;;  %v377_v17 = vld [vmem:[#allocation2 + $0x60] sm:$0xff] }
  0xb3   :  { %v370_v14 = vld [vmem:[#allocation2 + $0x58] sm:$0xff]  ;;  %440 = vst [vmem:[%s628_s1] sm:$0xff] %v439_v6   ;;  %v454_v15 = vpack.c.bf16 %v342_v13, %v335_v12  ;;  %v384_v18 = vld [vmem:[#allocation2 + $0x68] sm:$0xff]  ;;  %v391_v19 = vld [vmem:[#allocation2 + $0x70] sm:$0xff] }
  0xb4   :  { %v464_v16 = vpack.c.bf16 %v370_v14, %v363_v1  ;;  %476 = vst [vmem:[%s628_s1 + $0x8] sm:$0xff] %v444_v10   ;;  %477 = vst [vmem:[%s628_s1 + $0x10] sm:$0xff] %v449_v11   ;;  %v469_v20 = vpack.c.bf16 %v384_v18, %v377_v17  ;;  %v398_v21 = vld [vmem:[#allocation2 + $0x78] sm:$0xff] }
  0xb5   :  { %478 = vst [vmem:[%s628_s1 + $0x18] sm:$0xff] %v454_v15   ;;  %v474_v22 = vpack.c.bf16 %v398_v21, %v391_v19 }
  0xb6   :  { %480 = vst [vmem:[%s628_s1 + $0x28] sm:$0xff] %v464_v16   ;;  %481 = vst [vmem:[%s628_s1 + $0x30] sm:$0xff] %v469_v20  }
  0xb7   :  { %482 = vst [vmem:[%s628_s1 + $0x38] sm:$0xff] %v474_v22  }
  0xb8   :  { %404 = vsyncpa [#allocation1], 1 }

// kernel: _lambda_.10
= control target key start
LH: loop header
LB: loop body
LE: loop exit
PB: predicated region body
PF: predicated region fallthrough
CT: control target
= control target key end

     0   :  { %7 = vsyncpa [#allocation3], 0  ;;  %s419_s0 = inlined_call_operand.hbm [shape: bf16[1,4,48], index: 0, kind: input, shape index: {}]   ;;  %s420_s1 = inlined_call_operand.hbm [shape: bf16[1,48,512], index: 1, kind: input, shape index: {}]   ;;  %s421_s2 = inlined_call_operand.hbm [shape: bf16[1,4,512], index: 2, kind: output, shape index: {}]  }
   0x1   :  { %8 = vsyncpa [#allocation6], 0 }
   0x2   :  { %9 = vsyncpa [#allocation4], 0  ;;  %s354_s9 = smov [#allocation2]   ;;  %s355_s11 = smov [#allocation5]  }
   0x3   :  { %s16_s10 = sshll.u32 %s354_s9, 4  ;;  %s25_s12 = sshll.u32 %s355_s11, 4  ;;  %s17_s10 = int_to_ptr.vmem [resolvable:$true] %s16_s10  ;;  %s376_s12 = int_to_ptr.vmem [resolvable:$true] %s25_s12 }
   0x4   :  { %s282_s15 = scalar_lea.hbm %s419_s0, 32 }
   0x5   :  { %p283_p0 = scmp.ne.s32.totalorder %s419_s0, %s282_s15  ;;  %p286_p1 = scmp.lt.u32.totalorder %s282_s15, %s419_s0 }
   0x7   :  { %p288_p2 = pnand %p286_p1, %p283_p0 }
   0x9   :  { %291 = shalt.err (!%p288_p2)
}
   0xa   :  { %s292_s20 = scalar_lea.vmem %s17_s10, 32  ;;  %p297_p4 = scmp.lt.s32.totalorder %s17_s10, %s17_s10 }
   0xb   :  { %p293_p3 = scmp.ne.s32.totalorder %s17_s10, %s292_s20  ;;  %p298_p5 = scmp.lt.s32.totalorder %s292_s20, %s292_s20 }
   0xd   :  { %p299_p6 = por %p298_p5, %p297_p4 }
   0xf   :  { %p300_p7 = pnand %p299_p6, %p293_p3 }
  0x11   :  { %303 = shalt.err (!%p300_p7)
}
  0x12   :  { %19 = dma.hbm_to_vmem [thread:$0]  %s419_s0, 32, %s17_s10, [#allocation3]  }
  0x13   :  { %s304_s25 = scalar_lea.hbm %s420_s1, 1536 }
  0x14   :  { %p305_p8 = scmp.ne.s32.totalorder %s420_s1, %s304_s25  ;;  %p308_p9 = scmp.lt.u32.totalorder %s304_s25, %s420_s1 }
  0x16   :  { %p310_p10 = pnand %p308_p9, %p305_p8 }
  0x18   :  { %313 = shalt.err (!%p310_p10)
}
  0x19   :  { %s314_s30 = scalar_lea.vmem %s376_s12, 1536  ;;  %p319_p12 = scmp.lt.s32.totalorder %s376_s12, %s376_s12 }
  0x1a   :  { %p315_p11 = scmp.ne.s32.totalorder %s376_s12, %s314_s30  ;;  %p320_p13 = scmp.lt.s32.totalorder %s314_s30, %s314_s30 }
  0x1c   :  { %p321_p0 = por %p320_p13, %p319_p12 }
  0x1e   :  { %p322_p1 = pnand %p321_p0, %p315_p11 }
  0x20   :  { %325 = shalt.err (!%p322_p1)
}
  0x21   :  { %s356_s0 = smov 256   ;;  %s357_s3 = smov 16  }
  0x22   :  { %31 = dma.hbm_to_vmem [thread:$0]  %s420_s1, 1536, %s376_s12, [#allocation6], %s356_s0, %s356_s0, %s357_s3  }
  0x23   :  { %348 = dma.done.wait [#allocation3], 32  }
  0x24   :  { %349 = vsyncadd [#allocation3], 4294967264 }
  0x25   :  { %350 = dma.done.wait [#allocation6], 1536  }
  0x26   :  { %351 = vsyncadd [#allocation6], 4294965760  ;;  %v358_v0 = vmov 0   ;;  %v264_v1 = vld [vmem:[#allocation5 + $0x4] ss:$16 sps:$4 sm:$0xff]   ;;  %vm112_vm0 = vcmask 392192   ;;  %v211_v16 = vlaneseq }
  0x27   :  { %148 = vmatprep.mubr.bf16.mxu0 %v358_v0  ;;  %189 = vmatprep.mubr.bf16.mxu1 %v358_v0  ;;  %v266_v2 = vld [vmem:[#allocation5 + $0xc] ss:$16 sps:$4 sm:$0xff]   ;;  %v268_v3 = vld [vmem:[#allocation5] ss:$16 sps:$4 sm:$0xff]   ;;  %v269_v4 = vld [vmem:[#allocation5 + $0x8] ss:$16 sps:$4 sm:$0xff]  }
  0x28   :  { %116 = vmatprep.subr.bf16.mxu0 %v264_v1  ;;  %157 = vmatprep.subr.bf16.mxu1 %v266_v2  ;;  %v270_v5 = vld [vmem:[#allocation5 + $0x24] ss:$16 sps:$4 sm:$0xff]   ;;  %v272_v6 = vld [vmem:[#allocation5 + $0x2c] ss:$16 sps:$4 sm:$0xff]   ;;  %v274_v7 = vld [vmem:[#allocation5 + $0x20] ss:$16 sps:$4 sm:$0xff]  }
  0x29   :  { %117 = vmatpush1.bf16.msra.mxu0 %v268_v3  ;;  %158 = vmatpush1.bf16.msra.mxu1 %v269_v4  ;;  %v275_v8 = vld [vmem:[#allocation5 + $0x28] ss:$16 sps:$4 sm:$0xff]   ;;  %v276_v9 = vld [vmem:[#allocation5 + $0x44] ss:$16 sps:$4 sm:$0xff]   ;;  %v278_v10 = vld [vmem:[#allocation5 + $0x4c] ss:$16 sps:$4 sm:$0xff]  }
  0x2a   :  { %118 = vmatprep.subr.bf16.mxu0 %v270_v5  ;;  %159 = vmatprep.subr.bf16.mxu1 %v272_v6  ;;  %v280_v11 = vld [vmem:[#allocation5 + $0x40] ss:$16 sps:$4 sm:$0xff]   ;;  %v281_v12 = vld [vmem:[#allocation5 + $0x48] ss:$16 sps:$4 sm:$0xff]   ;;  %v39_v13 = vld [vmem:[#allocation2] sm:$0x3] }
  0x2b   :  { %v359_v14 = vmov 1983009808   ;;  %v212_v18 = vshrl.u32 %v211_v16, 7  ;;  %s360_s1 = smov [#allocation7]  }
  0x2c   :  { %v209_v15 = vunpack.c.l.s4 %v359_v14  ;;  %s231_s6 = sshll.u32 %s360_s1, 4  ;;  %s232_s6 = int_to_ptr.vmem [resolvable:$true] %s231_s6 }
  0x2d   :  { %119 = vmatpush1.bf16.msra.mxu0 %v274_v7  ;;  %160 = vmatpush1.bf16.msra.mxu1 %v275_v8  ;;  %s326_s7 = scalar_lea.vmem %s232_s6, 128  ;;  %p331_p3 = scmp.lt.s32.totalorder %s232_s6, %s232_s6 }
  0x2e   :  { %120 = vmatprep.subr.bf16.mxu0 %v276_v9  ;;  %161 = vmatprep.subr.bf16.mxu1 %v278_v10  ;;  %v210_v17 = vunpack.c.0.s8 %v209_v15  ;;  %p327_p2 = scmp.ne.s32.totalorder %s232_s6, %s326_s7  ;;  %p332_p4 = scmp.lt.s32.totalorder %s326_s7, %s326_s7 }
  0x30   :  { %v213_v21 = vsub.s32 %v210_v17, %v212_v18  ;;  %p333_p5 = por %p332_p4, %p331_p3 }
  0x31   :  { %121 = vmatpush1.bf16.msra.mxu0 %v280_v11  ;;  %162 = vmatpush1.bf16.msra.mxu1 %v281_v12 }
  0x32   :  { %p334_p6 = pnand %p333_p5, %p327_p2 }
  0x34   :  { %253 = vmatmul.mubr.msk.bf16.vlgmr.msra.gmra.mrb[0].mxu0 %vm112_vm0, %v39_v13  ;;  %254 = vmatmul.mubr.msk.bf16.vlgmr.msra.gmra.mrb[0].mxu1 %vm112_vm0, %v39_v13 }
 0x107   :  { %v150_v19 = vpop.f32.mrb[0].mxu0  ;;  %v191_v20 = vpop.f32.mrb[0].mxu1 }
 0x108   :  { %v152_v22 = vpop.f32.mrb[1].mxu0  ;;  %v193_v23 = vpop.f32.mrb[1].mxu1 }
 0x109   :  { %v255_v24 = vpack.c.bf16 %v152_v22, %v150_v19  ;;  %v256_v25 = vpack.c.bf16 %v193_v23, %v191_v20  ;;  %v154_v26 = vpop.f32.mrb[2].mxu0  ;;  %v195_v27 = vpop.f32.mrb[2].mxu1 }
 0x10a   :  { %v155_v28 = vpop.f32.mrb[3].mxu0  ;;  %v196_v29 = vpop.f32.mrb[3].mxu1 }
 0x10b   :  { %v214_v30 = vrot.slane %v255_v24, %v213_v21  ;;  %v221_v31 = vrot.slane %v256_v25, %v213_v21 }
 0x10d   :  { %v222_v32 = vcombine.low %v214_v30, %v221_v31 }
 0x10f   :  { %224 = vst [vmem:[#allocation7] sm:$0xff] %v222_v32 }
 0x110   :  { %337 = shalt.err (!%p334_p6)
}
 0x111   :  { %s338_s10 = scalar_lea.hbm %s421_s2, 128 }
 0x112   :  { %p339_p7 = scmp.ne.s32.totalorder %s421_s2, %s338_s10  ;;  %p342_p8 = scmp.lt.u32.totalorder %s338_s10, %s421_s2 }
 0x114   :  { %p344_p9 = pnand %p342_p8, %p339_p7 }
 0x116   :  { %347 = shalt.err (!%p344_p9)
}
 0x117   :  { %234 = dma.vmem_to_hbm [thread:$0]  %s232_s6, 128, %s421_s2, [#allocation4]  }
 0x118   :  { %352 = dma.done.wait [#allocation4], 128  }
 0x119   :  { %353 = vsyncadd [#allocation4], 4294967168 }
 0x11a   :  { %238 = vsyncpa [#allocation3], 1 }
 0x11b   :  { %239 = vsyncpa [#allocation6], 1 }
 0x11c   :  { %240 = vsyncpa [#allocation4], 1 }

// kernel: _lambda_.11
= control target key start
LH: loop header
LB: loop body
LE: loop exit
PB: predicated region body
PF: predicated region fallthrough
CT: control target
= control target key end

     0   :  { %10 = vsyncpa [#allocation3], 0  ;;  %s429_s0 = inlined_call_operand.hbm [shape: bf16[1,8,64], index: 0, kind: input, shape index: {}]   ;;  %s430_s1 = inlined_call_operand.hbm [shape: bf16[1,64,128], index: 1, kind: input, shape index: {}]   ;;  %s431_s2 = inlined_call_operand.hbm [shape: bf16[1,8,128], index: 2, kind: output, shape index: {0}]   ;;  %s432_s3 = inlined_call_operand.hbm [shape: f32[1,1,8,1], index: 3, kind: output, shape index: {1}]   ;;  %s433_s4 = inlined_call_operand.hbm [shape: f32[1,1,8,1], index: 4, kind: output, shape index: {2}]  }
   0x1   :  { %11 = vsyncpa [#allocation6], 0 }
   0x2   :  { %12 = vsyncpa [#allocation4], 0 }
   0x3   :  { %13 = vsyncpa [#allocation9], 0  ;;  %s326_s15 = smov [#allocation2]   ;;  %s327_s17 = smov [#allocation5]  }
   0x4   :  { %s20_s16 = sshll.u32 %s326_s15, 4  ;;  %s29_s18 = sshll.u32 %s327_s17, 4  ;;  %s21_s16 = int_to_ptr.vmem [resolvable:$true] %s20_s16  ;;  %s360_s18 = int_to_ptr.vmem [resolvable:$true] %s29_s18 }
   0x5   :  { %s208_s21 = scalar_lea.hbm %s429_s0, 64 }
   0x6   :  { %p209_p0 = scmp.ne.s32.totalorder %s429_s0, %s208_s21  ;;  %p212_p1 = scmp.lt.u32.totalorder %s208_s21, %s429_s0 }
   0x8   :  { %p214_p2 = pnand %p212_p1, %p209_p0 }
   0xa   :  { %217 = shalt.err (!%p214_p2)
}
   0xb   :  { %s218_s26 = scalar_lea.vmem %s21_s16, 64  ;;  %p223_p4 = scmp.lt.s32.totalorder %s21_s16, %s21_s16 }
   0xc   :  { %p219_p3 = scmp.ne.s32.totalorder %s21_s16, %s218_s26  ;;  %p224_p5 = scmp.lt.s32.totalorder %s218_s26, %s218_s26 }
   0xe   :  { %p225_p6 = por %p224_p5, %p223_p4 }
  0x10   :  { %p226_p7 = pnand %p225_p6, %p219_p3 }
  0x12   :  { %229 = shalt.err (!%p226_p7)
}
  0x13   :  { %23 = dma.hbm_to_vmem [thread:$0]  %s429_s0, 64, %s21_s16, [#allocation3]  }
  0x14   :  { %s230_s5 = scalar_lea.hbm %s430_s1, 512 }
  0x15   :  { %p231_p8 = scmp.ne.s32.totalorder %s430_s1, %s230_s5  ;;  %p234_p9 = scmp.lt.u32.totalorder %s230_s5, %s430_s1 }
  0x17   :  { %p236_p10 = pnand %p234_p9, %p231_p8 }
  0x19   :  { %239 = shalt.err (!%p236_p10)
}
  0x1a   :  { %s240_s10 = scalar_lea.vmem %s360_s18, 512  ;;  %p245_p12 = scmp.lt.s32.totalorder %s360_s18, %s360_s18 }
  0x1b   :  { %p241_p11 = scmp.ne.s32.totalorder %s360_s18, %s240_s10  ;;  %p246_p13 = scmp.lt.s32.totalorder %s240_s10, %s240_s10 }
  0x1d   :  { %p247_p0 = por %p246_p13, %p245_p12 }
  0x1f   :  { %p248_p1 = pnand %p247_p0, %p241_p11 }
  0x21   :  { %251 = shalt.err (!%p248_p1)
}
  0x22   :  { %s328_s0 = smov 64   ;;  %s329_s11 = smov 4  }
  0x23   :  { %35 = dma.hbm_to_vmem [thread:$0]  %s430_s1, 512, %s360_s18, [#allocation6], %s328_s0, %s328_s0, %s329_s11  }
  0x24   :  { %318 = dma.done.wait [#allocation3], 64  }
  0x25   :  { %319 = vsyncadd [#allocation3], 4294967232 }
  0x26   :  { %320 = dma.done.wait [#allocation6], 512  }
  0x27   :  { %321 = vsyncadd [#allocation6], 4294966784  ;;  %v330_v0 = vmov 0.0   ;;  %vm331_vm0 = vmmov 0   ;;  %v204_v1 = vld [vmem:[#allocation5] sm:$0xff]   ;;  %v205_v2 = vld [vmem:[#allocation5 + $0x8] sm:$0xff]  }
  0x28   :  { %183 = vmatprep.subr.bf16.mxu0 %v330_v0  ;;  %191 = vmatprep.mubr.msk.bf16.mxu0 %vm331_vm0, %v330_v0  ;;  %v206_v3 = vld [vmem:[#allocation5 + $0x10] sm:$0xff]   ;;  %v207_v4 = vld [vmem:[#allocation5 + $0x18] sm:$0xff]   ;;  %vm76_vm1 = vcmask 523264   ;;  %s332_s1 = smov [#allocation7]  }
  0x29   :  { %184 = vmatpush3.bf16.msra.mxu0 %v204_v1  ;;  %v43_v5 = vld [vmem:[#allocation2] sm:$0xf]  ;;  %s136_s14 = sshll.u32 %s332_s1, 4  ;;  %s137_s14 = int_to_ptr.vmem [resolvable:$true] %s136_s14 }
  0x2a   :  { %185 = vmatprep.subr.bf16.mxu0 %v330_v0  ;;  %s252_s15 = scalar_lea.vmem %s137_s14, 64  ;;  %p257_p3 = scmp.lt.s32.totalorder %s137_s14, %s137_s14 }
  0x2b   :  { %p253_p2 = scmp.ne.s32.totalorder %s137_s14, %s252_s15  ;;  %p258_p4 = scmp.lt.s32.totalorder %s252_s15, %s252_s15 }
  0x2d   :  { %186 = vmatpush3.bf16.msra.mxu0 %v205_v2  ;;  %p259_p5 = por %p258_p4, %p257_p3 }
  0x2e   :  { %187 = vmatprep.subr.bf16.mxu0 %v330_v0 }
  0x2f   :  { %p260_p6 = pnand %p259_p5, %p253_p2 }
  0x31   :  { %188 = vmatpush3.bf16.msra.mxu0 %v206_v3 }
  0x32   :  { %189 = vmatprep.subr.bf16.mxu0 %v330_v0 }
  0x35   :  { %190 = vmatpush3.bf16.msra.mxu0 %v207_v4 }
  0x38   :  { %192 = vmatmul.mubr.msk.bf16.vlgmr.msra.gmra.mrb[0].mxu0 %vm76_vm1, %v43_v5 }
 0x10b   :  { %v114_v6 = vpop.f32.mrb[0].mxu0 }
 0x10c   :  { %v128_v7 = vpack.c.bf16 %v114_v6, %v114_v6  ;;  %120 = vadd.xlane.f32.xlu0 %v114_v6  ;;  %v193_v8 = vpop.f32.mrb[1].mxu0  ;;  %v124_v11 = vmul.f32 %v114_v6, %v114_v6 }
 0x10d   :  { %v117_v9 = vpop.f32.mrb[2].mxu0 }
 0x10e   :  { %129 = vst [vmem:[#allocation7] sm:$0xf] %v128_v7  ;;  %v194_v10 = vpop.f32.mrb[3].mxu0 }
 0x110   :  { %125 = vadd.xlane.f32.xlu0 %v124_v11 }
 0x111   :  { %263 = shalt.err (!%p260_p6)
}
 0x112   :  { %s264_s18 = scalar_lea.hbm %s431_s2, 64 }
 0x113   :  { %p265_p7 = scmp.ne.s32.totalorder %s431_s2, %s264_s18  ;;  %p268_p8 = scmp.lt.u32.totalorder %s264_s18, %s431_s2 }
 0x115   :  { %p270_p9 = pnand %p268_p8, %p265_p7 }
 0x117   :  { %273 = shalt.err (!%p270_p9)
}
 0x118   :  { %139 = dma.vmem_to_hbm [thread:$0]  %s137_s14, 64, %s431_s2, [#allocation4]   ;;  %vm122_vm2 = vcmask 7168  }
 0x119   :  { %s333_s25 = smov [#allocation8]   ;;  %s334_s27 = smov [#allocation10]  }
 0x11a   :  { %s146_s26 = sshll.u32 %s333_s25, 4  ;;  %s156_s28 = sshll.u32 %s334_s27, 4  ;;  %s147_s26 = int_to_ptr.vmem [resolvable:$true] %s146_s26  ;;  %s157_s28 = int_to_ptr.vmem [resolvable:$true] %s156_s28 }
 0x11b   :  { %s274_s29 = scalar_lea.vmem %s147_s26, 128  ;;  %p279_p11 = scmp.lt.s32.totalorder %s147_s26, %s147_s26 }
 0x11c   :  { %p275_p10 = scmp.ne.s32.totalorder %s147_s26, %s274_s29  ;;  %p280_p12 = scmp.lt.s32.totalorder %s274_s29, %s274_s29 }
 0x11e   :  { %p281_p13 = por %p280_p12, %p279_p11 }
 0x120   :  { %p282_p0 = pnand %p281_p13, %p275_p10 }
 0x199   :  { %v121_v12 = vpop.xlane.xlu0 %120 }
 0x19a   :  { %123 = vst.msk [vmem:[#allocation8] sm:$0xff] %vm122_vm2, %v121_v12 }
 0x19b   :  { %285 = shalt.err (!%p282_p0)
}
 0x19c   :  { %s286_s2 = scalar_lea.hbm %s432_s3, 128 }
 0x19d   :  { %p287_p1 = scmp.ne.s32.totalorder %s432_s3, %s286_s2  ;;  %p290_p2 = scmp.lt.u32.totalorder %s286_s2, %s432_s3 }
 0x19f   :  { %p292_p3 = pnand %p290_p2, %p287_p1 }
 0x1a1   :  { %295 = shalt.err (!%p292_p3)
}
 0x1a2   :  { %149 = dma.vmem_to_hbm [thread:$0]  %s147_s26, 128, %s432_s3, [#allocation9]   ;;  %v126_v13 = vpop.xlane.xlu0 %125 }
 0x1a3   :  { %127 = vst.msk [vmem:[#allocation10] sm:$0xff] %vm122_vm2, %v126_v13  ;;  %s296_s11 = scalar_lea.vmem %s157_s28, 128  ;;  %p301_p5 = scmp.lt.s32.totalorder %s157_s28, %s157_s28 }
 0x1a4   :  { %p297_p4 = scmp.ne.s32.totalorder %s157_s28, %s296_s11  ;;  %p302_p6 = scmp.lt.s32.totalorder %s296_s11, %s296_s11 }
 0x1a6   :  { %p303_p7 = por %p302_p6, %p301_p5 }
 0x1a8   :  { %p304_p8 = pnand %p303_p7, %p297_p4 }
 0x1aa   :  { %307 = shalt.err (!%p304_p8)
}
 0x1ab   :  { %s308_s1 = scalar_lea.hbm %s433_s4, 128 }
 0x1ac   :  { %p309_p9 = scmp.ne.s32.totalorder %s433_s4, %s308_s1  ;;  %p312_p10 = scmp.lt.u32.totalorder %s308_s1, %s433_s4 }
 0x1ae   :  { %p314_p11 = pnand %p312_p10, %p309_p9 }
 0x1b0   :  { %317 = shalt.err (!%p314_p11)
}
 0x1b1   :  { %159 = dma.vmem_to_hbm [thread:$0]  %s157_s28, 128, %s433_s4, [#allocation9]  }
 0x1b2   :  { %322 = dma.done.wait [#allocation4], 64  }
 0x1b3   :  { %323 = vsyncadd [#allocation4], 4294967232 }
 0x1b4   :  { %324 = dma.done.wait [#allocation9], 256  }
 0x1b5   :  { %325 = vsyncadd [#allocation9], 4294967040 }
 0x1b6   :  { %169 = vsyncpa [#allocation3], 1 }
 0x1b7   :  { %170 = vsyncpa [#allocation6], 1 }
 0x1b8   :  { %171 = vsyncpa [#allocation4], 1 }
 0x1b9   :  { %172 = vsyncpa [#allocation9], 1 }

// kernel: _lambda_.12
= control target key start
LH: loop header
LB: loop body
LE: loop exit
PB: predicated region body
PF: predicated region fallthrough
CT: control target
= control target key end

     0   :  { %10 = vsyncpa [#allocation3], 0  ;;  %s533_s0 = inlined_call_operand.hbm [shape: bf16[1,16,128], index: 0, kind: input, shape index: {}]   ;;  %s534_s1 = inlined_call_operand.hbm [shape: bf16[1,128,128], index: 1, kind: input, shape index: {}]   ;;  %s535_s2 = inlined_call_operand.hbm [shape: bf16[1,16,128], index: 2, kind: output, shape index: {0}]   ;;  %s536_s3 = inlined_call_operand.hbm [shape: f32[1,1,16,1], index: 3, kind: output, shape index: {1}]   ;;  %s537_s4 = inlined_call_operand.hbm [shape: f32[1,1,16,1], index: 4, kind: output, shape index: {2}]  }
   0x1   :  { %11 = vsyncpa [#allocation6], 0 }
   0x2   :  { %12 = vsyncpa [#allocation4], 0 }
   0x3   :  { %13 = vsyncpa [#allocation9], 0  ;;  %s417_s15 = smov [#allocation2]   ;;  %s299_s19 = scalar_lea.hbm %s533_s0, 128 }
   0x4   :  { %s19_s16 = sshll.u32 %s417_s15, 4  ;;  %p300_p0 = scmp.ne.s32.totalorder %s533_s0, %s299_s19  ;;  %s20_s16 = int_to_ptr.vmem [resolvable:$true] %s19_s16 }
   0x5   :  { %p303_p1 = scmp.lt.u32.totalorder %s299_s19, %s533_s0 }
   0x7   :  { %p305_p2 = pnand %p303_p1, %p300_p0 }
   0x9   :  { %308 = shalt.err (!%p305_p2)
}
   0xa   :  { %s309_s24 = scalar_lea.vmem %s20_s16, 128  ;;  %p314_p4 = scmp.lt.s32.totalorder %s20_s16, %s20_s16 }
   0xb   :  { %p310_p3 = scmp.ne.s32.totalorder %s20_s16, %s309_s24  ;;  %p315_p5 = scmp.lt.s32.totalorder %s309_s24, %s309_s24 }
   0xd   :  { %p316_p6 = por %p315_p5, %p314_p4 }
   0xf   :  { %p317_p7 = pnand %p316_p6, %p310_p3 }
  0x11   :  { %320 = shalt.err (!%p317_p7)
}
  0x12   :  { %s418_s25 = smov 64   ;;  %s419_s26 = smov 4  }
  0x13   :  { %25 = dma.hbm_to_vmem [thread:$0]  %s533_s0, 128, %s20_s16, [#allocation3], %s418_s25, %s418_s25, %s419_s26  }
  0x14   :  { %s420_s29 = smov [#allocation5]   ;;  %s321_s7 = scalar_lea.hbm %s534_s1, 1024 }
  0x15   :  { %s31_s30 = sshll.u32 %s420_s29, 4  ;;  %p322_p8 = scmp.ne.s32.totalorder %s534_s1, %s321_s7  ;;  %s32_s30 = int_to_ptr.vmem [resolvable:$true] %s31_s30 }
  0x16   :  { %p325_p9 = scmp.lt.u32.totalorder %s321_s7, %s534_s1 }
  0x18   :  { %p327_p10 = pnand %p325_p9, %p322_p8 }
  0x1a   :  { %330 = shalt.err (!%p327_p10)
}
  0x1b   :  { %s331_s12 = scalar_lea.vmem %s32_s30, 1024  ;;  %p336_p12 = scmp.lt.s32.totalorder %s32_s30, %s32_s30 }
  0x1c   :  { %p332_p11 = scmp.ne.s32.totalorder %s32_s30, %s331_s12  ;;  %p337_p13 = scmp.lt.s32.totalorder %s331_s12, %s331_s12 }
  0x1e   :  { %p338_p0 = por %p337_p13, %p336_p12 }
  0x20   :  { %p339_p1 = pnand %p338_p0, %p332_p11 }
  0x22   :  { %342 = shalt.err (!%p339_p1)
}
  0x23   :  { %37 = dma.hbm_to_vmem [thread:$0]  %s534_s1, 1024, %s32_s30, [#allocation6], %s418_s25, %s418_s25, %s419_s26  }
  0x24   :  { %409 = dma.done.wait [#allocation3], 128  }
  0x25   :  { %410 = vsyncadd [#allocation3], 4294967168 }
  0x26   :  { %411 = dma.done.wait [#allocation6], 1024  }
  0x27   :  { %412 = vsyncadd [#allocation6], 4294966272  ;;  %v421_v0 = vmov 0.0   ;;  %vm422_vm0 = vmmov 0   ;;  %v290_v1 = vld [vmem:[#allocation5] sm:$0xff]   ;;  %v291_v2 = vld [vmem:[#allocation5 + $0x8] sm:$0xff]  }
  0x28   :  { %259 = vmatprep.subr.bf16.mxu0 %v421_v0  ;;  %275 = vmatprep.mubr.msk.bf16.mxu0 %vm422_vm0, %v421_v0  ;;  %v292_v3 = vld [vmem:[#allocation5 + $0x10] sm:$0xff]   ;;  %v293_v4 = vld [vmem:[#allocation5 + $0x18] sm:$0xff]   ;;  %v294_v5 = vld [vmem:[#allocation5 + $0x20] sm:$0xff]   ;;  %s423_s1 = smov [#allocation7]  }
  0x29   :  { %260 = vmatpush3.bf16.msra.mxu0 %v290_v1  ;;  %v295_v6 = vld [vmem:[#allocation5 + $0x28] sm:$0xff]   ;;  %v296_v7 = vld [vmem:[#allocation5 + $0x30] sm:$0xff]   ;;  %v297_v8 = vld [vmem:[#allocation5 + $0x38] sm:$0xff]   ;;  %s188_s14 = sshll.u32 %s423_s1, 4  ;;  %s189_s14 = int_to_ptr.vmem [resolvable:$true] %s188_s14 }
  0x2a   :  { %261 = vmatprep.subr.bf16.mxu0 %v421_v0  ;;  %v298_v9 = vld [vmem:[#allocation2] sm:$0xff]   ;;  %s343_s15 = scalar_lea.vmem %s189_s14, 128  ;;  %p348_p3 = scmp.lt.s32.totalorder %s189_s14, %s189_s14 }
  0x2b   :  { %p344_p2 = scmp.ne.s32.totalorder %s189_s14, %s343_s15  ;;  %p349_p4 = scmp.lt.s32.totalorder %s343_s15, %s343_s15 }
  0x2d   :  { %262 = vmatpush3.bf16.msra.mxu0 %v291_v2  ;;  %p350_p5 = por %p349_p4, %p348_p3 }
  0x2e   :  { %263 = vmatprep.subr.bf16.mxu0 %v421_v0 }
  0x2f   :  { %p351_p6 = pnand %p350_p5, %p344_p2 }
  0x31   :  { %264 = vmatpush3.bf16.msra.mxu0 %v292_v3 }
  0x32   :  { %265 = vmatprep.subr.bf16.mxu0 %v421_v0 }
  0x35   :  { %266 = vmatpush3.bf16.msra.mxu0 %v293_v4 }
  0x36   :  { %267 = vmatprep.subr.bf16.mxu0 %v421_v0 }
  0x39   :  { %268 = vmatpush3.bf16.msra.mxu0 %v294_v5 }
  0x3a   :  { %269 = vmatprep.subr.bf16.mxu0 %v421_v0 }
  0x3d   :  { %270 = vmatpush3.bf16.msra.mxu0 %v295_v6 }
  0x3e   :  { %271 = vmatprep.subr.bf16.mxu0 %v421_v0 }
  0x41   :  { %272 = vmatpush3.bf16.msra.mxu0 %v296_v7 }
  0x42   :  { %273 = vmatprep.subr.bf16.mxu0 %v421_v0 }
  0x45   :  { %274 = vmatpush3.bf16.msra.mxu0 %v297_v8 }
  0x48   :  { %276 = vmatmul.mubr.bf16.vlgmr.msra.gmra.mrb[0].mxu0 %v298_v9 }
 0x11b   :  { %v151_v10 = vpop.f32.mrb[0].mxu0 }
 0x11c   :  { %158 = vadd.xlane.f32.xlu0 %v151_v10  ;;  %v277_v11 = vpop.f32.mrb[1].mxu0  ;;  %v165_v12 = vmul.f32 %v151_v10, %v151_v10 }
 0x11d   :  { %v154_v13 = vpop.f32.mrb[2].mxu0 }
 0x11e   :  { %v248_v14 = vpack.c.bf16 %v154_v13, %v151_v10  ;;  %167 = vadd.xlane.f32.xlu1 %v165_v12  ;;  %v278_v15 = vpop.f32.mrb[3].mxu0  ;;  %v166_v16 = vmul.f32 %v154_v13, %v154_v13 }
 0x120   :  { %249 = vst [vmem:[#allocation7] sm:$0xff] %v248_v14   ;;  %160 = vadd.xlane.f32.xlu0 %v154_v13 }
 0x122   :  { %169 = vadd.xlane.f32.xlu1 %v166_v16 }
 0x123   :  { %354 = shalt.err (!%p351_p6)
}
 0x124   :  { %s355_s18 = scalar_lea.hbm %s535_s2, 128 }
 0x125   :  { %p356_p7 = scmp.ne.s32.totalorder %s535_s2, %s355_s18  ;;  %p359_p8 = scmp.lt.u32.totalorder %s355_s18, %s535_s2 }
 0x127   :  { %p361_p9 = pnand %p359_p8, %p356_p7 }
 0x129   :  { %364 = shalt.err (!%p361_p9)
}
 0x12a   :  { %194 = dma.vmem_to_hbm [thread:$0]  %s189_s14, 128, %s535_s2, [#allocation4], %s418_s25, %s418_s25, %s419_s26   ;;  %vm162_vm1 = vcmask 7168  }
 0x12b   :  { %s424_s27 = smov [#allocation8]   ;;  %s425_s29 = smov [#allocation10]  }
 0x12c   :  { %s200_s28 = sshll.u32 %s424_s27, 4  ;;  %s212_s30 = sshll.u32 %s425_s29, 4  ;;  %s201_s28 = int_to_ptr.vmem [resolvable:$true] %s200_s28  ;;  %s501_s30 = int_to_ptr.vmem [resolvable:$true] %s212_s30 }
 0x12d   :  { %s365_s5 = scalar_lea.vmem %s201_s28, 256  ;;  %p370_p11 = scmp.lt.s32.totalorder %s201_s28, %s201_s28 }
 0x12e   :  { %p366_p10 = scmp.ne.s32.totalorder %s201_s28, %s365_s5  ;;  %p371_p12 = scmp.lt.s32.totalorder %s365_s5, %s365_s5 }
 0x130   :  { %p372_p13 = por %p371_p12, %p370_p11 }
 0x132   :  { %p373_p0 = pnand %p372_p13, %p366_p10 }
 0x1a9   :  { %v159_v17 = vpop.xlane.xlu0 %158 }
 0x1aa   :  { %163 = vst.msk [vmem:[#allocation8] sm:$0xff] %vm162_vm1, %v159_v17 }
 0x1ab   :  { %v168_v18 = vpop.xlane.xlu1 %167 }
 0x1ac   :  { %171 = vst.msk [vmem:[#allocation10] sm:$0xff] %vm162_vm1, %v168_v18 }
 0x1ad   :  { %v161_v19 = vpop.xlane.xlu0 %160 }
 0x1ae   :  { %164 = vst.msk [vmem:[#allocation8 + $0x8] sm:$0xff] %vm162_vm1, %v161_v19 }
 0x1af   :  { %v170_v20 = vpop.xlane.xlu1 %169 }
 0x1b0   :  { %376 = shalt.err (!%p373_p0)
}
 0x1b1   :  { %s377_s26 = scalar_lea.hbm %s536_s3, 256 }
 0x1b2   :  { %p378_p1 = scmp.ne.s32.totalorder %s536_s3, %s377_s26  ;;  %p381_p2 = scmp.lt.u32.totalorder %s377_s26, %s536_s3 }
 0x1b4   :  { %p383_p3 = pnand %p381_p2, %p378_p1 }
 0x1b6   :  { %386 = shalt.err (!%p383_p3)
}
 0x1b7   :  { %s426_s10 = smov 128   ;;  %s427_s11 = smov 8   ;;  %172 = vst.msk [vmem:[#allocation10 + $0x8] sm:$0xff] %vm162_vm1, %v170_v20 }
 0x1b8   :  { %206 = dma.vmem_to_hbm [thread:$0]  %s201_s28, 256, %s536_s3, [#allocation9], %s426_s10, %s426_s10, %s427_s11  }
 0x1b9   :  { %s387_s13 = scalar_lea.vmem %s501_s30, 256  ;;  %p392_p5 = scmp.lt.s32.totalorder %s501_s30, %s501_s30 }
 0x1ba   :  { %p388_p4 = scmp.ne.s32.totalorder %s501_s30, %s387_s13  ;;  %p393_p6 = scmp.lt.s32.totalorder %s387_s13, %s387_s13 }
 0x1bc   :  { %p394_p7 = por %p393_p6, %p392_p5 }
 0x1be   :  { %p395_p8 = pnand %p394_p7, %p388_p4 }
 0x1c0   :  { %398 = shalt.err (!%p395_p8)
}
 0x1c1   :  { %s399_s15 = scalar_lea.hbm %s537_s4, 256 }
 0x1c2   :  { %p400_p9 = scmp.ne.s32.totalorder %s537_s4, %s399_s15  ;;  %p403_p10 = scmp.lt.u32.totalorder %s399_s15, %s537_s4 }
 0x1c4   :  { %p405_p11 = pnand %p403_p10, %p400_p9 }
 0x1c6   :  { %408 = shalt.err (!%p405_p11)
}
 0x1c7   :  { %218 = dma.vmem_to_hbm [thread:$0]  %s501_s30, 256, %s537_s4, [#allocation9], %s426_s10, %s426_s10, %s427_s11  }
 0x1c8   :  { %413 = dma.done.wait [#allocation4], 128  }
 0x1c9   :  { %414 = vsyncadd [#allocation4], 4294967168 }
 0x1ca   :  { %415 = dma.done.wait [#allocation9], 512  }
 0x1cb   :  { %416 = vsyncadd [#allocation9], 4294966784 }
 0x1cc   :  { %228 = vsyncpa [#allocation3], 1 }
 0x1cd   :  { %229 = vsyncpa [#allocation6], 1 }
 0x1ce   :  { %230 = vsyncpa [#allocation4], 1 }
 0x1cf   :  { %231 = vsyncpa [#allocation9], 1 }

// kernel: _lambda_.13
= control target key start
LH: loop header
LB: loop body
LE: loop exit
PB: predicated region body
PF: predicated region fallthrough
CT: control target
= control target key end

     0   :  { %10 = vsyncpa [#allocation3], 0  ;;  %s693_s0 = inlined_call_operand.hbm [shape: bf16[1,32,256], index: 0, kind: input, shape index: {}]   ;;  %s694_s1 = inlined_call_operand.hbm [shape: bf16[1,256,128], index: 1, kind: input, shape index: {}]   ;;  %s695_s2 = inlined_call_operand.hbm [shape: bf16[1,32,128], index: 2, kind: output, shape index: {0}]   ;;  %s696_s3 = inlined_call_operand.hbm [shape: f32[1,1,32,1], index: 3, kind: output, shape index: {1}]   ;;  %s697_s4 = inlined_call_operand.hbm [shape: f32[1,1,32,1], index: 4, kind: output, shape index: {2}]  }
   0x1   :  { %11 = vsyncpa [#allocation6], 0 }
   0x2   :  { %12 = vsyncpa [#allocation4], 0 }
   0x3   :  { %13 = vsyncpa [#allocation9], 0  ;;  %s576_s15 = smov [#allocation2]   ;;  %s458_s19 = scalar_lea.hbm %s693_s0, 512 }
   0x4   :  { %s19_s16 = sshll.u32 %s576_s15, 4  ;;  %p459_p0 = scmp.ne.s32.totalorder %s693_s0, %s458_s19  ;;  %s20_s16 = int_to_ptr.vmem [resolvable:$true] %s19_s16 }
   0x5   :  { %p462_p1 = scmp.lt.u32.totalorder %s458_s19, %s693_s0 }
   0x7   :  { %p464_p2 = pnand %p462_p1, %p459_p0 }
   0x9   :  { %467 = shalt.err (!%p464_p2)
}
   0xa   :  { %s468_s24 = scalar_lea.vmem %s20_s16, 512  ;;  %p473_p4 = scmp.lt.s32.totalorder %s20_s16, %s20_s16 }
   0xb   :  { %p469_p3 = scmp.ne.s32.totalorder %s20_s16, %s468_s24  ;;  %p474_p5 = scmp.lt.s32.totalorder %s468_s24, %s468_s24 }
   0xd   :  { %p475_p6 = por %p474_p5, %p473_p4 }
   0xf   :  { %p476_p7 = pnand %p475_p6, %p469_p3 }
  0x11   :  { %479 = shalt.err (!%p476_p7)
}
  0x12   :  { %s577_s25 = smov 128   ;;  %s578_s26 = smov 8  }
  0x13   :  { %25 = dma.hbm_to_vmem [thread:$0]  %s693_s0, 512, %s20_s16, [#allocation3], %s577_s25, %s577_s25, %s578_s26  }
  0x14   :  { %s579_s29 = smov [#allocation5]   ;;  %s480_s7 = scalar_lea.hbm %s694_s1, 2048 }
  0x15   :  { %s31_s30 = sshll.u32 %s579_s29, 4  ;;  %p481_p8 = scmp.ne.s32.totalorder %s694_s1, %s480_s7  ;;  %s32_s30 = int_to_ptr.vmem [resolvable:$true] %s31_s30 }
  0x16   :  { %p484_p9 = scmp.lt.u32.totalorder %s480_s7, %s694_s1 }
  0x18   :  { %p486_p10 = pnand %p484_p9, %p481_p8 }
  0x1a   :  { %489 = shalt.err (!%p486_p10)
}
  0x1b   :  { %s490_s12 = scalar_lea.vmem %s32_s30, 2048  ;;  %p495_p12 = scmp.lt.s32.totalorder %s32_s30, %s32_s30 }
  0x1c   :  { %p491_p11 = scmp.ne.s32.totalorder %s32_s30, %s490_s12  ;;  %p496_p13 = scmp.lt.s32.totalorder %s490_s12, %s490_s12 }
  0x1e   :  { %p497_p0 = por %p496_p13, %p495_p12 }
  0x20   :  { %p498_p1 = pnand %p497_p0, %p491_p11 }
  0x22   :  { %501 = shalt.err (!%p498_p1)
}
  0x23   :  { %s580_s0 = smov 64   ;;  %s581_s13 = smov 4  }
  0x24   :  { %37 = dma.hbm_to_vmem [thread:$0]  %s694_s1, 2048, %s32_s30, [#allocation6], %s580_s0, %s580_s0, %s581_s13  }
  0x25   :  { %568 = dma.done.wait [#allocation3], 512  }
  0x26   :  { %569 = vsyncadd [#allocation3], 4294966784 }
  0x27   :  { %570 = dma.done.wait [#allocation6], 2048  }
  0x28   :  { %571 = vsyncadd [#allocation6], 4294965248  ;;  %v436_v0 = vld [vmem:[#allocation5 + $0x40] sm:$0xff]   ;;  %v438_v2 = vld [vmem:[#allocation5 + $0x48] sm:$0xff]   ;;  %s582_s1 = smov [#allocation7]  }
  0x29   :  { %v437_v1 = vld [vmem:[#allocation5] sm:$0xff]   ;;  %383 = vmatprep.subr.bf16.mxu0 %v436_v0  ;;  %411 = vmatprep.subr.bf16.mxu1 %v436_v0  ;;  %v439_v3 = vld [vmem:[#allocation5 + $0x8] sm:$0xff]   ;;  %v440_v4 = vld [vmem:[#allocation5 + $0x50] sm:$0xff]   ;;  %s300_s16 = sshll.u32 %s582_s1, 4  ;;  %s301_s16 = int_to_ptr.vmem [resolvable:$true] %s300_s16 }
  0x2a   :  { %384 = vmatpush3.bf16.msra.mxu0 %v437_v1  ;;  %419 = vmatpush3.bf16.msra.mxu1 %v437_v1  ;;  %v441_v5 = vld [vmem:[#allocation5 + $0x10] sm:$0xff]   ;;  %v442_v6 = vld [vmem:[#allocation5 + $0x58] sm:$0xff]   ;;  %v444_v8 = vld [vmem:[#allocation5 + $0x60] sm:$0xff]   ;;  %s502_s17 = scalar_lea.vmem %s301_s16, 256  ;;  %p507_p3 = scmp.lt.s32.totalorder %s301_s16, %s301_s16 }
  0x2b   :  { %385 = vmatprep.subr.bf16.mxu0 %v438_v2  ;;  %412 = vmatprep.subr.bf16.mxu1 %v438_v2  ;;  %v443_v7 = vld [vmem:[#allocation5 + $0x18] sm:$0xff]   ;;  %v445_v9 = vld [vmem:[#allocation5 + $0x20] sm:$0xff]   ;;  %v446_v10 = vld [vmem:[#allocation5 + $0x68] sm:$0xff]   ;;  %p503_p2 = scmp.ne.s32.totalorder %s301_s16, %s502_s17  ;;  %p508_p4 = scmp.lt.s32.totalorder %s502_s17, %s502_s17 }
  0x2c   :  { %v454_v11 = vld [vmem:[#allocation2 + $0x4] ss:$8 sps:$4 sm:$0xff]   ;;  %v457_v12 = vld [vmem:[#allocation2 + $0x14] ss:$8 sps:$4 sm:$0xff]   ;;  %v452_v18 = vld [vmem:[#allocation2] ss:$8 sps:$4 sm:$0xff]  }
  0x2d   :  { %v447_v13 = vld [vmem:[#allocation5 + $0x28] sm:$0xff]   ;;  %v448_v14 = vld [vmem:[#allocation5 + $0x70] sm:$0xff]   ;;  %229 = vmatprep.mubr.bf16.mxu0 %v454_v11  ;;  %237 = vmatprep.mubr.bf16.mxu1 %v457_v12  ;;  %v450_v16 = vld [vmem:[#allocation5 + $0x78] sm:$0xff]   ;;  %p509_p5 = por %p508_p4, %p507_p3 }
  0x2e   :  { %386 = vmatpush3.bf16.msra.mxu0 %v439_v3  ;;  %420 = vmatpush3.bf16.msra.mxu1 %v439_v3  ;;  %v449_v15 = vld [vmem:[#allocation5 + $0x30] sm:$0xff]   ;;  %v451_v17 = vld [vmem:[#allocation5 + $0x38] sm:$0xff]  }
  0x2f   :  { %387 = vmatprep.subr.bf16.mxu0 %v440_v4  ;;  %413 = vmatprep.subr.bf16.mxu1 %v440_v4  ;;  %v455_v19 = vld [vmem:[#allocation2 + $0x10] ss:$8 sps:$4 sm:$0xff]   ;;  %p510_p6 = pnand %p509_p5, %p503_p2 }
  0x32   :  { %388 = vmatpush3.bf16.msra.mxu0 %v441_v5  ;;  %421 = vmatpush3.bf16.msra.mxu1 %v441_v5 }
  0x33   :  { %389 = vmatprep.subr.bf16.mxu0 %v442_v6  ;;  %414 = vmatprep.subr.bf16.mxu1 %v442_v6 }
  0x36   :  { %390 = vmatpush3.bf16.msra.mxu0 %v443_v7  ;;  %422 = vmatpush3.bf16.msra.mxu1 %v443_v7 }
  0x37   :  { %391 = vmatprep.subr.bf16.mxu0 %v444_v8  ;;  %415 = vmatprep.subr.bf16.mxu1 %v444_v8 }
  0x3a   :  { %392 = vmatpush3.bf16.msra.mxu0 %v445_v9  ;;  %423 = vmatpush3.bf16.msra.mxu1 %v445_v9 }
  0x3b   :  { %393 = vmatprep.subr.bf16.mxu0 %v446_v10  ;;  %416 = vmatprep.subr.bf16.mxu1 %v446_v10 }
  0x3e   :  { %394 = vmatpush3.bf16.msra.mxu0 %v447_v13  ;;  %424 = vmatpush3.bf16.msra.mxu1 %v447_v13 }
  0x3f   :  { %395 = vmatprep.subr.bf16.mxu0 %v448_v14  ;;  %417 = vmatprep.subr.bf16.mxu1 %v448_v14 }
  0x42   :  { %396 = vmatpush3.bf16.msra.mxu0 %v449_v15  ;;  %425 = vmatpush3.bf16.msra.mxu1 %v449_v15 }
  0x43   :  { %397 = vmatprep.subr.bf16.mxu0 %v450_v16  ;;  %418 = vmatprep.subr.bf16.mxu1 %v450_v16 }
  0x46   :  { %398 = vmatpush3.bf16.msra.mxu0 %v451_v17  ;;  %426 = vmatpush3.bf16.msra.mxu1 %v451_v17 }
  0x49   :  { %230 = vmatmul.mubr.bf16.vlgmr.msra.gmra.mrb[0].mxu0 %v452_v18  ;;  %238 = vmatmul.mubr.bf16.vlgmr.msra.gmra.mrb[0].mxu1 %v455_v19 }
 0x11c   :  { %v399_v20 = vpop.f32.mrb[0].mxu0  ;;  %v405_v21 = vpop.f32.mrb[0].mxu1 }
 0x11d   :  { %v400_v22 = vpop.f32.mrb[1].mxu0  ;;  %v406_v23 = vpop.f32.mrb[1].mxu1 }
 0x11e   :  { %v401_v24 = vadd.f32 %v400_v22, %v399_v20  ;;  %v407_v25 = vadd.f32 %v406_v23, %v405_v21  ;;  %v402_v26 = vpop.f32.mrb[2].mxu0  ;;  %v408_v27 = vpop.f32.mrb[2].mxu1 }
 0x11f   :  { %v403_v28 = vpop.f32.mrb[3].mxu0  ;;  %v409_v29 = vpop.f32.mrb[3].mxu1 }
 0x120   :  { %v404_v30 = vadd.f32 %v403_v28, %v402_v26  ;;  %v410_v31 = vadd.f32 %v409_v29, %v408_v27  ;;  %250 = vadd.xlane.f32.xlu1 %v407_v25  ;;  %246 = vadd.xlane.f32.xlu0 %v401_v24  ;;  %v259_v35 = vmul.f32 %v401_v24, %v401_v24 }
 0x121   :  { %v261_v37 = vmul.f32 %v407_v25, %v407_v25 }
 0x122   :  { %v375_v32 = vpack.c.bf16 %v404_v30, %v401_v24  ;;  %v380_v33 = vpack.c.bf16 %v410_v31, %v407_v25  ;;  %v260_v34 = vmul.f32 %v404_v30, %v404_v30  ;;  %v262_v36 = vmul.f32 %v410_v31, %v410_v31 }
 0x124   :  { %376 = vst [vmem:[#allocation7] sm:$0xff] %v375_v32   ;;  %382 = vst [vmem:[#allocation7 + $0x8] sm:$0xff] %v380_v33   ;;  %252 = vadd.xlane.f32.xlu1 %v410_v31  ;;  %248 = vadd.xlane.f32.xlu0 %v404_v30 }
 0x128   :  { %265 = vadd.xlane.f32.xlu1 %v260_v34  ;;  %263 = vadd.xlane.f32.xlu0 %v259_v35 }
 0x12c   :  { %269 = vadd.xlane.f32.xlu1 %v262_v36  ;;  %267 = vadd.xlane.f32.xlu0 %v261_v37 }
 0x12d   :  { %513 = shalt.err (!%p510_p6)
}
 0x12e   :  { %s514_s20 = scalar_lea.hbm %s695_s2, 256 }
 0x12f   :  { %p515_p7 = scmp.ne.s32.totalorder %s695_s2, %s514_s20  ;;  %p518_p8 = scmp.lt.u32.totalorder %s514_s20, %s695_s2 }
 0x131   :  { %p520_p9 = pnand %p518_p8, %p515_p7 }
 0x133   :  { %523 = shalt.err (!%p520_p9)
}
 0x134   :  { %306 = dma.vmem_to_hbm [thread:$0]  %s301_s16, 256, %s695_s2, [#allocation4], %s580_s0, %s580_s0, %s581_s13   ;;  %vm254_vm0 = vcmask 7168  }
 0x135   :  { %s583_s29 = smov [#allocation8]  }
 0x136   :  { %s312_s30 = sshll.u32 %s583_s29, 4  ;;  %s313_s30 = int_to_ptr.vmem [resolvable:$true] %s312_s30 }
 0x137   :  { %s524_s5 = scalar_lea.vmem %s313_s30, 512  ;;  %p529_p11 = scmp.lt.s32.totalorder %s313_s30, %s313_s30 }
 0x138   :  { %p525_p10 = scmp.ne.s32.totalorder %s313_s30, %s524_s5  ;;  %p530_p12 = scmp.lt.s32.totalorder %s524_s5, %s524_s5 }
 0x13a   :  { %p531_p13 = por %p530_p12, %p529_p11 }
 0x13c   :  { %p532_p0 = pnand %p531_p13, %p525_p10 }
 0x1ad   :  { %v251_v38 = vpop.xlane.xlu1 %250  ;;  %v247_v39 = vpop.xlane.xlu0 %246 }
 0x1ae   :  { %257 = vst.msk [vmem:[#allocation8 + $0x10] sm:$0xff] %vm254_vm0, %v251_v38  ;;  %255 = vst.msk [vmem:[#allocation8] sm:$0xff] %vm254_vm0, %v247_v39 }
 0x1b1   :  { %v253_v40 = vpop.xlane.xlu1 %252  ;;  %v249_v41 = vpop.xlane.xlu0 %248 }
 0x1b2   :  { %258 = vst.msk [vmem:[#allocation8 + $0x18] sm:$0xff] %vm254_vm0, %v253_v40  ;;  %256 = vst.msk [vmem:[#allocation8 + $0x8] sm:$0xff] %vm254_vm0, %v249_v41 }
 0x1b3   :  { %535 = shalt.err (!%p532_p0)
}
 0x1b4   :  { %s536_s7 = scalar_lea.hbm %s696_s3, 512 }
 0x1b5   :  { %p537_p1 = scmp.ne.s32.totalorder %s696_s3, %s536_s7  ;;  %p540_p2 = scmp.lt.u32.totalorder %s536_s7, %s696_s3 }
 0x1b7   :  { %p542_p3 = pnand %p540_p2, %p537_p1 }
 0x1b9   :  { %545 = shalt.err (!%p542_p3)
}
 0x1ba   :  { %318 = dma.vmem_to_hbm [thread:$0]  %s313_s30, 512, %s696_s3, [#allocation9], %s577_s25, %s577_s25, %s578_s26   ;;  %v266_v42 = vpop.xlane.xlu1 %265  ;;  %v264_v43 = vpop.xlane.xlu0 %263 }
 0x1bb   :  { %s584_s13 = smov [#allocation10]   ;;  %272 = vst.msk [vmem:[#allocation10 + $0x8] sm:$0xff] %vm254_vm0, %v266_v42  ;;  %271 = vst.msk [vmem:[#allocation10] sm:$0xff] %vm254_vm0, %v264_v43 }
 0x1bc   :  { %s324_s14 = sshll.u32 %s584_s13, 4  ;;  %s325_s14 = int_to_ptr.vmem [resolvable:$true] %s324_s14 }
 0x1bd   :  { %s546_s15 = scalar_lea.vmem %s325_s14, 512  ;;  %p551_p5 = scmp.lt.s32.totalorder %s325_s14, %s325_s14 }
 0x1be   :  { %v270_v44 = vpop.xlane.xlu1 %269  ;;  %v268_v45 = vpop.xlane.xlu0 %267  ;;  %p547_p4 = scmp.ne.s32.totalorder %s325_s14, %s546_s15  ;;  %p552_p6 = scmp.lt.s32.totalorder %s546_s15, %s546_s15 }
 0x1bf   :  { %274 = vst.msk [vmem:[#allocation10 + $0x18] sm:$0xff] %vm254_vm0, %v270_v44  ;;  %273 = vst.msk [vmem:[#allocation10 + $0x10] sm:$0xff] %vm254_vm0, %v268_v45 }
 0x1c0   :  { %p553_p7 = por %p552_p6, %p551_p5 }
 0x1c2   :  { %p554_p8 = pnand %p553_p7, %p547_p4 }
 0x1c4   :  { %557 = shalt.err (!%p554_p8)
}
 0x1c5   :  { %s558_s16 = scalar_lea.hbm %s697_s4, 512 }
 0x1c6   :  { %p559_p9 = scmp.ne.s32.totalorder %s697_s4, %s558_s16  ;;  %p562_p10 = scmp.lt.u32.totalorder %s558_s16, %s697_s4 }
 0x1c8   :  { %p564_p11 = pnand %p562_p10, %p559_p9 }
 0x1ca   :  { %567 = shalt.err (!%p564_p11)
}
 0x1cb   :  { %330 = dma.vmem_to_hbm [thread:$0]  %s325_s14, 512, %s697_s4, [#allocation9], %s577_s25, %s577_s25, %s578_s26  }
 0x1cc   :  { %572 = dma.done.wait [#allocation4], 256  }
 0x1cd   :  { %573 = vsyncadd [#allocation4], 4294967040 }
 0x1ce   :  { %574 = dma.done.wait [#allocation9], 1024  }
 0x1cf   :  { %575 = vsyncadd [#allocation9], 4294966272 }
 0x1d0   :  { %340 = vsyncpa [#allocation3], 1 }
 0x1d1   :  { %341 = vsyncpa [#allocation6], 1 }
 0x1d2   :  { %342 = vsyncpa [#allocation4], 1 }
 0x1d3   :  { %343 = vsyncpa [#allocation9], 1 }

// kernel: _lambda_.14
= control target key start
LH: loop header
LB: loop body
LE: loop exit
PB: predicated region body
PF: predicated region fallthrough
CT: control target
= control target key end

     0   :  { %7 = vsyncpa [#allocation3], 0  ;;  %s783_s0 = inlined_call_operand.hbm [shape: bf16[1,32,512], index: 0, kind: input, shape index: {}]   ;;  %s784_s1 = inlined_call_operand.hbm [shape: bf16[1,512,128], index: 1, kind: input, shape index: {}]   ;;  %s785_s2 = inlined_call_operand.hbm [shape: bf16[1,32,128], index: 2, kind: output, shape index: {}]  }
   0x1   :  { %8 = vsyncpa [#allocation6], 0 }
   0x2   :  { %9 = vsyncpa [#allocation4], 0  ;;  %s719_s9 = smov [#allocation2]   ;;  %s647_s13 = scalar_lea.hbm %s783_s0, 1024 }
   0x3   :  { %s15_s10 = sshll.u32 %s719_s9, 4  ;;  %p648_p0 = scmp.ne.s32.totalorder %s783_s0, %s647_s13  ;;  %s16_s10 = int_to_ptr.vmem [resolvable:$true] %s15_s10 }
   0x4   :  { %p651_p1 = scmp.lt.u32.totalorder %s647_s13, %s783_s0 }
   0x6   :  { %p653_p2 = pnand %p651_p1, %p648_p0 }
   0x8   :  { %656 = shalt.err (!%p653_p2)
}
   0x9   :  { %s657_s18 = scalar_lea.vmem %s16_s10, 1024  ;;  %p662_p4 = scmp.lt.s32.totalorder %s16_s10, %s16_s10 }
   0xa   :  { %p658_p3 = scmp.ne.s32.totalorder %s16_s10, %s657_s18  ;;  %p663_p5 = scmp.lt.s32.totalorder %s657_s18, %s657_s18 }
   0xc   :  { %p664_p6 = por %p663_p5, %p662_p4 }
   0xe   :  { %p665_p7 = pnand %p664_p6, %p658_p3 }
  0x10   :  { %668 = shalt.err (!%p665_p7)
}
  0x11   :  { %s720_s19 = smov 256   ;;  %s721_s20 = smov 16  }
  0x12   :  { %21 = dma.hbm_to_vmem [thread:$0]  %s783_s0, 1024, %s16_s10, [#allocation3], %s720_s19, %s720_s19, %s721_s20  }
  0x13   :  { %s722_s23 = smov [#allocation5]   ;;  %s669_s27 = scalar_lea.hbm %s784_s1, 4096 }
  0x14   :  { %s27_s24 = sshll.u32 %s722_s23, 4  ;;  %p670_p8 = scmp.ne.s32.totalorder %s784_s1, %s669_s27  ;;  %s28_s24 = int_to_ptr.vmem [resolvable:$true] %s27_s24 }
  0x15   :  { %p673_p9 = scmp.lt.u32.totalorder %s669_s27, %s784_s1 }
  0x17   :  { %p675_p10 = pnand %p673_p9, %p670_p8 }
  0x19   :  { %678 = shalt.err (!%p675_p10)
}
  0x1a   :  { %s679_s4 = scalar_lea.vmem %s28_s24, 4096  ;;  %p684_p12 = scmp.lt.s32.totalorder %s28_s24, %s28_s24 }
  0x1b   :  { %p680_p11 = scmp.ne.s32.totalorder %s28_s24, %s679_s4  ;;  %p685_p13 = scmp.lt.s32.totalorder %s679_s4, %s679_s4 }
  0x1d   :  { %p686_p0 = por %p685_p13, %p684_p12 }
  0x1f   :  { %p687_p1 = pnand %p686_p0, %p680_p11 }
  0x21   :  { %690 = shalt.err (!%p687_p1)
}
  0x22   :  { %s723_s0 = smov 64   ;;  %s724_s5 = smov 4  }
  0x23   :  { %33 = dma.hbm_to_vmem [thread:$0]  %s784_s1, 4096, %s28_s24, [#allocation6], %s723_s0, %s723_s0, %s724_s5  }
  0x24   :  { %713 = dma.done.wait [#allocation3], 1024  }
  0x25   :  { %714 = vsyncadd [#allocation3], 4294966272 }
  0x26   :  { %715 = dma.done.wait [#allocation6], 4096  }
  0x27   :  { %716 = vsyncadd [#allocation6], 4294963200  ;;  %v603_v0 = vld [vmem:[#allocation5 + $0x40] sm:$0xff]   ;;  %v607_v4 = vld [vmem:[#allocation5 + $0x48] sm:$0xff]   ;;  %s725_s1 = smov [#allocation7]  }
  0x28   :  { %v604_v1 = vld [vmem:[#allocation5 + $0xc0] sm:$0xff]   ;;  %540 = vmatprep.subr.bf16.mxu0 %v603_v0  ;;  %v608_v5 = vld [vmem:[#allocation5 + $0xc8] sm:$0xff]   ;;  %v611_v8 = vld [vmem:[#allocation5 + $0x50] sm:$0xff]   ;;  %s468_s8 = sshll.u32 %s725_s1, 4  ;;  %s469_s8 = int_to_ptr.vmem [resolvable:$true] %s468_s8 }
  0x29   :  { %v605_v2 = vld [vmem:[#allocation5] sm:$0xff]   ;;  %568 = vmatprep.subr.bf16.mxu1 %v604_v1  ;;  %v609_v6 = vld [vmem:[#allocation5 + $0x8] sm:$0xff]   ;;  %v612_v9 = vld [vmem:[#allocation5 + $0xd0] sm:$0xff]   ;;  %s691_s9 = scalar_lea.vmem %s469_s8, 256  ;;  %p696_p3 = scmp.lt.s32.totalorder %s469_s8, %s469_s8 }
  0x2a   :  { %v606_v3 = vld [vmem:[#allocation5 + $0x80] sm:$0xff]   ;;  %541 = vmatpush3.bf16.msra.mxu0 %v605_v2  ;;  %v610_v7 = vld [vmem:[#allocation5 + $0x88] sm:$0xff]   ;;  %v613_v10 = vld [vmem:[#allocation5 + $0x10] sm:$0xff]   ;;  %p692_p2 = scmp.ne.s32.totalorder %s469_s8, %s691_s9  ;;  %p697_p4 = scmp.lt.s32.totalorder %s691_s9, %s691_s9 }
  0x2b   :  { %569 = vmatpush3.bf16.msra.mxu1 %v606_v3  ;;  %542 = vmatprep.subr.bf16.mxu0 %v607_v4  ;;  %v614_v11 = vld [vmem:[#allocation5 + $0x90] sm:$0xff]   ;;  %v615_v12 = vld [vmem:[#allocation5 + $0x58] sm:$0xff]   ;;  %v619_v16 = vld [vmem:[#allocation5 + $0x60] sm:$0xff]  }
  0x2c   :  { %570 = vmatprep.subr.bf16.mxu1 %v608_v5  ;;  %v616_v13 = vld [vmem:[#allocation5 + $0xd8] sm:$0xff]   ;;  %v620_v17 = vld [vmem:[#allocation5 + $0xe0] sm:$0xff]   ;;  %v623_v20 = vld [vmem:[#allocation5 + $0x68] sm:$0xff]   ;;  %p698_p5 = por %p697_p4, %p696_p3 }
  0x2d   :  { %v617_v14 = vld [vmem:[#allocation5 + $0x18] sm:$0xff]   ;;  %v621_v18 = vld [vmem:[#allocation5 + $0x20] sm:$0xff]   ;;  %v624_v21 = vld [vmem:[#allocation5 + $0xe8] sm:$0xff]  }
  0x2e   :  { %543 = vmatpush3.bf16.msra.mxu0 %v609_v6  ;;  %v618_v15 = vld [vmem:[#allocation5 + $0x98] sm:$0xff]   ;;  %v622_v19 = vld [vmem:[#allocation5 + $0xa0] sm:$0xff]   ;;  %v625_v22 = vld [vmem:[#allocation5 + $0x28] sm:$0xff]   ;;  %p699_p6 = pnand %p698_p5, %p692_p2 }
  0x2f   :  { %571 = vmatpush3.bf16.msra.mxu1 %v610_v7  ;;  %544 = vmatprep.subr.bf16.mxu0 %v611_v8  ;;  %v626_v23 = vld [vmem:[#allocation5 + $0xa8] sm:$0xff]   ;;  %v627_v24 = vld [vmem:[#allocation5 + $0x70] sm:$0xff]   ;;  %v631_v28 = vld [vmem:[#allocation5 + $0x78] sm:$0xff]  }
  0x30   :  { %572 = vmatprep.subr.bf16.mxu1 %v612_v9  ;;  %v628_v25 = vld [vmem:[#allocation5 + $0xf0] sm:$0xff]   ;;  %v632_v29 = vld [vmem:[#allocation5 + $0xf8] sm:$0xff]  }
  0x31   :  { %v629_v26 = vld [vmem:[#allocation5 + $0x30] sm:$0xff]   ;;  %v633_v30 = vld [vmem:[#allocation5 + $0x38] sm:$0xff]  }
  0x32   :  { %545 = vmatpush3.bf16.msra.mxu0 %v613_v10  ;;  %v630_v27 = vld [vmem:[#allocation5 + $0xb0] sm:$0xff]   ;;  %v634_v31 = vld [vmem:[#allocation5 + $0xb8] sm:$0xff]  }
  0x33   :  { %573 = vmatpush3.bf16.msra.mxu1 %v614_v11  ;;  %546 = vmatprep.subr.bf16.mxu0 %v615_v12  ;;  %v635_v32 = vld [vmem:[#allocation2] ss:$16 sps:$4 sm:$0xff]   ;;  %v637_v33 = vld [vmem:[#allocation2 + $0x4] ss:$16 sps:$4 sm:$0xff]   ;;  %v638_v34 = vld [vmem:[#allocation2 + $0x8] ss:$16 sps:$4 sm:$0xff]  }
  0x34   :  { %574 = vmatprep.subr.bf16.mxu1 %v616_v13  ;;  %v640_v35 = vld [vmem:[#allocation2 + $0xc] ss:$16 sps:$4 sm:$0xff]   ;;  %377 = vmatprep.mubr.bf16.mxu0 %v637_v33  ;;  %v641_v36 = vld [vmem:[#allocation2 + $0x24] ss:$16 sps:$4 sm:$0xff]   ;;  %v645_v38 = vld [vmem:[#allocation2 + $0x20] ss:$16 sps:$4 sm:$0xff]  }
  0x35   :  { %426 = vmatprep.mubr.bf16.mxu1 %v640_v35  ;;  %v643_v37 = vld [vmem:[#allocation2 + $0x2c] ss:$16 sps:$4 sm:$0xff]   ;;  %v646_v39 = vld [vmem:[#allocation2 + $0x28] ss:$16 sps:$4 sm:$0xff]  }
  0x36   :  { %547 = vmatpush3.bf16.msra.mxu0 %v617_v14 }
  0x37   :  { %575 = vmatpush3.bf16.msra.mxu1 %v618_v15  ;;  %548 = vmatprep.subr.bf16.mxu0 %v619_v16 }
  0x38   :  { %576 = vmatprep.subr.bf16.mxu1 %v620_v17 }
  0x3a   :  { %549 = vmatpush3.bf16.msra.mxu0 %v621_v18 }
  0x3b   :  { %577 = vmatpush3.bf16.msra.mxu1 %v622_v19  ;;  %550 = vmatprep.subr.bf16.mxu0 %v623_v20 }
  0x3c   :  { %578 = vmatprep.subr.bf16.mxu1 %v624_v21 }
  0x3e   :  { %551 = vmatpush3.bf16.msra.mxu0 %v625_v22 }
  0x3f   :  { %579 = vmatpush3.bf16.msra.mxu1 %v626_v23  ;;  %552 = vmatprep.subr.bf16.mxu0 %v627_v24 }
  0x40   :  { %580 = vmatprep.subr.bf16.mxu1 %v628_v25 }
  0x42   :  { %553 = vmatpush3.bf16.msra.mxu0 %v629_v26 }
  0x43   :  { %581 = vmatpush3.bf16.msra.mxu1 %v630_v27  ;;  %554 = vmatprep.subr.bf16.mxu0 %v631_v28 }
  0x44   :  { %582 = vmatprep.subr.bf16.mxu1 %v632_v29 }
  0x46   :  { %555 = vmatpush3.bf16.msra.mxu0 %v633_v30 }
  0x47   :  { %583 = vmatpush3.bf16.msra.mxu1 %v634_v31 }
  0x49   :  { %378 = vmatmul.mubr.bf16.vlgmr.msra.gmra.mrb[0].mxu0 %v635_v32 }
  0x4a   :  { %427 = vmatmul.mubr.bf16.vlgmr.msra.gmra.mrb[0].mxu1 %v638_v34  ;;  %385 = vmatprep.mubr.bf16.mxu0 %v641_v36 }
  0x4b   :  { %434 = vmatprep.mubr.bf16.mxu1 %v643_v37 }
  0x51   :  { %386 = vmatmul.mubr.bf16.gmra.mrb[4].mxu0 %v645_v38 }
  0x52   :  { %435 = vmatmul.mubr.bf16.gmra.mrb[4].mxu1 %v646_v39 }
 0x11c   :  { %v556_v40 = vpop.f32.mrb[0].mxu0 }
 0x11d   :  { %v584_v41 = vpop.f32.mrb[0].mxu1  ;;  %v557_v42 = vpop.f32.mrb[1].mxu0 }
 0x11e   :  { %v558_v43 = vadd.f32 %v557_v42, %v556_v40  ;;  %v585_v44 = vpop.f32.mrb[1].mxu1  ;;  %v559_v45 = vpop.f32.mrb[2].mxu0 }
 0x11f   :  { %v586_v46 = vadd.f32 %v585_v44, %v584_v41  ;;  %v587_v47 = vpop.f32.mrb[2].mxu1  ;;  %v560_v48 = vpop.f32.mrb[3].mxu0 }
 0x120   :  { %v561_v49 = vadd.f32 %v560_v48, %v559_v45  ;;  %v588_v50 = vpop.f32.mrb[3].mxu1 }
 0x121   :  { %v429_v51 = vadd.f32 %v586_v46, %v558_v43  ;;  %v589_v52 = vadd.f32 %v588_v50, %v587_v47 }
 0x123   :  { %v432_v53 = vadd.f32 %v589_v52, %v561_v49 }
 0x124   :  { %v562_v54 = vpop.f32.mrb[4].mxu0 }
 0x125   :  { %v532_v55 = vpack.c.bf16 %v432_v53, %v429_v51  ;;  %v590_v56 = vpop.f32.mrb[4].mxu1  ;;  %v563_v57 = vpop.f32.mrb[5].mxu0 }
 0x126   :  { %v564_v58 = vadd.f32 %v563_v57, %v562_v54  ;;  %v591_v59 = vpop.f32.mrb[5].mxu1  ;;  %v565_v60 = vpop.f32.mrb[6].mxu0 }
 0x127   :  { %533 = vst [vmem:[#allocation7] sm:$0xff] %v532_v55   ;;  %v592_v61 = vadd.f32 %v591_v59, %v590_v56  ;;  %v593_v62 = vpop.f32.mrb[6].mxu1  ;;  %v566_v63 = vpop.f32.mrb[7].mxu0 }
 0x128   :  { %v567_v0 = vadd.f32 %v566_v63, %v565_v60  ;;  %v594_v1 = vpop.f32.mrb[7].mxu1 }
 0x129   :  { %v437_v2 = vadd.f32 %v592_v61, %v564_v58  ;;  %v595_v3 = vadd.f32 %v594_v1, %v593_v62 }
 0x12b   :  { %v440_v4 = vadd.f32 %v595_v3, %v567_v0 }
 0x12d   :  { %v537_v5 = vpack.c.bf16 %v440_v4, %v437_v2 }
 0x12f   :  { %539 = vst [vmem:[#allocation7 + $0x8] sm:$0xff] %v537_v5  }
 0x130   :  { %702 = shalt.err (!%p699_p6)
}
 0x131   :  { %s703_s12 = scalar_lea.hbm %s785_s2, 256 }
 0x132   :  { %p704_p7 = scmp.ne.s32.totalorder %s785_s2, %s703_s12  ;;  %p707_p8 = scmp.lt.u32.totalorder %s703_s12, %s785_s2 }
 0x134   :  { %p709_p9 = pnand %p707_p8, %p704_p7 }
 0x136   :  { %712 = shalt.err (!%p709_p9)
}
 0x137   :  { %474 = dma.vmem_to_hbm [thread:$0]  %s469_s8, 256, %s785_s2, [#allocation4], %s723_s0, %s723_s0, %s724_s5  }
 0x138   :  { %717 = dma.done.wait [#allocation4], 256  }
 0x139   :  { %718 = vsyncadd [#allocation4], 4294967040 }
 0x13a   :  { %478 = vsyncpa [#allocation3], 1 }
 0x13b   :  { %479 = vsyncpa [#allocation6], 1 }
 0x13c   :  { %480 = vsyncpa [#allocation4], 1 }

// kernel: _lambda_.15
= control target key start
LH: loop header
LB: loop body
LE: loop exit
PB: predicated region body
PF: predicated region fallthrough
CT: control target
= control target key end

     0   :  { %s1468_s0 = inlined_call_operand.hbm [shape: bf16[4,32,128], index: 0, kind: input, shape index: {}]   ;;  %s1469_s1 = inlined_call_operand.hbm [shape: bf16[4,128,128], index: 1, kind: input, shape index: {}]   ;;  %s1470_s2 = inlined_call_operand.hbm [shape: bf16[4,32,128], index: 2, kind: output, shape index: {0}]   ;;  %s1471_s3 = inlined_call_operand.hbm [shape: f32[4,1,32,1], index: 3, kind: output, shape index: {1}]   ;;  %s1472_s4 = inlined_call_operand.hbm [shape: f32[4,1,32,1], index: 4, kind: output, shape index: {2}]  }
   0x1   :  { %1477 = sst [smem:[#allocation15_spill]] %s1468_s0 }
   0x2   :  { %10 = vsyncpa [#allocation3], 0 }
   0x3   :  { %12 = vsyncpa [#allocation3 + $0x1], 0 }
   0x4   :  { %13 = vsyncpa [#allocation6], 0 }
   0x5   :  { %15 = vsyncpa [#allocation6 + $0x1], 0 }
   0x6   :  { %16 = vsyncpa [#allocation4], 0 }
   0x7   :  { %18 = vsyncpa [#allocation4 + $0x1], 0 }
   0x8   :  { %19 = vsyncpa [#allocation9], 0 }
   0x9   :  { %21 = vsyncpa [#allocation9 + $0x1], 0  ;;  %s1138_s15 = smov 0   ;;  %s1140_s16 = smov 0  }
   0xa   :  { %s1142_s17 = smov 0   ;;  %s1144_s18 = smov 0  }
   0xb   :  { %s1146_s19 = smov 0   ;;  %s1148_s20 = smov 0  }
   0xc LB: > { %s1169_s21 = sadd.s32 4294967295, %s1100_s20   ;;  %s1474_s22 = sadd.s32 4294967294, %s1100_s20   ;;  %s1100_s20 = sphi %s1148_s20, %s27_s20   ;;  %s1096_s19 = sphi %s1146_s19, %s1495_s19   ;;  %s1092_s18 = sphi %s1144_s18, %s1494_s18   ;;  %s1088_s17 = sphi %s1142_s17, %s1493_s17   ;;  %s1084_s16 = sphi %s1140_s16, %s1492_s16   ;;  %s1080_s15 = sphi %s1138_s15, %s1491_s15  }
   0xd   : > { %s39_s23 = sadd.s32 1, %s1096_s19  ;;  %s46_s24 = sadd.s32 1, %s1088_s17 }
   0xe   : > { %p41_p0 = scmp.ge.s32.totalorder %s39_s23, 4  ;;  %p53_p1 = scmp.ne.s32.totalorder %s1088_s17, %s1084_s16 }
   0xf   : > { %p54_p2 = scmp.eq.s32.totalorder %s1100_s20, 0  ;;  %p59_p3 = scmp.ne.s32.totalorder %s1084_s16, %s1080_s15 }
  0x10   : > { %s1497_s23 = smov (%p41_p0, %s39_s23), 0  ;;  %p60_p5 = scmp.eq.s32.totalorder %s1169_s21, 0 }
  0x11   : > { %p1181_p4 = por %p54_p2, %p53_p1  ;;  %s43_s26 = ssub.s32 %s1096_s19, %s1497_s23 }
  0x12   : > { %p113_p6 = scmp.eq.s32.totalorder %s1169_s21, 3  ;;  %p44_p7 = scmp.eq.s32.totalorder %s43_s26, 0 }
  0x13   : > { %p1189_p8 = por %p60_p5, %p59_p3  ;;  %p119_p10 = scmp.eq.s32.totalorder %s1474_s22, 3 }
  0x14   : > { %p1193_p9 = por %p113_p6, %p53_p1  ;;  %p828_p12 = scmp.lt.s32.totalorder %s1100_s20, 4 }
  0x15   : > { %s1479_s27 = scalar_select %p1189_p8, 1, 0 }
  0x16   : > { %s1480_s28 = scalar_select %p1193_p9, 1, 0 }
  0x17   : > { %s1200_s29 = scalar_select %p44_p7, %s1088_s17, %s46_s24  }
  0x18   : > { %p1202_p11 = por %p119_p10, %p59_p3  ;;  %s1208_s5 = sand.u32 1, %s1088_s17  }
  0x19   : > { %s714_s6 = sshll.u32 %s1208_s5, 4  ;;  %s751_s7 = sshll.u32 %s1096_s19, 8 }
  0x1a   : > { %s1481_s30 = scalar_select %p1202_p11, 1, 0 }
  0x1b   : > { %s1482_s0 = sld [smem:[#allocation15_spill]]  ;;  %s199_s11 = scalar_lea.vmem [#allocation2], %s714_s6 }
  0x1c   : > { %s206_s12 = sshll.u32 %s199_s11, 4  ;;  %p1221_p13 = pnand %p828_p12, %p1181_p4  ;;  %s1217_s12 = int_to_ptr.vmem [resolvable:$true] %s206_s12 }
  0x1d   : > { %s196_s14 = scalar_lea.sflag [#allocation3], %s1208_s5 }
  0x1e   : > { %p896_p2 = pneg %p1221_p13 }
  0x21   : > { %s1215_s10 = scalar_lea.hbm %s1482_s0, %s751_s7  ;;  %s899_s25 = scalar_lea.hbm %s1482_s0, 1024 }
  0x22   : > { %s894_s24 = scalar_lea.hbm %s1215_s10, 256  ;;  %p900_p4 = scmp.lt.u32.totalorder %s1215_s10, %s1482_s0 }
  0x23   : > { %p895_p1 = scmp.ne.s32.totalorder %s1215_s10, %s894_s24  ;;  %p901_p6 = scmp.lt.u32.totalorder %s899_s25, %s894_s24 }
  0x24   : > { %p903_p10 = scmp.lt.u32.totalorder %s894_s24, %s1215_s10 }
  0x25   : > { %p897_p3 = pnand %p896_p2, %p895_p1  ;;  %p902_p7 = por %p901_p6, %p900_p4 }
  0x27   : > { %p898_p5 = pneg %p897_p3  ;;  %p904_p12 = por %p903_p10, %p902_p7 }
  0x29   : > { %p905_p0 = pnand %p904_p12, %p898_p5 }
  0x2b   : > { %908 = shalt.err (!%p905_p0)
}
  0x2c   : > { %s909_s9 = scalar_lea.vmem %s1217_s12, 256  ;;  %s1102_s11 = smov [#allocation2]  }
  0x2d   : > { %p910_p1 = scmp.ne.s32.totalorder %s1217_s12, %s909_s9  ;;  %s914_s26 = sshll.u32 %s1102_s11, 4  ;;  %s915_s26 = int_to_ptr.vmem [resolvable:$false] %s914_s26 }
  0x2e   : > { %s916_s6 = scalar_lea.vmem %s915_s26, 512  ;;  %p917_p9 = scmp.lt.s32.totalorder %s1217_s12, %s915_s26 }
  0x2f   : > { %p912_p3 = pnand %p910_p1, %p896_p2  ;;  %p918_p4 = scmp.lt.s32.totalorder %s916_s6, %s909_s9 }
  0x31   : > { %p913_p11 = pneg %p912_p3  ;;  %p919_p6 = por %p918_p4, %p917_p9 }
  0x33   : > { %p920_p7 = pnand %p919_p6, %p913_p11 }
  0x35   : > { %923 = shalt.err (!%p920_p7)
}
  0x36   : > { %s1475_s24 = smov 64   ;;  %s1104_s25 = smov 4  }
  0x37   : > { %814 = dma.hbm_to_vmem [thread:$0]  (!%p1221_p13), %s1215_s10, 256, %s1217_s12, %s196_s14, %s1475_s24, %s1475_s24, %s1104_s25  }
  0x38   : > { %p236_p9 = scmp.lt.s32.totalorder %s1100_s20, 5  ;;  %s717_s7 = sshll.u32 %s1208_s5, 6 }
  0x39   : > { %s752_s8 = sshll.u32 %s1096_s19, 10  ;;  %p1484_p11 = scmp.ge.s32.totalorder %s1100_s20, 1 }
  0x3a   : > { %s1269_s6 = scalar_lea.hbm %s1469_s1, %s752_s8  ;;  %s220_s22 = scalar_lea.vmem [#allocation5], %s717_s7 }
  0x3b   : > { %p1262_p0 = pnand %p1484_p11, %p236_p9  ;;  %s228_s0 = sshll.u32 %s220_s22, 4  ;;  %s1271_s0 = int_to_ptr.vmem [resolvable:$true] %s228_s0 }
  0x3c   : > { %s217_s10 = scalar_lea.sflag [#allocation6], %s1208_s5  ;;  %s924_s12 = scalar_lea.hbm %s1269_s6, 1024 }
  0x3d   : > { %p925_p5 = scmp.ne.s32.totalorder %s1269_s6, %s924_s12  ;;  %s929_s8 = scalar_lea.hbm %s1469_s1, 4096 }
  0x3e   : > { %p930_p1 = scmp.lt.u32.totalorder %s1269_s6, %s1469_s1  ;;  %p931_p3 = scmp.lt.u32.totalorder %s929_s8, %s924_s12 }
  0x3f   : > { %p927_p10 = pnand %p925_p5, %p896_p2  ;;  %p933_p6 = scmp.lt.u32.totalorder %s924_s12, %s1269_s6 }
  0x40   : > { %p932_p4 = por %p931_p3, %p930_p1 }
  0x41   : > { %p928_p12 = pneg %p927_p10 }
  0x42   : > { %p934_p7 = por %p933_p6, %p932_p4 }
  0x44   : > { %p935_p9 = pnand %p934_p7, %p928_p12 }
  0x46   : > { %938 = shalt.err (!%p935_p9)
}
  0x47   : > { %s939_s22 = scalar_lea.vmem %s1271_s0, 1024  ;;  %s1105_s24 = smov [#allocation5]  }
  0x48   : > { %p940_p11 = scmp.ne.s32.totalorder %s1271_s0, %s939_s22  ;;  %s944_s7 = sshll.u32 %s1105_s24, 4  ;;  %s945_s7 = int_to_ptr.vmem [resolvable:$false] %s944_s7 }
  0x49   : > { %s946_s14 = scalar_lea.vmem %s945_s7, 2048  ;;  %p947_p8 = scmp.lt.s32.totalorder %s1271_s0, %s945_s7 }
  0x4a   : > { %p942_p5 = pnand %p940_p11, %p896_p2  ;;  %p948_p1 = scmp.lt.s32.totalorder %s946_s14, %s939_s22 }
  0x4c   : > { %p943_p10 = pneg %p942_p5  ;;  %p949_p3 = por %p948_p1, %p947_p8 }
  0x4e   : > { %p950_p4 = pnand %p949_p3, %p943_p10 }
  0x50   : > { %953 = shalt.err (!%p950_p4)
}
  0x51   : > { %s1486_s12 = smov 64   ;;  %240 = sbr.rel (%p1262_p0) target bundleno = 523 (0x20b), region = 28 }
  0x52   : > { %817 = dma.hbm_to_vmem [thread:$0]  (!%p1221_p13), %s1269_s6, 1024, %s1271_s0, %s217_s10, %s1486_s12, %s1486_s12, %s1104_s25  }
  0x53   : > { %s1305_s8 = sand.u32 (!%p1262_p0), 1, %s1084_s16   ;;  %p1487_p8 = scmp.ne.s32.totalorder (!%p1262_p0), %s1479_s27, 0 }
  0x54   : > { %s721_s11 = sshll.u32 (!%p1262_p0), %s1305_s8, 4  ;;  %s243_s13 = scalar_lea.sflag (!%p1262_p0), [#allocation3], %s1305_s8 }
  0x55   : > { %s1311_s26 = scalar_lea.vmem (!%p1262_p0), [#allocation2], %s721_s11 }
  0x58   : > { %1063 = dma.done.wait (%p1487_p8), %s243_s13, 256  }
  0x59   : > { %1065 = vsyncadd (%p1487_p8), %s243_s13, 4294967040  ;;  %s722_s0 = sshll.u32 %s1305_s8, 6  ;;  %s252_s5 = scalar_lea.sflag [#allocation6], %s1305_s8 }
  0x5a   : > { %s255_s25 = scalar_lea.vmem [#allocation5], %s722_s0 }
  0x5b   : > { %1067 = dma.done.wait (%p1487_p8), %s252_s5, 1024  }
  0x5c   : > { %1069 = vsyncadd (%p1487_p8), %s252_s5, 4294966272  ;;  %v884_v0 = vld [vmem:[%s255_s25] sm:$0xff]   ;;  %v885_v1 = vld [vmem:[%s255_s25 + $0x8] sm:$0xff]   ;;  %s280_s27 = scalar_lea.vmem [#allocation7], %s721_s11  ;;  %s757_s6 = sshll.u32 %s1092_s18, 8 }
  0x5d   : > { %781 = vmatprep.subr.bf16.mxu0 %v884_v0  ;;  %v886_v2 = vld [vmem:[%s255_s25 + $0x10] sm:$0xff]   ;;  %v887_v3 = vld [vmem:[%s255_s25 + $0x18] sm:$0xff]   ;;  %v888_v5 = vld [vmem:[%s255_s25 + $0x20] sm:$0xff]   ;;  %s499_s9 = sshll.u32 %s280_s27, 4  ;;  %s1333_s24 = scalar_lea.hbm %s1470_s2, %s757_s6  ;;  %s1327_s9 = int_to_ptr.vmem [resolvable:$true] %s499_s9 }
  0x5e   : > { %782 = vmatpush3.bf16.msra.mxu0 %v884_v0  ;;  %v892_v4 = vld [vmem:[%s1311_s26] sm:$0xff]   ;;  %v889_v6 = vld [vmem:[%s255_s25 + $0x28] sm:$0xff]   ;;  %v891_v8 = vld [vmem:[%s255_s25 + $0x38] sm:$0xff]   ;;  %s475_s7 = scalar_lea.sflag [#allocation4], %s1305_s8  ;;  %s954_s14 = scalar_lea.vmem %s1327_s9, 256 }
  0x5f   : > { %783 = vmatprep.subr.bf16.mxu0 %v885_v1  ;;  %797 = vmatprep.mubr.bf16.mxu0 %v892_v4  ;;  %v890_v7 = vld [vmem:[%s255_s25 + $0x30] sm:$0xff]   ;;  %v893_v9 = vld [vmem:[%s1311_s26 + $0x8] sm:$0xff]   ;;  %p955_p13 = scmp.ne.s32.totalorder %s1327_s9, %s954_s14  ;;  %p1488_p2 = scmp.ne.s32.totalorder %s1480_s28, 0 }
  0x60   : > { %s1106_s12 = smov [#allocation7]  }
  0x61   : > { %p956_p0 = pnand %p955_p13, %p1488_p2  ;;  %s958_s11 = sshll.u32 %s1106_s12, 4  ;;  %s959_s11 = int_to_ptr.vmem [resolvable:$false] %s958_s11 }
  0x62   : > { %784 = vmatpush3.bf16.msra.mxu0 %v885_v1  ;;  %s960_s13 = scalar_lea.vmem %s959_s11, 512  ;;  %p961_p6 = scmp.lt.s32.totalorder %s1327_s9, %s959_s11 }
  0x63   : > { %785 = vmatprep.subr.bf16.mxu0 %v886_v2  ;;  %p957_p12 = pneg %p956_p0  ;;  %p962_p7 = scmp.lt.s32.totalorder %s960_s13, %s954_s14 }
  0x65   : > { %p963_p9 = por %p962_p7, %p961_p6 }
  0x66   : > { %786 = vmatpush3.bf16.msra.mxu0 %v886_v2 }
  0x67   : > { %787 = vmatprep.subr.bf16.mxu0 %v887_v3  ;;  %p964_p11 = pnand %p963_p9, %p957_p12 }
  0x6a   : > { %788 = vmatpush3.bf16.msra.mxu0 %v887_v3 }
  0x6b   : > { %789 = vmatprep.subr.bf16.mxu0 %v888_v5 }
  0x6e   : > { %790 = vmatpush3.bf16.msra.mxu0 %v888_v5 }
  0x6f   : > { %791 = vmatprep.subr.bf16.mxu0 %v889_v6 }
  0x72   : > { %792 = vmatpush3.bf16.msra.mxu0 %v889_v6 }
  0x73   : > { %793 = vmatprep.subr.bf16.mxu0 %v890_v7 }
  0x76   : > { %794 = vmatpush3.bf16.msra.mxu0 %v890_v7 }
  0x77   : > { %795 = vmatprep.subr.bf16.mxu0 %v891_v8 }
  0x7a   : > { %796 = vmatpush3.bf16.msra.mxu0 %v891_v8 }
  0x7d   : > { %798 = vmatmul.mubr.bf16.vlgmr.msra.gmra.mrb[0].mxu0 %v893_v9 }
 0x150   : > { %v799_v10 = vpop.f32.mrb[0].mxu0 }
 0x151   : > { %429 = vadd.xlane.f32.xlu1 %v799_v10  ;;  %v410_v11 = vpop.f32.mrb[1].mxu0  ;;  %v440_v19 = vmul.f32 %v799_v10, %v799_v10 }
 0x152   : > { %425 = vadd.xlane.f32.xlu0 %v410_v11  ;;  %v800_v12 = vpop.f32.mrb[2].mxu0  ;;  %v438_v17 = vmul.f32 %v410_v11, %v410_v11 }
 0x153   : > { %v768_v13 = vpack.c.bf16 %v800_v12, %v799_v10  ;;  %v413_v14 = vpop.f32.mrb[3].mxu0  ;;  %v441_v18 = vmul.f32 %v800_v12, %v800_v12 }
 0x154   : > { %v763_v15 = vpack.c.bf16 %v413_v14, %v410_v11  ;;  %v439_v16 = vmul.f32 %v413_v14, %v413_v14 }
 0x155   : > { %770 = vst [vmem:[%s280_s27 + $0x8] sm:$0xff] %v768_v13   ;;  %431 = vadd.xlane.f32.xlu1 %v800_v12 }
 0x156   : > { %764 = vst [vmem:[%s280_s27] sm:$0xff] %v763_v15   ;;  %427 = vadd.xlane.f32.xlu0 %v413_v14 }
 0x159   : > { %444 = vadd.xlane.f32.xlu1 %v439_v16 }
 0x15a   : > { %442 = vadd.xlane.f32.xlu0 %v438_v17 }
 0x15d   : > { %448 = vadd.xlane.f32.xlu1 %v441_v18 }
 0x15e   : > { %446 = vadd.xlane.f32.xlu0 %v440_v19 }
 0x15f   : > { %967 = shalt.err (!%p964_p11)
}
 0x160   : > { %s968_s26 = scalar_lea.hbm %s1333_s24, 256  ;;  %s972_s25 = scalar_lea.hbm %s1470_s2, 1024 }
 0x161   : > { %p969_p5 = scmp.ne.s32.totalorder %s1333_s24, %s968_s26  ;;  %p973_p3 = scmp.lt.u32.totalorder %s1333_s24, %s1470_s2 }
 0x162   : > { %p974_p4 = scmp.lt.u32.totalorder %s972_s25, %s968_s26  ;;  %p976_p13 = scmp.lt.u32.totalorder %s968_s26, %s1333_s24 }
 0x163   : > { %p970_p10 = pnand %p969_p5, %p1488_p2 }
 0x164   : > { %p975_p8 = por %p974_p4, %p973_p3 }
 0x165   : > { %p971_p1 = pneg %p970_p10 }
 0x166   : > { %p977_p0 = por %p976_p13, %p975_p8 }
 0x168   : > { %p978_p12 = pnand %p977_p0, %p971_p1 }
 0x16a   : > { %981 = shalt.err (!%p978_p12)
}
 0x16b   : > { %s1107_s10 = smov 64   ;;  %s1108_s22 = smov 4   ;;  %vm433_vm0 = vcmask 7168  }
 0x16c   : > { %805 = dma.vmem_to_hbm [thread:$0]  (%p1488_p2), %s1327_s9, 256, %s1333_s24, %s475_s7, %s1107_s10, %s1107_s10, %s1108_s22  }
 0x16d   : > { %s724_s14 = sshll.u32 %s1305_s8, 5  ;;  %s479_s13 = sand.u32 1, %s1169_s21  }
 0x16e   : > { %s287_s12 = scalar_lea.vmem [#allocation8], %s724_s14  ;;  %s758_s26 = sshll.u32 %s1092_s18, 9 }
 0x16f   : > { %s517_s11 = sshll.u32 %s287_s12, 4  ;;  %s1373_s7 = scalar_lea.hbm %s1471_s3, %s758_s26  ;;  %s1365_s11 = int_to_ptr.vmem [resolvable:$true] %s517_s11 }
 0x170   : > { %s1377_s21 = scalar_lea.sflag [#allocation9], %s479_s13  ;;  %s982_s0 = scalar_lea.vmem %s1365_s11, 512 }
 0x171   : > { %p983_p6 = scmp.ne.s32.totalorder %s1365_s11, %s982_s0  ;;  %s1109_s5 = smov [#allocation8]  }
 0x172   : > { %s986_s25 = sshll.u32 %s1109_s5, 4  ;;  %s987_s25 = int_to_ptr.vmem [resolvable:$false] %s986_s25 }
 0x173   : > { %p984_p7 = pnand %p983_p6, %p1488_p2  ;;  %s988_s27 = scalar_lea.vmem %s987_s25, 1024 }
 0x174   : > { %p989_p11 = scmp.lt.s32.totalorder %s1365_s11, %s987_s25  ;;  %p990_p5 = scmp.lt.s32.totalorder %s988_s27, %s982_s0 }
 0x175   : > { %p985_p9 = pneg %p984_p7 }
 0x176   : > { %p991_p10 = por %p990_p5, %p989_p11 }
 0x178   : > { %p992_p1 = pnand %p991_p10, %p985_p9 }
 0x1de   : > { %v430_v20 = vpop.xlane.xlu1 %429 }
 0x1df   : > { %436 = vst.msk [vmem:[%s287_s12 + $0x10] sm:$0xff] %vm433_vm0, %v430_v20  ;;  %v426_v21 = vpop.xlane.xlu0 %425 }
 0x1e0   : > { %434 = vst.msk [vmem:[%s287_s12] sm:$0xff] %vm433_vm0, %v426_v21 }
 0x1e2   : > { %v432_v22 = vpop.xlane.xlu1 %431 }
 0x1e3   : > { %437 = vst.msk [vmem:[%s287_s12 + $0x18] sm:$0xff] %vm433_vm0, %v432_v22  ;;  %v428_v23 = vpop.xlane.xlu0 %427 }
 0x1e4   : > { %435 = vst.msk [vmem:[%s287_s12 + $0x8] sm:$0xff] %vm433_vm0, %v428_v23 }
 0x1e5   : > { %995 = shalt.err (!%p992_p1)
}
 0x1e6   : > { %s996_s6 = scalar_lea.hbm %s1373_s7, 512  ;;  %s1000_s12 = scalar_lea.hbm %s1471_s3, 2048 }
 0x1e7   : > { %p997_p3 = scmp.ne.s32.totalorder %s1373_s7, %s996_s6  ;;  %p1001_p13 = scmp.lt.u32.totalorder %s1373_s7, %s1471_s3 }
 0x1e8   : > { %p1002_p0 = scmp.lt.u32.totalorder %s1000_s12, %s996_s6  ;;  %p1004_p6 = scmp.lt.u32.totalorder %s996_s6, %s1373_s7 }
 0x1e9   : > { %p998_p4 = pnand %p997_p3, %p1488_p2 }
 0x1ea   : > { %p1003_p12 = por %p1002_p0, %p1001_p13 }
 0x1eb   : > { %p999_p8 = pneg %p998_p4 }
 0x1ec   : > { %p1005_p7 = por %p1004_p6, %p1003_p12 }
 0x1ee   : > { %p1006_p9 = pnand %p1005_p7, %p999_p8 }
 0x1f0   : > { %1009 = shalt.err (!%p1006_p9)
}
 0x1f1   : > { %s1110_s24 = smov 128   ;;  %s1111_s0 = smov 8   ;;  %v445_v24 = vpop.xlane.xlu1 %444  ;;  %v443_v25 = vpop.xlane.xlu0 %442 }
 0x1f2   : > { %806 = dma.vmem_to_hbm [thread:$0]  (%p1488_p2), %s1365_s11, 512, %s1373_s7, %s1377_s21, %s1110_s24, %s1110_s24, %s1111_s0  }
 0x1f3   : > { %s294_s5 = scalar_lea.vmem [#allocation10], %s724_s14  ;;  %s1415_s11 = scalar_lea.hbm %s1472_s4, %s758_s26 }
 0x1f4   : > { %s535_s25 = sshll.u32 %s294_s5, 4  ;;  %451 = vst.msk [vmem:[%s294_s5 + $0x8] sm:$0xff] %vm433_vm0, %v445_v24  ;;  %450 = vst.msk [vmem:[%s294_s5] sm:$0xff] %vm433_vm0, %v443_v25  ;;  %s1112_s14 = smov [#allocation10]   ;;  %s1408_s25 = int_to_ptr.vmem [resolvable:$true] %s535_s25 }
 0x1f5   : > { %v449_v26 = vpop.xlane.xlu1 %448  ;;  %v447_v27 = vpop.xlane.xlu0 %446  ;;  %s1010_s8 = scalar_lea.vmem %s1408_s25, 512  ;;  %s1014_s7 = sshll.u32 %s1112_s14, 4  ;;  %s1015_s7 = int_to_ptr.vmem [resolvable:$false] %s1014_s7 }
 0x1f6   : > { %453 = vst.msk [vmem:[%s294_s5 + $0x18] sm:$0xff] %vm433_vm0, %v449_v26  ;;  %452 = vst.msk [vmem:[%s294_s5 + $0x10] sm:$0xff] %vm433_vm0, %v447_v27  ;;  %p1011_p11 = scmp.ne.s32.totalorder %s1408_s25, %s1010_s8  ;;  %s1016_s10 = scalar_lea.vmem %s1015_s7, 1024 }
 0x1f7   : > { %p1017_p1 = scmp.lt.s32.totalorder %s1408_s25, %s1015_s7  ;;  %p1018_p3 = scmp.lt.s32.totalorder %s1016_s10, %s1010_s8 }
 0x1f8   : > { %p1012_p5 = pnand %p1011_p11, %p1488_p2 }
 0x1f9   : > { %p1019_p4 = por %p1018_p3, %p1017_p1 }
 0x1fa   : > { %p1013_p10 = pneg %p1012_p5 }
 0x1fc   : > { %p1020_p8 = pnand %p1019_p4, %p1013_p10 }
 0x1fe   : > { %1023 = shalt.err (!%p1020_p8)
}
 0x1ff   : > { %s1024_s18 = scalar_lea.hbm %s1415_s11, 512  ;;  %s1028_s12 = scalar_lea.hbm %s1472_s4, 2048 }
 0x200   : > { %p1025_p13 = scmp.ne.s32.totalorder %s1415_s11, %s1024_s18  ;;  %p1029_p6 = scmp.lt.u32.totalorder %s1415_s11, %s1472_s4 }
 0x201   : > { %p1030_p7 = scmp.lt.u32.totalorder %s1028_s12, %s1024_s18  ;;  %p1032_p11 = scmp.lt.u32.totalorder %s1024_s18, %s1415_s11 }
 0x202   : > { %p1026_p0 = pnand %p1025_p13, %p1488_p2 }
 0x203   : > { %p1031_p9 = por %p1030_p7, %p1029_p6 }
 0x204   : > { %p1027_p12 = pneg %p1026_p0 }
 0x205   : > { %p1033_p5 = por %p1032_p11, %p1031_p9 }
 0x207   : > { %p1034_p10 = pnand %p1033_p5, %p1027_p12 }
 0x209   : > { %1037 = shalt.err (!%p1034_p10)
}
 0x20a   : > { %807 = dma.vmem_to_hbm [thread:$0]  (%p1488_p2), %s1408_s25, 512, %s1415_s11, %s1377_s21, %s1110_s24, %s1110_s24, %s1111_s0  }
 0x20b PF: > { %p829_p1 = scmp.ge.s32.totalorder %s1100_s20, 2  ;;  %s550_s5 = sand.u32 1, %s1080_s15  }
 0x20c   : > { %p1489_p3 = scmp.ne.s32.totalorder %s1481_s30, 0  ;;  %s551_s27 = scalar_lea.sflag [#allocation4], %s550_s5 }
 0x20e   : > { %p819_p4 = pnand %p829_p1, %p1489_p3 }
 0x210   : > { %1071 = dma.done.wait (!%p819_p4), %s551_s27, 256  }
 0x211   : > { %1073 = vsyncadd (!%p819_p4), %s551_s27, 4294967040  ;;  %s1490_s28 = sadd.s32 4294967294, %s1100_s20  }
 0x212   : > { %s559_s6 = sand.u32 1, %s1490_s28  }
 0x213   : > { %s560_s8 = scalar_lea.sflag [#allocation9], %s559_s6 }
 0x214   : > { %1075 = dma.done.wait (!%p819_p4), %s560_s8, 1024  }
 0x215   : > { %1077 = vsyncadd (!%p819_p4), %s560_s8, 4294966272  ;;  %s27_s20 = sadd.s32 1, %s1100_s20   ;;  %s1491_s15 = smov %s1084_s16 }
 0x216   : > { %p24_p2 = scmp.ge.s32.totalorder %s27_s20, 6   ;;  %s1492_s16 = smov %s1088_s17 }
 0x217   : > { %s1493_s17 = smov %s1200_s29  ;;  %s1494_s18 = smov %s1096_s19 }
 0x218   : > { %s1495_s19 = smov %s1497_s23  ;;  %26 = sbr.rel (!%p24_p2) target bundleno = 12 (0xc), region = 118 }
 0x21f   :  { %574 = vsyncpa [#allocation3], 1 }
 0x220   :  { %576 = vsyncpa [#allocation3 + $0x1], 1 }
 0x221   :  { %577 = vsyncpa [#allocation6], 1 }
 0x222   :  { %579 = vsyncpa [#allocation6 + $0x1], 1 }
 0x223   :  { %580 = vsyncpa [#allocation4], 1 }
 0x224   :  { %582 = vsyncpa [#allocation4 + $0x1], 1 }
 0x225   :  { %583 = vsyncpa [#allocation9], 1 }
 0x226   :  { %585 = vsyncpa [#allocation9 + $0x1], 1 }

// kernel: _lambda_.16
= control target key start
LH: loop header
LB: loop body
LE: loop exit
PB: predicated region body
PF: predicated region fallthrough
CT: control target
= control target key end

     0   :  { %s1505_s0 = inlined_call_operand.hbm [shape: bf16[4,16,256], index: 0, kind: input, shape index: {}]   ;;  %s1506_s1 = inlined_call_operand.hbm [shape: bf16[4,256,128], index: 1, kind: input, shape index: {}]   ;;  %s1507_s2 = inlined_call_operand.hbm [shape: bf16[4,16,128], index: 2, kind: output, shape index: {0}]   ;;  %s1508_s3 = inlined_call_operand.hbm [shape: f32[4,1,16,1], index: 3, kind: output, shape index: {1}]   ;;  %s1509_s4 = inlined_call_operand.hbm [shape: f32[4,1,16,1], index: 4, kind: output, shape index: {2}]  }
   0x1   :  { %1513 = sst [smem:[#allocation15_spill]] %s1505_s0 }
   0x2   :  { %10 = vsyncpa [#allocation3], 0 }
   0x3   :  { %12 = vsyncpa [#allocation3 + $0x1], 0 }
   0x4   :  { %13 = vsyncpa [#allocation6], 0 }
   0x5   :  { %15 = vsyncpa [#allocation6 + $0x1], 0 }
   0x6   :  { %16 = vsyncpa [#allocation4], 0 }
   0x7   :  { %18 = vsyncpa [#allocation4 + $0x1], 0 }
   0x8   :  { %19 = vsyncpa [#allocation9], 0 }
   0x9   :  { %21 = vsyncpa [#allocation9 + $0x1], 0  ;;  %s1169_s15 = smov 0   ;;  %s1171_s16 = smov 0  }
   0xa   :  { %s1173_s17 = smov 0   ;;  %s1175_s18 = smov 0  }
   0xb   :  { %s1177_s19 = smov 0   ;;  %s1179_s20 = smov 0  }
   0xc LB: > { %s1200_s21 = sadd.s32 4294967295, %s1129_s20   ;;  %s1511_s22 = sadd.s32 4294967294, %s1129_s20   ;;  %s1129_s20 = sphi %s1179_s20, %s27_s20   ;;  %s1125_s19 = sphi %s1177_s19, %s1530_s19   ;;  %s1121_s18 = sphi %s1175_s18, %s1529_s18   ;;  %s1117_s17 = sphi %s1173_s17, %s1528_s17   ;;  %s1113_s16 = sphi %s1171_s16, %s1527_s16   ;;  %s1109_s15 = sphi %s1169_s15, %s1526_s15  }
   0xd   : > { %s39_s23 = sadd.s32 1, %s1125_s19  ;;  %s46_s24 = sadd.s32 1, %s1117_s17 }
   0xe   : > { %p41_p0 = scmp.ge.s32.totalorder %s39_s23, 4  ;;  %p53_p1 = scmp.ne.s32.totalorder %s1117_s17, %s1113_s16 }
   0xf   : > { %p54_p2 = scmp.eq.s32.totalorder %s1129_s20, 0  ;;  %p59_p3 = scmp.ne.s32.totalorder %s1113_s16, %s1109_s15 }
  0x10   : > { %s1532_s23 = smov (%p41_p0, %s39_s23), 0  ;;  %p60_p5 = scmp.eq.s32.totalorder %s1200_s21, 0 }
  0x11   : > { %p1212_p4 = por %p54_p2, %p53_p1  ;;  %s43_s26 = ssub.s32 %s1125_s19, %s1532_s23 }
  0x12   : > { %p113_p6 = scmp.eq.s32.totalorder %s1200_s21, 3  ;;  %p44_p7 = scmp.eq.s32.totalorder %s43_s26, 0 }
  0x13   : > { %p1220_p8 = por %p60_p5, %p59_p3  ;;  %p119_p10 = scmp.eq.s32.totalorder %s1511_s22, 3 }
  0x14   : > { %p1224_p9 = por %p113_p6, %p53_p1  ;;  %p846_p12 = scmp.lt.s32.totalorder %s1129_s20, 4 }
  0x15   : > { %s1515_s27 = scalar_select %p1220_p8, 1, 0 }
  0x16   : > { %s1516_s28 = scalar_select %p1224_p9, 1, 0 }
  0x17   : > { %s1231_s29 = scalar_select %p44_p7, %s1117_s17, %s46_s24  }
  0x18   : > { %p1233_p11 = por %p119_p10, %p59_p3  ;;  %s1239_s5 = sand.u32 1, %s1117_s17  }
  0x19   : > { %s742_s6 = sshll.u32 %s1239_s5, 4  ;;  %s785_s7 = sshll.u32 %s1125_s19, 8 }
  0x1a   : > { %s1517_s30 = scalar_select %p1233_p11, 1, 0 }
  0x1b   : > { %s1518_s0 = sld [smem:[#allocation15_spill]]  ;;  %s199_s11 = scalar_lea.vmem [#allocation2], %s742_s6 }
  0x1c   : > { %s206_s12 = sshll.u32 %s199_s11, 4  ;;  %p1252_p13 = pnand %p846_p12, %p1212_p4  ;;  %s1248_s12 = int_to_ptr.vmem [resolvable:$true] %s206_s12 }
  0x1d   : > { %s196_s14 = scalar_lea.sflag [#allocation3], %s1239_s5 }
  0x1e   : > { %p925_p2 = pneg %p1252_p13 }
  0x21   : > { %s1246_s10 = scalar_lea.hbm %s1518_s0, %s785_s7  ;;  %s928_s25 = scalar_lea.hbm %s1518_s0, 1024 }
  0x22   : > { %s923_s24 = scalar_lea.hbm %s1246_s10, 256  ;;  %p929_p4 = scmp.lt.u32.totalorder %s1246_s10, %s1518_s0 }
  0x23   : > { %p924_p1 = scmp.ne.s32.totalorder %s1246_s10, %s923_s24  ;;  %p930_p6 = scmp.lt.u32.totalorder %s928_s25, %s923_s24 }
  0x24   : > { %p932_p10 = scmp.lt.u32.totalorder %s923_s24, %s1246_s10 }
  0x25   : > { %p926_p3 = pnand %p925_p2, %p924_p1  ;;  %p931_p7 = por %p930_p6, %p929_p4 }
  0x27   : > { %p927_p5 = pneg %p926_p3  ;;  %p933_p12 = por %p932_p10, %p931_p7 }
  0x29   : > { %p934_p0 = pnand %p933_p12, %p927_p5 }
  0x2b   : > { %937 = shalt.err (!%p934_p0)
}
  0x2c   : > { %s938_s9 = scalar_lea.vmem %s1248_s12, 256  ;;  %s1131_s11 = smov [#allocation2]  }
  0x2d   : > { %p939_p1 = scmp.ne.s32.totalorder %s1248_s12, %s938_s9  ;;  %s943_s26 = sshll.u32 %s1131_s11, 4  ;;  %s944_s26 = int_to_ptr.vmem [resolvable:$false] %s943_s26 }
  0x2e   : > { %s945_s6 = scalar_lea.vmem %s944_s26, 512  ;;  %p946_p9 = scmp.lt.s32.totalorder %s1248_s12, %s944_s26 }
  0x2f   : > { %p941_p3 = pnand %p939_p1, %p925_p2  ;;  %p947_p4 = scmp.lt.s32.totalorder %s945_s6, %s938_s9 }
  0x31   : > { %p942_p11 = pneg %p941_p3  ;;  %p948_p6 = por %p947_p4, %p946_p9 }
  0x33   : > { %p949_p7 = pnand %p948_p6, %p942_p11 }
  0x35   : > { %952 = shalt.err (!%p949_p7)
}
  0x36   : > { %s1132_s24 = smov 128   ;;  %s1133_s25 = smov 8  }
  0x37   : > { %832 = dma.hbm_to_vmem [thread:$0]  (!%p1252_p13), %s1246_s10, 256, %s1248_s12, %s196_s14, %s1132_s24, %s1132_s24, %s1133_s25  }
  0x38   : > { %p236_p0 = scmp.lt.s32.totalorder %s1129_s20, 5  ;;  %s745_s7 = sshll.u32 %s1239_s5, 7 }
  0x39   : > { %s786_s8 = sshll.u32 %s1125_s19, 11  ;;  %p1520_p9 = scmp.ge.s32.totalorder %s1129_s20, 1 }
  0x3a   : > { %s1297_s6 = scalar_lea.hbm %s1506_s1, %s786_s8  ;;  %s220_s22 = scalar_lea.vmem [#allocation5], %s745_s7 }
  0x3b   : > { %p1290_p11 = pnand %p1520_p9, %p236_p0  ;;  %s228_s0 = sshll.u32 %s220_s22, 4  ;;  %s1299_s0 = int_to_ptr.vmem [resolvable:$true] %s228_s0 }
  0x3c   : > { %s217_s10 = scalar_lea.sflag [#allocation6], %s1239_s5  ;;  %s953_s12 = scalar_lea.hbm %s1297_s6, 2048 }
  0x3d   : > { %p954_p5 = scmp.ne.s32.totalorder %s1297_s6, %s953_s12  ;;  %s958_s25 = scalar_lea.hbm %s1506_s1, 8192 }
  0x3e   : > { %p959_p1 = scmp.lt.u32.totalorder %s1297_s6, %s1506_s1  ;;  %p960_p3 = scmp.lt.u32.totalorder %s958_s25, %s953_s12 }
  0x3f   : > { %p956_p10 = pnand %p954_p5, %p925_p2  ;;  %p962_p6 = scmp.lt.u32.totalorder %s953_s12, %s1297_s6 }
  0x40   : > { %p961_p4 = por %p960_p3, %p959_p1 }
  0x41   : > { %p957_p12 = pneg %p956_p10 }
  0x42   : > { %p963_p7 = por %p962_p6, %p961_p4 }
  0x44   : > { %p964_p0 = pnand %p963_p7, %p957_p12 }
  0x46   : > { %967 = shalt.err (!%p964_p0)
}
  0x47   : > { %s968_s22 = scalar_lea.vmem %s1299_s0, 2048  ;;  %s1134_s7 = smov [#allocation5]  }
  0x48   : > { %p969_p9 = scmp.ne.s32.totalorder %s1299_s0, %s968_s22  ;;  %s973_s26 = sshll.u32 %s1134_s7, 4  ;;  %s974_s26 = int_to_ptr.vmem [resolvable:$false] %s973_s26 }
  0x49   : > { %s975_s14 = scalar_lea.vmem %s974_s26, 4096  ;;  %p976_p8 = scmp.lt.s32.totalorder %s1299_s0, %s974_s26 }
  0x4a   : > { %p971_p5 = pnand %p969_p9, %p925_p2  ;;  %p977_p1 = scmp.lt.s32.totalorder %s975_s14, %s968_s22 }
  0x4c   : > { %p972_p10 = pneg %p971_p5  ;;  %p978_p3 = por %p977_p1, %p976_p8 }
  0x4e   : > { %p979_p4 = pnand %p978_p3, %p972_p10 }
  0x50   : > { %982 = shalt.err (!%p979_p4)
}
  0x51   : > { %s1135_s12 = smov 64   ;;  %s1136_s24 = smov 4  }
  0x52   : > { %835 = dma.hbm_to_vmem [thread:$0]  (!%p1252_p13), %s1297_s6, 2048, %s1299_s0, %s217_s10, %s1135_s12, %s1135_s12, %s1136_s24  }
  0x53   : > { %240 = sbr.rel (%p1290_p11) target bundleno = 526 (0x20e), region = 28  ;;  %s1330_s25 = sand.u32 (!%p1290_p11), 1, %s1113_s16  }
  0x54   : > { %s1333_s8 = sshll.u32 (!%p1290_p11), %s1330_s25, 4  ;;  %s243_s11 = scalar_lea.sflag (!%p1290_p11), [#allocation3], %s1330_s25 }
  0x55   : > { %s246_s22 = scalar_lea.vmem (!%p1290_p11), [#allocation2], %s1333_s8  ;;  %p1522_p8 = scmp.ne.s32.totalorder (!%p1290_p11), %s1515_s27, 0 }
  0x5a   : > { %1092 = dma.done.wait (%p1522_p8), %s243_s11, 256  }
  0x5b   : > { %1094 = vsyncadd (%p1522_p8), %s243_s11, 4294967040  ;;  %s750_s0 = sshll.u32 %s1330_s25, 7  ;;  %s252_s5 = scalar_lea.sflag [#allocation6], %s1330_s25 }
  0x5c   : > { %s1343_s13 = scalar_lea.vmem [#allocation5], %s750_s0 }
  0x5d   : > { %1096 = dma.done.wait (%p1522_p8), %s252_s5, 2048  }
  0x5e   : > { %1098 = vsyncadd (%p1522_p8), %s252_s5, 4294965248  ;;  %v904_v0 = vld [vmem:[%s1343_s13 + $0x40] sm:$0xff]   ;;  %v906_v2 = vld [vmem:[%s1343_s13 + $0x48] sm:$0xff]   ;;  %s751_s27 = sshll.u32 %s1330_s25, 3  ;;  %s789_s6 = sshll.u32 %s1121_s18, 7 }
  0x5f   : > { %v905_v1 = vld [vmem:[%s1343_s13] sm:$0xff]   ;;  %797 = vmatprep.subr.bf16.mxu0 %v904_v0  ;;  %v907_v3 = vld [vmem:[%s1343_s13 + $0x8] sm:$0xff]   ;;  %v908_v4 = vld [vmem:[%s1343_s13 + $0x50] sm:$0xff]   ;;  %s280_s9 = scalar_lea.vmem [#allocation7], %s751_s27  ;;  %s1374_s14 = scalar_lea.hbm %s1507_s2, %s789_s6 }
  0x60   : > { %798 = vmatpush3.bf16.msra.mxu0 %v905_v1  ;;  %v909_v5 = vld [vmem:[%s1343_s13 + $0x10] sm:$0xff]   ;;  %v910_v6 = vld [vmem:[%s1343_s13 + $0x58] sm:$0xff]   ;;  %v912_v8 = vld [vmem:[%s1343_s13 + $0x60] sm:$0xff]   ;;  %s527_s10 = sshll.u32 %s280_s9, 4  ;;  %s503_s12 = scalar_lea.sflag [#allocation4], %s1330_s25  ;;  %s1376_s10 = int_to_ptr.vmem [resolvable:$true] %s527_s10 }
  0x61   : > { %799 = vmatprep.subr.bf16.mxu0 %v906_v2  ;;  %v911_v7 = vld [vmem:[%s1343_s13 + $0x18] sm:$0xff]   ;;  %v913_v9 = vld [vmem:[%s1343_s13 + $0x20] sm:$0xff]   ;;  %v914_v10 = vld [vmem:[%s1343_s13 + $0x68] sm:$0xff]   ;;  %s983_s24 = scalar_lea.vmem %s1376_s10, 128  ;;  %p1523_p2 = scmp.ne.s32.totalorder %s1516_s28, 0 }
  0x62   : > { %v922_v11 = vld [vmem:[%s246_s22 + $0x4] ss:$8 sps:$4 sm:$0xff]   ;;  %v920_v17 = vld [vmem:[%s246_s22] ss:$8 sps:$4 sm:$0xff]   ;;  %p984_p13 = scmp.ne.s32.totalorder %s1376_s10, %s983_s24  ;;  %s1137_s11 = smov [#allocation7]  }
  0x63   : > { %v915_v12 = vld [vmem:[%s1343_s13 + $0x28] sm:$0xff]   ;;  %468 = vmatprep.mubr.bf16.mxu0 %v922_v11  ;;  %v916_v13 = vld [vmem:[%s1343_s13 + $0x70] sm:$0xff]   ;;  %v918_v15 = vld [vmem:[%s1343_s13 + $0x78] sm:$0xff]   ;;  %s987_s22 = sshll.u32 %s1137_s11, 4  ;;  %s988_s22 = int_to_ptr.vmem [resolvable:$false] %s987_s22 }
  0x64   : > { %800 = vmatpush3.bf16.msra.mxu0 %v907_v3  ;;  %v917_v14 = vld [vmem:[%s1343_s13 + $0x30] sm:$0xff]   ;;  %v919_v16 = vld [vmem:[%s1343_s13 + $0x38] sm:$0xff]   ;;  %p985_p11 = pnand %p984_p13, %p1523_p2  ;;  %s989_s0 = scalar_lea.vmem %s988_s22, 256 }
  0x65   : > { %801 = vmatprep.subr.bf16.mxu0 %v908_v4  ;;  %p990_p6 = scmp.lt.s32.totalorder %s1376_s10, %s988_s22  ;;  %p991_p7 = scmp.lt.s32.totalorder %s989_s0, %s983_s24 }
  0x66   : > { %p986_p12 = pneg %p985_p11 }
  0x67   : > { %p992_p0 = por %p991_p7, %p990_p6 }
  0x68   : > { %802 = vmatpush3.bf16.msra.mxu0 %v909_v5 }
  0x69   : > { %803 = vmatprep.subr.bf16.mxu0 %v910_v6  ;;  %p993_p9 = pnand %p992_p0, %p986_p12 }
  0x6c   : > { %804 = vmatpush3.bf16.msra.mxu0 %v911_v7 }
  0x6d   : > { %805 = vmatprep.subr.bf16.mxu0 %v912_v8 }
  0x70   : > { %806 = vmatpush3.bf16.msra.mxu0 %v913_v9 }
  0x71   : > { %807 = vmatprep.subr.bf16.mxu0 %v914_v10 }
  0x74   : > { %808 = vmatpush3.bf16.msra.mxu0 %v915_v12 }
  0x75   : > { %809 = vmatprep.subr.bf16.mxu0 %v916_v13 }
  0x78   : > { %810 = vmatpush3.bf16.msra.mxu0 %v917_v14 }
  0x79   : > { %811 = vmatprep.subr.bf16.mxu0 %v918_v15 }
  0x7c   : > { %812 = vmatpush3.bf16.msra.mxu0 %v919_v16 }
  0x7f   : > { %469 = vmatmul.mubr.bf16.vlgmr.msra.gmra.mrb[0].mxu0 %v920_v17 }
 0x152   : > { %v813_v18 = vpop.f32.mrb[0].mxu0 }
 0x153   : > { %v814_v19 = vpop.f32.mrb[1].mxu0 }
 0x154   : > { %v815_v20 = vadd.f32 %v814_v19, %v813_v18  ;;  %v816_v21 = vpop.f32.mrb[2].mxu0 }
 0x155   : > { %v817_v22 = vpop.f32.mrb[3].mxu0 }
 0x156   : > { %v818_v23 = vadd.f32 %v817_v22, %v816_v21  ;;  %477 = vadd.xlane.f32.xlu0 %v815_v20  ;;  %v484_v24 = vmul.f32 %v815_v20, %v815_v20 }
 0x158   : > { %v795_v25 = vpack.c.bf16 %v818_v23, %v815_v20  ;;  %486 = vadd.xlane.f32.xlu1 %v484_v24  ;;  %v485_v26 = vmul.f32 %v818_v23, %v818_v23 }
 0x15a   : > { %796 = vst [vmem:[%s280_s9] sm:$0xff] %v795_v25   ;;  %479 = vadd.xlane.f32.xlu0 %v818_v23 }
 0x15c   : > { %488 = vadd.xlane.f32.xlu1 %v485_v26 }
 0x15d   : > { %996 = shalt.err (!%p993_p9)
}
 0x15e   : > { %s997_s5 = scalar_lea.hbm %s1374_s14, 128  ;;  %s1001_s9 = scalar_lea.hbm %s1507_s2, 512 }
 0x15f   : > { %p998_p5 = scmp.ne.s32.totalorder %s1374_s14, %s997_s5  ;;  %p1002_p3 = scmp.lt.u32.totalorder %s1374_s14, %s1507_s2 }
 0x160   : > { %p1003_p4 = scmp.lt.u32.totalorder %s1001_s9, %s997_s5  ;;  %p1005_p13 = scmp.lt.u32.totalorder %s997_s5, %s1374_s14 }
 0x161   : > { %p999_p10 = pnand %p998_p5, %p1523_p2 }
 0x162   : > { %p1004_p8 = por %p1003_p4, %p1002_p3 }
 0x163   : > { %p1000_p1 = pneg %p999_p10 }
 0x164   : > { %p1006_p11 = por %p1005_p13, %p1004_p8 }
 0x166   : > { %p1007_p12 = pnand %p1006_p11, %p1000_p1 }
 0x168   : > { %1010 = shalt.err (!%p1007_p12)
}
 0x169   : > { %s1138_s26 = smov 64   ;;  %s1139_s24 = smov 4   ;;  %vm481_vm0 = vcmask 7168  }
 0x16a   : > { %823 = dma.vmem_to_hbm [thread:$0]  (%p1523_p2), %s1376_s10, 128, %s1374_s14, %s503_s12, %s1138_s26, %s1138_s26, %s1139_s24  }
 0x16b   : > { %s287_s11 = scalar_lea.vmem [#allocation8], %s1333_s8  ;;  %s507_s0 = sand.u32 1, %s1200_s21  }
 0x16c   : > { %s545_s22 = sshll.u32 %s287_s11, 4  ;;  %s790_s5 = sshll.u32 %s1121_s18, 8  ;;  %s1405_s22 = int_to_ptr.vmem [resolvable:$true] %s545_s22 }
 0x16d   : > { %s1409_s13 = scalar_lea.vmem [#allocation10], %s1333_s8  ;;  %s1415_s14 = scalar_lea.hbm %s1508_s3, %s790_s5 }
 0x16e   : > { %s563_s27 = sshll.u32 %s1409_s13, 4  ;;  %s1425_s8 = scalar_lea.hbm %s1509_s4, %s790_s5  ;;  %s1419_s27 = int_to_ptr.vmem [resolvable:$true] %s563_s27 }
 0x16f   : > { %s1427_s12 = scalar_lea.sflag [#allocation9], %s507_s0  ;;  %s1011_s9 = scalar_lea.vmem %s1405_s22, 256 }
 0x170   : > { %p1012_p6 = scmp.ne.s32.totalorder %s1405_s22, %s1011_s9  ;;  %s1140_s6 = smov [#allocation8]  }
 0x171   : > { %s1015_s7 = sshll.u32 %s1140_s6, 4  ;;  %s1016_s7 = int_to_ptr.vmem [resolvable:$false] %s1015_s7 }
 0x172   : > { %p1013_p7 = pnand %p1012_p6, %p1523_p2  ;;  %s1017_s26 = scalar_lea.vmem %s1016_s7, 512 }
 0x173   : > { %p1018_p9 = scmp.lt.s32.totalorder %s1405_s22, %s1016_s7  ;;  %p1019_p5 = scmp.lt.s32.totalorder %s1017_s26, %s1011_s9 }
 0x174   : > { %p1014_p0 = pneg %p1013_p7 }
 0x175   : > { %p1020_p10 = por %p1019_p5, %p1018_p9 }
 0x177   : > { %p1021_p1 = pnand %p1020_p10, %p1014_p0 }
 0x1e3   : > { %v478_v27 = vpop.xlane.xlu0 %477 }
 0x1e4   : > { %482 = vst.msk [vmem:[%s287_s11] sm:$0xff] %vm481_vm0, %v478_v27 }
 0x1e5   : > { %v487_v28 = vpop.xlane.xlu1 %486 }
 0x1e6   : > { %490 = vst.msk [vmem:[%s1409_s13] sm:$0xff] %vm481_vm0, %v487_v28 }
 0x1e7   : > { %v480_v29 = vpop.xlane.xlu0 %479 }
 0x1e8   : > { %483 = vst.msk [vmem:[%s287_s11 + $0x8] sm:$0xff] %vm481_vm0, %v480_v29 }
 0x1e9   : > { %v489_v30 = vpop.xlane.xlu1 %488 }
 0x1ea   : > { %1024 = shalt.err (!%p1021_p1)
}
 0x1eb   : > { %s1025_s24 = scalar_lea.hbm %s1415_s14, 256  ;;  %s1029_s5 = scalar_lea.hbm %s1508_s3, 1024 }
 0x1ec   : > { %p1026_p3 = scmp.ne.s32.totalorder %s1415_s14, %s1025_s24  ;;  %p1030_p13 = scmp.lt.u32.totalorder %s1415_s14, %s1508_s3 }
 0x1ed   : > { %p1031_p11 = scmp.lt.u32.totalorder %s1029_s5, %s1025_s24  ;;  %p1033_p6 = scmp.lt.u32.totalorder %s1025_s24, %s1415_s14 }
 0x1ee   : > { %p1027_p4 = pnand %p1026_p3, %p1523_p2 }
 0x1ef   : > { %p1032_p12 = por %p1031_p11, %p1030_p13 }
 0x1f0   : > { %p1028_p8 = pneg %p1027_p4 }
 0x1f1   : > { %p1034_p7 = por %p1033_p6, %p1032_p12 }
 0x1f3   : > { %p1035_p0 = pnand %p1034_p7, %p1028_p8 }
 0x1f5   : > { %1038 = shalt.err (!%p1035_p0)
}
 0x1f6   : > { %s1141_s18 = smov 128   ;;  %s1142_s21 = smov 8   ;;  %491 = vst.msk [vmem:[%s1409_s13 + $0x8] sm:$0xff] %vm481_vm0, %v489_v30 }
 0x1f7   : > { %824 = dma.vmem_to_hbm [thread:$0]  (%p1523_p2), %s1405_s22, 256, %s1415_s14, %s1427_s12, %s1141_s18, %s1141_s18, %s1142_s21  }
 0x1f8   : > { %s1039_s9 = scalar_lea.vmem %s1419_s27, 256  ;;  %s1143_s6 = smov [#allocation10]  }
 0x1f9   : > { %p1040_p9 = scmp.ne.s32.totalorder %s1419_s27, %s1039_s9  ;;  %s1043_s7 = sshll.u32 %s1143_s6, 4  ;;  %s1044_s7 = int_to_ptr.vmem [resolvable:$false] %s1043_s7 }
 0x1fa   : > { %s1045_s26 = scalar_lea.vmem %s1044_s7, 512  ;;  %p1046_p1 = scmp.lt.s32.totalorder %s1419_s27, %s1044_s7 }
 0x1fb   : > { %p1041_p5 = pnand %p1040_p9, %p1523_p2  ;;  %p1047_p3 = scmp.lt.s32.totalorder %s1045_s26, %s1039_s9 }
 0x1fd   : > { %p1042_p10 = pneg %p1041_p5  ;;  %p1048_p4 = por %p1047_p3, %p1046_p1 }
 0x1ff   : > { %p1049_p8 = pnand %p1048_p4, %p1042_p10 }
 0x201   : > { %1052 = shalt.err (!%p1049_p8)
}
 0x202   : > { %s1053_s22 = scalar_lea.hbm %s1425_s8, 256  ;;  %s1057_s24 = scalar_lea.hbm %s1509_s4, 1024 }
 0x203   : > { %p1054_p13 = scmp.ne.s32.totalorder %s1425_s8, %s1053_s22  ;;  %p1058_p6 = scmp.lt.u32.totalorder %s1425_s8, %s1509_s4 }
 0x204   : > { %p1059_p7 = scmp.lt.u32.totalorder %s1057_s24, %s1053_s22  ;;  %p1061_p9 = scmp.lt.u32.totalorder %s1053_s22, %s1425_s8 }
 0x205   : > { %p1055_p11 = pnand %p1054_p13, %p1523_p2 }
 0x206   : > { %p1060_p0 = por %p1059_p7, %p1058_p6 }
 0x207   : > { %p1056_p12 = pneg %p1055_p11 }
 0x208   : > { %p1062_p5 = por %p1061_p9, %p1060_p0 }
 0x20a   : > { %p1063_p10 = pnand %p1062_p5, %p1056_p12 }
 0x20c   : > { %1066 = shalt.err (!%p1063_p10)
}
 0x20d   : > { %825 = dma.vmem_to_hbm [thread:$0]  (%p1523_p2), %s1419_s27, 256, %s1425_s8, %s1427_s12, %s1141_s18, %s1141_s18, %s1142_s21  }
 0x20e PF: > { %p847_p1 = scmp.ge.s32.totalorder %s1129_s20, 2  ;;  %s578_s5 = sand.u32 1, %s1109_s15  }
 0x20f   : > { %p1524_p3 = scmp.ne.s32.totalorder %s1517_s30, 0  ;;  %s579_s25 = scalar_lea.sflag [#allocation4], %s578_s5 }
 0x211   : > { %p837_p4 = pnand %p847_p1, %p1524_p3 }
 0x213   : > { %1100 = dma.done.wait (!%p837_p4), %s579_s25, 128  }
 0x214   : > { %1102 = vsyncadd (!%p837_p4), %s579_s25, 4294967168  ;;  %s1525_s28 = sadd.s32 4294967294, %s1129_s20  }
 0x215   : > { %s587_s10 = sand.u32 1, %s1525_s28  }
 0x216   : > { %s588_s9 = scalar_lea.sflag [#allocation9], %s587_s10 }
 0x217   : > { %1104 = dma.done.wait (!%p837_p4), %s588_s9, 512  }
 0x218   : > { %1106 = vsyncadd (!%p837_p4), %s588_s9, 4294966784  ;;  %s27_s20 = sadd.s32 1, %s1129_s20   ;;  %s1526_s15 = smov %s1113_s16 }
 0x219   : > { %p24_p2 = scmp.ge.s32.totalorder %s27_s20, 6   ;;  %s1527_s16 = smov %s1117_s17 }
 0x21a   : > { %s1528_s17 = smov %s1231_s29  ;;  %s1529_s18 = smov %s1125_s19 }
 0x21b   : > { %s1530_s19 = smov %s1532_s23  ;;  %26 = sbr.rel (!%p24_p2) target bundleno = 12 (0xc), region = 118 }
 0x222   :  { %602 = vsyncpa [#allocation3], 1 }
 0x223   :  { %604 = vsyncpa [#allocation3 + $0x1], 1 }
 0x224   :  { %605 = vsyncpa [#allocation6], 1 }
 0x225   :  { %607 = vsyncpa [#allocation6 + $0x1], 1 }
 0x226   :  { %608 = vsyncpa [#allocation4], 1 }
 0x227   :  { %610 = vsyncpa [#allocation4 + $0x1], 1 }
 0x228   :  { %611 = vsyncpa [#allocation9], 1 }
 0x229   :  { %613 = vsyncpa [#allocation9 + $0x1], 1 }

// kernel: _lambda_.17
= control target key start
LH: loop header
LB: loop body
LE: loop exit
PB: predicated region body
PF: predicated region fallthrough
CT: control target
= control target key end

     0   :  { %10 = vsyncpa [#allocation3], 0  ;;  %s1325_s0 = inlined_call_operand.hbm [shape: bf16[4,8,128], index: 0, kind: input, shape index: {}]   ;;  %s1326_s1 = inlined_call_operand.hbm [shape: bf16[4,128,128], index: 1, kind: input, shape index: {}]   ;;  %s1327_s2 = inlined_call_operand.hbm [shape: bf16[4,8,128], index: 2, kind: output, shape index: {0}]   ;;  %s1328_s3 = inlined_call_operand.hbm [shape: f32[4,1,8,1], index: 3, kind: output, shape index: {1}]   ;;  %s1329_s4 = inlined_call_operand.hbm [shape: f32[4,1,8,1], index: 4, kind: output, shape index: {2}]  }
   0x1   :  { %12 = vsyncpa [#allocation3 + $0x1], 0 }
   0x2   :  { %13 = vsyncpa [#allocation6], 0 }
   0x3   :  { %15 = vsyncpa [#allocation6 + $0x1], 0 }
   0x4   :  { %16 = vsyncpa [#allocation4], 0 }
   0x5   :  { %18 = vsyncpa [#allocation4 + $0x1], 0 }
   0x6   :  { %19 = vsyncpa [#allocation9], 0 }
   0x7   :  { %21 = vsyncpa [#allocation9 + $0x1], 0  ;;  %s1020_s15 = smov 0   ;;  %s1022_s16 = smov 0  }
   0x8   :  { %s1024_s17 = smov 0   ;;  %s1026_s18 = smov 0  }
   0x9   :  { %s1028_s19 = smov 0   ;;  %s1030_s20 = smov 0  }
   0xa LB: > { %s1051_s21 = sadd.s32 4294967295, %s984_s20   ;;  %s1331_s22 = sadd.s32 4294967294, %s984_s20   ;;  %s984_s20 = sphi %s1030_s20, %s27_s20   ;;  %s980_s19 = sphi %s1028_s19, %s1349_s19   ;;  %s976_s18 = sphi %s1026_s18, %s1348_s18   ;;  %s972_s17 = sphi %s1024_s17, %s1347_s17   ;;  %s968_s16 = sphi %s1022_s16, %s1346_s16   ;;  %s964_s15 = sphi %s1020_s15, %s1345_s15  }
   0xb   : > { %s39_s23 = sadd.s32 1, %s980_s19  ;;  %s46_s24 = sadd.s32 1, %s972_s17 }
   0xc   : > { %p41_p0 = scmp.ge.s32.totalorder %s39_s23, 4  ;;  %p53_p1 = scmp.ne.s32.totalorder %s972_s17, %s968_s16 }
   0xd   : > { %p54_p2 = scmp.eq.s32.totalorder %s984_s20, 0  ;;  %p59_p3 = scmp.ne.s32.totalorder %s968_s16, %s964_s15 }
   0xe   : > { %s1351_s23 = smov (%p41_p0, %s39_s23), 0  ;;  %p60_p5 = scmp.eq.s32.totalorder %s1051_s21, 0 }
   0xf   : > { %p1063_p4 = por %p54_p2, %p53_p1  ;;  %s43_s26 = ssub.s32 %s980_s19, %s1351_s23 }
  0x10   : > { %p113_p6 = scmp.eq.s32.totalorder %s1051_s21, 3  ;;  %p44_p7 = scmp.eq.s32.totalorder %s43_s26, 0 }
  0x11   : > { %p1071_p8 = por %p60_p5, %p59_p3  ;;  %p119_p10 = scmp.eq.s32.totalorder %s1331_s22, 3 }
  0x12   : > { %p1075_p9 = por %p113_p6, %p53_p1  ;;  %p716_p12 = scmp.lt.s32.totalorder %s984_s20, 4 }
  0x13   : > { %s1334_s27 = scalar_select %p1071_p8, 1, 0 }
  0x14   : > { %s1335_s28 = scalar_select %p1075_p9, 1, 0 }
  0x15   : > { %s1082_s29 = scalar_select %p44_p7, %s972_s17, %s46_s24  }
  0x16   : > { %p1084_p11 = por %p119_p10, %p59_p3  ;;  %s1090_s5 = sand.u32 1, %s972_s17  }
  0x17   : > { %s632_s6 = sshll.u32 %s1090_s5, 2  ;;  %s633_s7 = sshll.u32 %s980_s19, 6 }
  0x18   : > { %s1336_s30 = scalar_select %p1084_p11, 1, 0 }
  0x19   : > { %s1097_s10 = scalar_lea.hbm %s1325_s0, %s633_s7  ;;  %s199_s11 = scalar_lea.vmem [#allocation2], %s632_s6 }
  0x1a   : > { %s206_s12 = sshll.u32 %s199_s11, 4  ;;  %p1103_p13 = pnand %p716_p12, %p1063_p4  ;;  %s1099_s12 = int_to_ptr.vmem [resolvable:$true] %s206_s12 }
  0x1b   : > { %s196_s14 = scalar_lea.sflag [#allocation3], %s1090_s5  ;;  %s778_s24 = scalar_lea.hbm %s1097_s10, 64 }
  0x1c   : > { %p779_p2 = scmp.ne.s32.totalorder %s1097_s10, %s778_s24  ;;  %p780_p3 = pneg %p1103_p13 }
  0x1d   : > { %s783_s25 = scalar_lea.hbm %s1325_s0, 256  ;;  %p784_p4 = scmp.lt.u32.totalorder %s1097_s10, %s1325_s0 }
  0x1e   : > { %p781_p5 = pnand %p780_p3, %p779_p2  ;;  %p785_p7 = scmp.lt.u32.totalorder %s783_s25, %s778_s24 }
  0x1f   : > { %p787_p12 = scmp.lt.u32.totalorder %s778_s24, %s1097_s10 }
  0x20   : > { %p782_p6 = pneg %p781_p5  ;;  %p786_p10 = por %p785_p7, %p784_p4 }
  0x22   : > { %p788_p0 = por %p787_p12, %p786_p10 }
  0x24   : > { %p789_p1 = pnand %p788_p0, %p782_p6 }
  0x26   : > { %792 = shalt.err (!%p789_p1)
}
  0x27   : > { %s793_s9 = scalar_lea.vmem %s1099_s12, 64  ;;  %s986_s11 = smov [#allocation2]  }
  0x28   : > { %p794_p2 = scmp.ne.s32.totalorder %s1099_s12, %s793_s9  ;;  %s798_s26 = sshll.u32 %s986_s11, 4  ;;  %s799_s26 = int_to_ptr.vmem [resolvable:$false] %s798_s26 }
  0x29   : > { %s800_s6 = scalar_lea.vmem %s799_s26, 128  ;;  %p801_p9 = scmp.lt.s32.totalorder %s1099_s12, %s799_s26 }
  0x2a   : > { %p796_p5 = pnand %p794_p2, %p780_p3  ;;  %p802_p4 = scmp.lt.s32.totalorder %s800_s6, %s793_s9 }
  0x2c   : > { %p797_p11 = pneg %p796_p5  ;;  %p803_p7 = por %p802_p4, %p801_p9 }
  0x2e   : > { %p804_p10 = pnand %p803_p7, %p797_p11 }
  0x30   : > { %807 = shalt.err (!%p804_p10)
}
  0x31   : > { %702 = dma.hbm_to_vmem [thread:$0]  (!%p1103_p13), %s1097_s10, 64, %s1099_s12, %s196_s14  }
  0x32   : > { %p1338_p0 = scmp.lt.s32.totalorder %s984_s20, 5  ;;  %p1339_p1 = scmp.ge.s32.totalorder %s984_s20, 1 }
  0x33   : > { %s634_s25 = sshll.u32 %s1090_s5, 6  ;;  %s659_s7 = sshll.u32 %s980_s19, 10 }
  0x34   : > { %p1139_p6 = pnand %p1339_p1, %p1338_p0  ;;  %s1148_s11 = scalar_lea.hbm %s1326_s1, %s659_s7 }
  0x35   : > { %s217_s26 = scalar_lea.vmem [#allocation5], %s634_s25  ;;  %s214_s10 = scalar_lea.sflag [#allocation6], %s1090_s5 }
  0x36   : > { %s225_s6 = sshll.u32 %s217_s26, 4  ;;  %s808_s12 = scalar_lea.hbm %s1148_s11, 1024  ;;  %s1150_s6 = int_to_ptr.vmem [resolvable:$true] %s225_s6 }
  0x37   : > { %p809_p9 = scmp.ne.s32.totalorder %s1148_s11, %s808_s12  ;;  %s813_s7 = scalar_lea.hbm %s1326_s1, 4096 }
  0x38   : > { %p814_p2 = scmp.lt.u32.totalorder %s1148_s11, %s1326_s1  ;;  %p815_p5 = scmp.lt.u32.totalorder %s813_s7, %s808_s12 }
  0x39   : > { %p811_p11 = pnand %p809_p9, %p780_p3  ;;  %p817_p7 = scmp.lt.u32.totalorder %s808_s12, %s1148_s11 }
  0x3a   : > { %p816_p4 = por %p815_p5, %p814_p2 }
  0x3b   : > { %p812_p12 = pneg %p811_p11 }
  0x3c   : > { %p818_p10 = por %p817_p7, %p816_p4 }
  0x3e   : > { %p819_p0 = pnand %p818_p10, %p812_p12 }
  0x40   : > { %822 = shalt.err (!%p819_p0)
}
  0x41   : > { %s823_s25 = scalar_lea.vmem %s1150_s6, 1024  ;;  %s987_s22 = smov [#allocation5]  }
  0x42   : > { %p824_p1 = scmp.ne.s32.totalorder %s1150_s6, %s823_s25  ;;  %s828_s26 = sshll.u32 %s987_s22, 4  ;;  %s829_s26 = int_to_ptr.vmem [resolvable:$false] %s828_s26 }
  0x43   : > { %s830_s14 = scalar_lea.vmem %s829_s26, 2048  ;;  %p831_p8 = scmp.lt.s32.totalorder %s1150_s6, %s829_s26 }
  0x44   : > { %p826_p9 = pnand %p824_p1, %p780_p3  ;;  %p832_p2 = scmp.lt.s32.totalorder %s830_s14, %s823_s25 }
  0x46   : > { %p827_p11 = pneg %p826_p9  ;;  %p833_p5 = por %p832_p2, %p831_p8 }
  0x48   : > { %p834_p4 = pnand %p833_p5, %p827_p11 }
  0x4a   : > { %837 = shalt.err (!%p834_p4)
}
  0x4b   : > { %s988_s12 = smov 64   ;;  %s989_s7 = smov 4  }
  0x4c   : > { %705 = dma.hbm_to_vmem [thread:$0]  (!%p1103_p13), %s1148_s11, 1024, %s1150_s6, %s214_s10, %s988_s12, %s988_s12, %s989_s7  }
  0x4d   : > { %237 = sbr.rel (%p1139_p6) target bundleno = 512 (0x200), region = 28  ;;  %s1181_s8 = sand.u32 (!%p1139_p6), 1, %s968_s16  }
  0x4e   : > { %s638_s9 = sshll.u32 (!%p1139_p6), %s1181_s8, 2  ;;  %s240_s25 = scalar_lea.sflag (!%p1139_p6), [#allocation3], %s1181_s8 }
  0x4f   : > { %s1187_s22 = scalar_lea.vmem (!%p1139_p6), [#allocation2], %s638_s9  ;;  %p1341_p8 = scmp.ne.s32.totalorder (!%p1139_p6), %s1334_s27, 0 }
  0x54   : > { %947 = dma.done.wait (%p1341_p8), %s240_s25, 64  }
  0x55   : > { %949 = vsyncadd (%p1341_p8), %s240_s25, 4294967232  ;;  %s639_s5 = sshll.u32 %s1181_s8, 6  ;;  %s249_s13 = scalar_lea.sflag [#allocation6], %s1181_s8 }
  0x56   : > { %s252_s24 = scalar_lea.vmem [#allocation5], %s639_s5 }
  0x57   : > { %951 = dma.done.wait (%p1341_p8), %s249_s13, 1024  }
  0x58   : > { %953 = vsyncadd (%p1341_p8), %s249_s13, 4294966272  ;;  %v990_v0 = vmov 0.0   ;;  %vm991_vm0 = vmmov 0   ;;  %v770_v1 = vld [vmem:[%s252_s24] sm:$0xff]   ;;  %v771_v2 = vld [vmem:[%s252_s24 + $0x8] sm:$0xff]   ;;  %s277_s27 = scalar_lea.vmem [#allocation7], %s638_s9 }
  0x59   : > { %669 = vmatprep.subr.bf16.mxu0 %v990_v0  ;;  %685 = vmatprep.mubr.msk.bf16.mxu0 %vm991_vm0, %v990_v0  ;;  %v772_v3 = vld [vmem:[%s252_s24 + $0x10] sm:$0xff]   ;;  %v773_v4 = vld [vmem:[%s252_s24 + $0x18] sm:$0xff]   ;;  %v774_v5 = vld [vmem:[%s252_s24 + $0x20] sm:$0xff]   ;;  %s654_s11 = sshll.u32 %s976_s18, 6  ;;  %s433_s6 = sshll.u32 %s277_s27, 4  ;;  %s434_s6 = int_to_ptr.vmem [resolvable:$true] %s433_s6 }
  0x5a   : > { %670 = vmatpush3.bf16.msra.mxu0 %v770_v1  ;;  %v775_v6 = vld [vmem:[%s252_s24 + $0x28] sm:$0xff]   ;;  %v776_v7 = vld [vmem:[%s252_s24 + $0x30] sm:$0xff]   ;;  %v777_v8 = vld [vmem:[%s252_s24 + $0x38] sm:$0xff]   ;;  %s1206_s14 = scalar_lea.hbm %s1327_s2, %s654_s11  ;;  %s409_s12 = scalar_lea.sflag [#allocation4], %s1181_s8 }
  0x5b   : > { %671 = vmatprep.subr.bf16.mxu0 %v990_v0  ;;  %v293_v9 = vld [vmem:[%s1187_s22] sm:$0xf]  ;;  %s838_s7 = scalar_lea.vmem %s434_s6, 64  ;;  %p1342_p3 = scmp.ne.s32.totalorder %s1335_s28, 0 }
  0x5c   : > { %p839_p13 = scmp.ne.s32.totalorder %s434_s6, %s838_s7  ;;  %s992_s25 = smov [#allocation7]  }
  0x5d   : > { %s842_s22 = sshll.u32 %s992_s25, 4  ;;  %s843_s22 = int_to_ptr.vmem [resolvable:$false] %s842_s22 }
  0x5e   : > { %672 = vmatpush3.bf16.msra.mxu0 %v771_v2  ;;  %p840_p6 = pnand %p839_p13, %p1342_p3  ;;  %s844_s9 = scalar_lea.vmem %s843_s22, 128 }
  0x5f   : > { %673 = vmatprep.subr.bf16.mxu0 %v990_v0  ;;  %p845_p7 = scmp.lt.s32.totalorder %s434_s6, %s843_s22  ;;  %p846_p10 = scmp.lt.s32.totalorder %s844_s9, %s838_s7 }
  0x60   : > { %p841_p12 = pneg %p840_p6 }
  0x61   : > { %p847_p0 = por %p846_p10, %p845_p7 }
  0x62   : > { %674 = vmatpush3.bf16.msra.mxu0 %v772_v3 }
  0x63   : > { %675 = vmatprep.subr.bf16.mxu0 %v990_v0  ;;  %p848_p1 = pnand %p847_p0, %p841_p12 }
  0x66   : > { %676 = vmatpush3.bf16.msra.mxu0 %v773_v4 }
  0x67   : > { %677 = vmatprep.subr.bf16.mxu0 %v990_v0 }
  0x6a   : > { %678 = vmatpush3.bf16.msra.mxu0 %v774_v5 }
  0x6b   : > { %679 = vmatprep.subr.bf16.mxu0 %v990_v0 }
  0x6e   : > { %680 = vmatpush3.bf16.msra.mxu0 %v775_v6 }
  0x6f   : > { %681 = vmatprep.subr.bf16.mxu0 %v990_v0 }
  0x72   : > { %682 = vmatpush3.bf16.msra.mxu0 %v776_v7 }
  0x73   : > { %683 = vmatprep.subr.bf16.mxu0 %v990_v0 }
  0x76   : > { %684 = vmatpush3.bf16.msra.mxu0 %v777_v8 }
  0x79   : > { %686 = vmatmul.mubr.bf16.vlgmr.msra.gmra.mrb[0].mxu0 %v293_v9 }
 0x14c   : > { %v392_v10 = vpop.f32.mrb[0].mxu0 }
 0x14d   : > { %v406_v11 = vpack.c.bf16 %v392_v10, %v392_v10  ;;  %398 = vadd.xlane.f32.xlu0 %v392_v10  ;;  %v687_v12 = vpop.f32.mrb[1].mxu0  ;;  %v402_v15 = vmul.f32 %v392_v10, %v392_v10 }
 0x14e   : > { %v395_v13 = vpop.f32.mrb[2].mxu0 }
 0x14f   : > { %v688_v14 = vpop.f32.mrb[3].mxu0  ;;  %407 = vst [vmem:[%s277_s27] sm:$0xf] %v406_v11 }
 0x151   : > { %403 = vadd.xlane.f32.xlu0 %v402_v15 }
 0x152   : > { %851 = shalt.err (!%p848_p1)
}
 0x153   : > { %s852_s5 = scalar_lea.hbm %s1206_s14, 64  ;;  %s856_s27 = scalar_lea.hbm %s1327_s2, 256 }
 0x154   : > { %p853_p9 = scmp.ne.s32.totalorder %s1206_s14, %s852_s5  ;;  %p857_p5 = scmp.lt.u32.totalorder %s1206_s14, %s1327_s2 }
 0x155   : > { %p858_p4 = scmp.lt.u32.totalorder %s856_s27, %s852_s5  ;;  %p860_p13 = scmp.lt.u32.totalorder %s852_s5, %s1206_s14 }
 0x156   : > { %p854_p11 = pnand %p853_p9, %p1342_p3 }
 0x157   : > { %p859_p8 = por %p858_p4, %p857_p5 }
 0x158   : > { %p855_p2 = pneg %p854_p11 }
 0x159   : > { %p861_p6 = por %p860_p13, %p859_p8 }
 0x15b   : > { %p862_p12 = pnand %p861_p6, %p855_p2 }
 0x15d   : > { %865 = shalt.err (!%p862_p12)
}
 0x15e   : > { %693 = dma.vmem_to_hbm [thread:$0]  (%p1342_p3), %s434_s6, 64, %s1206_s14, %s409_s12   ;;  %vm400_vm1 = vcmask 7168  }
 0x15f   : > { %s641_s26 = sshll.u32 %s1181_s8, 3  ;;  %s413_s7 = sand.u32 1, %s1051_s21  }
 0x160   : > { %s655_s25 = sshll.u32 %s976_s18, 7  ;;  %s284_s22 = scalar_lea.vmem [#allocation8], %s641_s26 }
 0x161   : > { %s447_s9 = sshll.u32 %s284_s22, 4  ;;  %s1234_s24 = scalar_lea.hbm %s1328_s3, %s655_s25  ;;  %s1236_s9 = int_to_ptr.vmem [resolvable:$true] %s447_s9 }
 0x162   : > { %s1238_s6 = scalar_lea.vmem [#allocation10], %s641_s26  ;;  %s1242_s8 = scalar_lea.sflag [#allocation9], %s413_s7 }
 0x163   : > { %s461_s21 = sshll.u32 %s1238_s6, 4  ;;  %s866_s14 = scalar_lea.vmem %s1236_s9, 128  ;;  %s1275_s21 = int_to_ptr.vmem [resolvable:$true] %s461_s21 }
 0x164   : > { %p867_p7 = scmp.ne.s32.totalorder %s1236_s9, %s866_s14  ;;  %s993_s12 = smov [#allocation8]  }
 0x165   : > { %s870_s27 = sshll.u32 %s993_s12, 4  ;;  %s871_s27 = int_to_ptr.vmem [resolvable:$false] %s870_s27 }
 0x166   : > { %p868_p10 = pnand %p867_p7, %p1342_p3  ;;  %s872_s11 = scalar_lea.vmem %s871_s27, 256 }
 0x167   : > { %p873_p1 = scmp.lt.s32.totalorder %s1236_s9, %s871_s27  ;;  %p874_p9 = scmp.lt.s32.totalorder %s872_s11, %s866_s14 }
 0x168   : > { %p869_p0 = pneg %p868_p10 }
 0x169   : > { %p875_p11 = por %p874_p9, %p873_p1 }
 0x16b   : > { %p876_p2 = pnand %p875_p11, %p869_p0 }
 0x1da   : > { %v399_v16 = vpop.xlane.xlu0 %398 }
 0x1db   : > { %401 = vst.msk [vmem:[%s284_s22] sm:$0xff] %vm400_vm1, %v399_v16 }
 0x1dc   : > { %879 = shalt.err (!%p876_p2)
}
 0x1dd   : > { %s880_s10 = scalar_lea.hbm %s1234_s24, 128  ;;  %s884_s22 = scalar_lea.hbm %s1328_s3, 512 }
 0x1de   : > { %p881_p5 = scmp.ne.s32.totalorder %s1234_s24, %s880_s10  ;;  %p885_p13 = scmp.lt.u32.totalorder %s1234_s24, %s1328_s3 }
 0x1df   : > { %p886_p6 = scmp.lt.u32.totalorder %s884_s22, %s880_s10  ;;  %p888_p7 = scmp.lt.u32.totalorder %s880_s10, %s1234_s24 }
 0x1e0   : > { %p882_p4 = pnand %p881_p5, %p1342_p3 }
 0x1e1   : > { %p887_p12 = por %p886_p6, %p885_p13 }
 0x1e2   : > { %p883_p8 = pneg %p882_p4 }
 0x1e3   : > { %p889_p10 = por %p888_p7, %p887_p12 }
 0x1e5   : > { %p890_p0 = pnand %p889_p10, %p883_p8 }
 0x1e7   : > { %893 = shalt.err (!%p890_p0)
}
 0x1e8   : > { %694 = dma.vmem_to_hbm [thread:$0]  (%p1342_p3), %s1236_s9, 128, %s1234_s24, %s1242_s8   ;;  %v404_v17 = vpop.xlane.xlu0 %403 }
 0x1e9   : > { %s1271_s27 = scalar_lea.hbm %s1329_s4, %s655_s25  ;;  %405 = vst.msk [vmem:[%s1238_s6] sm:$0xff] %vm400_vm1, %v404_v17  ;;  %s894_s11 = scalar_lea.vmem %s1275_s21, 128 }
 0x1ea   : > { %p895_p1 = scmp.ne.s32.totalorder %s1275_s21, %s894_s11  ;;  %s994_s18 = smov [#allocation10]  }
 0x1eb   : > { %s898_s9 = sshll.u32 %s994_s18, 4  ;;  %s899_s9 = int_to_ptr.vmem [resolvable:$false] %s898_s9 }
 0x1ec   : > { %p896_p9 = pnand %p895_p1, %p1342_p3  ;;  %s900_s24 = scalar_lea.vmem %s899_s9, 256 }
 0x1ed   : > { %p901_p2 = scmp.lt.s32.totalorder %s1275_s21, %s899_s9  ;;  %p902_p5 = scmp.lt.s32.totalorder %s900_s24, %s894_s11 }
 0x1ee   : > { %p897_p11 = pneg %p896_p9 }
 0x1ef   : > { %p903_p4 = por %p902_p5, %p901_p2 }
 0x1f1   : > { %p904_p8 = pnand %p903_p4, %p897_p11 }
 0x1f3   : > { %907 = shalt.err (!%p904_p8)
}
 0x1f4   : > { %s908_s25 = scalar_lea.hbm %s1271_s27, 128  ;;  %s912_s26 = scalar_lea.hbm %s1329_s4, 512 }
 0x1f5   : > { %p909_p13 = scmp.ne.s32.totalorder %s1271_s27, %s908_s25  ;;  %p913_p7 = scmp.lt.u32.totalorder %s1271_s27, %s1329_s4 }
 0x1f6   : > { %p914_p10 = scmp.lt.u32.totalorder %s912_s26, %s908_s25  ;;  %p916_p1 = scmp.lt.u32.totalorder %s908_s25, %s1271_s27 }
 0x1f7   : > { %p910_p6 = pnand %p909_p13, %p1342_p3 }
 0x1f8   : > { %p915_p0 = por %p914_p10, %p913_p7 }
 0x1f9   : > { %p911_p12 = pneg %p910_p6 }
 0x1fa   : > { %p917_p9 = por %p916_p1, %p915_p0 }
 0x1fc   : > { %p918_p11 = pnand %p917_p9, %p911_p12 }
 0x1fe   : > { %921 = shalt.err (!%p918_p11)
}
 0x1ff   : > { %695 = dma.vmem_to_hbm [thread:$0]  (%p1342_p3), %s1275_s21, 128, %s1271_s27, %s1242_s8  }
 0x200 PF: > { %p717_p2 = scmp.ge.s32.totalorder %s984_s20, 2  ;;  %s473_s5 = sand.u32 1, %s964_s15  }
 0x201   : > { %p1343_p5 = scmp.ne.s32.totalorder %s1336_s30, 0  ;;  %s474_s13 = scalar_lea.sflag [#allocation4], %s473_s5 }
 0x203   : > { %p707_p4 = pnand %p717_p2, %p1343_p5 }
 0x205   : > { %955 = dma.done.wait (!%p707_p4), %s474_s13, 64  }
 0x206   : > { %957 = vsyncadd (!%p707_p4), %s474_s13, 4294967232  ;;  %s1344_s14 = sadd.s32 4294967294, %s984_s20  }
 0x207   : > { %s482_s12 = sand.u32 1, %s1344_s14  }
 0x208   : > { %s483_s11 = scalar_lea.sflag [#allocation9], %s482_s12 }
 0x209   : > { %959 = dma.done.wait (!%p707_p4), %s483_s11, 256  }
 0x20a   : > { %961 = vsyncadd (!%p707_p4), %s483_s11, 4294967040  ;;  %s27_s20 = sadd.s32 1, %s984_s20   ;;  %s1345_s15 = smov %s968_s16 }
 0x20b   : > { %p24_p3 = scmp.ge.s32.totalorder %s27_s20, 6   ;;  %s1346_s16 = smov %s972_s17 }
 0x20c   : > { %s1347_s17 = smov %s1082_s29  ;;  %s1348_s18 = smov %s980_s19 }
 0x20d   : > { %s1349_s19 = smov %s1351_s23  ;;  %26 = sbr.rel (!%p24_p3) target bundleno = 10 (0xa), region = 118 }
 0x214   :  { %497 = vsyncpa [#allocation3], 1 }
 0x215   :  { %499 = vsyncpa [#allocation3 + $0x1], 1 }
 0x216   :  { %500 = vsyncpa [#allocation6], 1 }
 0x217   :  { %502 = vsyncpa [#allocation6 + $0x1], 1 }
 0x218   :  { %503 = vsyncpa [#allocation4], 1 }
 0x219   :  { %505 = vsyncpa [#allocation4 + $0x1], 1 }
 0x21a   :  { %506 = vsyncpa [#allocation9], 1 }
 0x21b   :  { %508 = vsyncpa [#allocation9 + $0x1], 1 }

// kernel: _lambda_.18
= control target key start
LH: loop header
LB: loop body
LE: loop exit
PB: predicated region body
PF: predicated region fallthrough
CT: control target
= control target key end

     0   :  { %10 = vsyncpa [#allocation3], 0  ;;  %s1278_s0 = inlined_call_operand.hbm [shape: bf16[4,4,64], index: 0, kind: input, shape index: {}]   ;;  %s1279_s1 = inlined_call_operand.hbm [shape: bf16[4,64,128], index: 1, kind: input, shape index: {}]   ;;  %s1280_s2 = inlined_call_operand.hbm [shape: bf16[4,4,128], index: 2, kind: output, shape index: {0}]   ;;  %s1281_s3 = inlined_call_operand.hbm [shape: f32[4,1,4,1], index: 3, kind: output, shape index: {1}]   ;;  %s1282_s4 = inlined_call_operand.hbm [shape: f32[4,1,4,1], index: 4, kind: output, shape index: {2}]  }
   0x1   :  { %12 = vsyncpa [#allocation3 + $0x1], 0 }
   0x2   :  { %13 = vsyncpa [#allocation6], 0 }
   0x3   :  { %15 = vsyncpa [#allocation6 + $0x1], 0 }
   0x4   :  { %16 = vsyncpa [#allocation4], 0 }
   0x5   :  { %18 = vsyncpa [#allocation4 + $0x1], 0 }
   0x6   :  { %19 = vsyncpa [#allocation9], 0 }
   0x7   :  { %21 = vsyncpa [#allocation9 + $0x1], 0  ;;  %s976_s15 = smov 0   ;;  %s978_s16 = smov 0  }
   0x8   :  { %s980_s17 = smov 0   ;;  %s982_s18 = smov 0  }
   0x9   :  { %s984_s19 = smov 0   ;;  %s986_s20 = smov 0  }
   0xa LB: > { %s1007_s21 = sadd.s32 4294967295, %s940_s20   ;;  %s1284_s22 = sadd.s32 4294967294, %s940_s20   ;;  %s940_s20 = sphi %s986_s20, %s27_s20   ;;  %s936_s19 = sphi %s984_s19, %s1302_s19   ;;  %s932_s18 = sphi %s982_s18, %s1301_s18   ;;  %s928_s17 = sphi %s980_s17, %s1300_s17   ;;  %s924_s16 = sphi %s978_s16, %s1299_s16   ;;  %s920_s15 = sphi %s976_s15, %s1298_s15  }
   0xb   : > { %s39_s23 = sadd.s32 1, %s936_s19  ;;  %s46_s24 = sadd.s32 1, %s928_s17 }
   0xc   : > { %p41_p0 = scmp.ge.s32.totalorder %s39_s23, 4  ;;  %p53_p1 = scmp.ne.s32.totalorder %s928_s17, %s924_s16 }
   0xd   : > { %p54_p2 = scmp.eq.s32.totalorder %s940_s20, 0  ;;  %p59_p3 = scmp.ne.s32.totalorder %s924_s16, %s920_s15 }
   0xe   : > { %s1304_s23 = smov (%p41_p0, %s39_s23), 0  ;;  %p60_p5 = scmp.eq.s32.totalorder %s1007_s21, 0 }
   0xf   : > { %p1019_p4 = por %p54_p2, %p53_p1  ;;  %s43_s26 = ssub.s32 %s936_s19, %s1304_s23 }
  0x10   : > { %p113_p6 = scmp.eq.s32.totalorder %s1007_s21, 3  ;;  %p44_p7 = scmp.eq.s32.totalorder %s43_s26, 0 }
  0x11   : > { %p1027_p8 = por %p60_p5, %p59_p3  ;;  %p119_p10 = scmp.eq.s32.totalorder %s1284_s22, 3 }
  0x12   : > { %p1031_p9 = por %p113_p6, %p53_p1  ;;  %p676_p12 = scmp.lt.s32.totalorder %s940_s20, 4 }
  0x13   : > { %s1287_s27 = scalar_select %p1027_p8, 1, 0 }
  0x14   : > { %s1288_s28 = scalar_select %p1031_p9, 1, 0 }
  0x15   : > { %s1038_s29 = scalar_select %p44_p7, %s928_s17, %s46_s24  }
  0x16   : > { %p1040_p11 = por %p119_p10, %p59_p3  ;;  %s1046_s5 = sand.u32 1, %s928_s17  }
  0x17   : > { %s607_s6 = sshll.u32 %s1046_s5, 1  ;;  %s608_s7 = sshll.u32 %s936_s19, 5 }
  0x18   : > { %s1289_s30 = scalar_select %p1040_p11, 1, 0 }
  0x19   : > { %s1053_s10 = scalar_lea.hbm %s1278_s0, %s608_s7  ;;  %s199_s11 = scalar_lea.vmem [#allocation2], %s607_s6 }
  0x1a   : > { %s206_s12 = sshll.u32 %s199_s11, 4  ;;  %p1059_p13 = pnand %p676_p12, %p1019_p4  ;;  %s1055_s12 = int_to_ptr.vmem [resolvable:$true] %s206_s12 }
  0x1b   : > { %s196_s14 = scalar_lea.sflag [#allocation3], %s1046_s5  ;;  %s734_s24 = scalar_lea.hbm %s1053_s10, 32 }
  0x1c   : > { %p735_p2 = scmp.ne.s32.totalorder %s1053_s10, %s734_s24  ;;  %p736_p3 = pneg %p1059_p13 }
  0x1d   : > { %s739_s25 = scalar_lea.hbm %s1278_s0, 128  ;;  %p740_p4 = scmp.lt.u32.totalorder %s1053_s10, %s1278_s0 }
  0x1e   : > { %p737_p5 = pnand %p736_p3, %p735_p2  ;;  %p741_p7 = scmp.lt.u32.totalorder %s739_s25, %s734_s24 }
  0x1f   : > { %p743_p12 = scmp.lt.u32.totalorder %s734_s24, %s1053_s10 }
  0x20   : > { %p738_p6 = pneg %p737_p5  ;;  %p742_p10 = por %p741_p7, %p740_p4 }
  0x22   : > { %p744_p0 = por %p743_p12, %p742_p10 }
  0x24   : > { %p745_p1 = pnand %p744_p0, %p738_p6 }
  0x26   : > { %748 = shalt.err (!%p745_p1)
}
  0x27   : > { %s749_s9 = scalar_lea.vmem %s1055_s12, 32  ;;  %s942_s11 = smov [#allocation2]  }
  0x28   : > { %p750_p2 = scmp.ne.s32.totalorder %s1055_s12, %s749_s9  ;;  %s754_s26 = sshll.u32 %s942_s11, 4  ;;  %s755_s26 = int_to_ptr.vmem [resolvable:$false] %s754_s26 }
  0x29   : > { %s756_s6 = scalar_lea.vmem %s755_s26, 64  ;;  %p757_p9 = scmp.lt.s32.totalorder %s1055_s12, %s755_s26 }
  0x2a   : > { %p752_p5 = pnand %p750_p2, %p736_p3  ;;  %p758_p4 = scmp.lt.s32.totalorder %s756_s6, %s749_s9 }
  0x2c   : > { %p753_p11 = pneg %p752_p5  ;;  %p759_p7 = por %p758_p4, %p757_p9 }
  0x2e   : > { %p760_p10 = pnand %p759_p7, %p753_p11 }
  0x30   : > { %763 = shalt.err (!%p760_p10)
}
  0x31   : > { %662 = dma.hbm_to_vmem [thread:$0]  (!%p1059_p13), %s1053_s10, 32, %s1055_s12, %s196_s14  }
  0x32   : > { %p1291_p0 = scmp.lt.s32.totalorder %s940_s20, 5  ;;  %p1292_p1 = scmp.ge.s32.totalorder %s940_s20, 1 }
  0x33   : > { %s609_s25 = sshll.u32 %s1046_s5, 5  ;;  %s631_s7 = sshll.u32 %s936_s19, 9 }
  0x34   : > { %p1095_p6 = pnand %p1292_p1, %p1291_p0  ;;  %s1104_s11 = scalar_lea.hbm %s1279_s1, %s631_s7 }
  0x35   : > { %s217_s26 = scalar_lea.vmem [#allocation5], %s609_s25  ;;  %s214_s10 = scalar_lea.sflag [#allocation6], %s1046_s5 }
  0x36   : > { %s225_s6 = sshll.u32 %s217_s26, 4  ;;  %s764_s12 = scalar_lea.hbm %s1104_s11, 512  ;;  %s1106_s6 = int_to_ptr.vmem [resolvable:$true] %s225_s6 }
  0x37   : > { %p765_p9 = scmp.ne.s32.totalorder %s1104_s11, %s764_s12  ;;  %s769_s7 = scalar_lea.hbm %s1279_s1, 2048 }
  0x38   : > { %p770_p2 = scmp.lt.u32.totalorder %s1104_s11, %s1279_s1  ;;  %p771_p5 = scmp.lt.u32.totalorder %s769_s7, %s764_s12 }
  0x39   : > { %p767_p11 = pnand %p765_p9, %p736_p3  ;;  %p773_p7 = scmp.lt.u32.totalorder %s764_s12, %s1104_s11 }
  0x3a   : > { %p772_p4 = por %p771_p5, %p770_p2 }
  0x3b   : > { %p768_p12 = pneg %p767_p11 }
  0x3c   : > { %p774_p10 = por %p773_p7, %p772_p4 }
  0x3e   : > { %p775_p0 = pnand %p774_p10, %p768_p12 }
  0x40   : > { %778 = shalt.err (!%p775_p0)
}
  0x41   : > { %s779_s25 = scalar_lea.vmem %s1106_s6, 512  ;;  %s943_s22 = smov [#allocation5]  }
  0x42   : > { %p780_p1 = scmp.ne.s32.totalorder %s1106_s6, %s779_s25  ;;  %s784_s26 = sshll.u32 %s943_s22, 4  ;;  %s785_s26 = int_to_ptr.vmem [resolvable:$false] %s784_s26 }
  0x43   : > { %s786_s14 = scalar_lea.vmem %s785_s26, 1024  ;;  %p787_p8 = scmp.lt.s32.totalorder %s1106_s6, %s785_s26 }
  0x44   : > { %p782_p9 = pnand %p780_p1, %p736_p3  ;;  %p788_p2 = scmp.lt.s32.totalorder %s786_s14, %s779_s25 }
  0x46   : > { %p783_p11 = pneg %p782_p9  ;;  %p789_p5 = por %p788_p2, %p787_p8 }
  0x48   : > { %p790_p4 = pnand %p789_p5, %p783_p11 }
  0x4a   : > { %793 = shalt.err (!%p790_p4)
}
  0x4b   : > { %s944_s12 = smov 64   ;;  %s945_s7 = smov 4  }
  0x4c   : > { %665 = dma.hbm_to_vmem [thread:$0]  (!%p1059_p13), %s1104_s11, 512, %s1106_s6, %s214_s10, %s944_s12, %s944_s12, %s945_s7  }
  0x4d   : > { %237 = sbr.rel (%p1095_p6) target bundleno = 497 (0x1f1), region = 28  ;;  %s1137_s8 = sand.u32 (!%p1095_p6), 1, %s924_s16  }
  0x4e   : > { %s613_s9 = sshll.u32 (!%p1095_p6), %s1137_s8, 1  ;;  %s240_s25 = scalar_lea.sflag (!%p1095_p6), [#allocation3], %s1137_s8 }
  0x4f   : > { %s243_s22 = scalar_lea.vmem (!%p1095_p6), [#allocation2], %s613_s9  ;;  %p1294_p8 = scmp.ne.s32.totalorder (!%p1095_p6), %s1287_s27, 0 }
  0x54   : > { %903 = dma.done.wait (%p1294_p8), %s240_s25, 32  }
  0x55   : > { %905 = vsyncadd (%p1294_p8), %s240_s25, 4294967264  ;;  %s614_s5 = sshll.u32 %s1137_s8, 5  ;;  %s249_s13 = scalar_lea.sflag [#allocation6], %s1137_s8 }
  0x56   : > { %s252_s24 = scalar_lea.vmem [#allocation5], %s614_s5 }
  0x57   : > { %907 = dma.done.wait (%p1294_p8), %s249_s13, 512  }
  0x58   : > { %909 = vsyncadd (%p1294_p8), %s249_s13, 4294966784  ;;  %v946_v0 = vmov 0.0   ;;  %vm947_vm0 = vmmov 0   ;;  %v730_v1 = vld [vmem:[%s252_s24] sm:$0xff]   ;;  %v731_v2 = vld [vmem:[%s252_s24 + $0x8] sm:$0xff]   ;;  %vm326_vm1 = vcmask 523264  }
  0x59   : > { %637 = vmatprep.subr.bf16.mxu0 %v946_v0  ;;  %645 = vmatprep.mubr.msk.bf16.mxu0 %vm947_vm0, %v946_v0  ;;  %v732_v3 = vld [vmem:[%s252_s24 + $0x10] sm:$0xff]   ;;  %v733_v4 = vld [vmem:[%s252_s24 + $0x18] sm:$0xff]   ;;  %vm370_vm2 = vcmask 1043456   ;;  %s277_s27 = scalar_lea.vmem [#allocation7], %s613_s9  ;;  %s626_s11 = sshll.u32 %s932_s18, 5 }
  0x5a   : > { %638 = vmatpush3.bf16.msra.mxu0 %v730_v1  ;;  %v293_v5 = vld [vmem:[%s243_s22] sm:$0x3]  ;;  %s408_s6 = sshll.u32 %s277_s27, 4  ;;  %s1159_s14 = scalar_lea.hbm %s1280_s2, %s626_s11  ;;  %s409_s6 = int_to_ptr.vmem [resolvable:$true] %s408_s6 }
  0x5b   : > { %639 = vmatprep.subr.bf16.mxu0 %v946_v0  ;;  %s384_s12 = scalar_lea.sflag [#allocation4], %s1137_s8  ;;  %s794_s7 = scalar_lea.vmem %s409_s6, 32 }
  0x5c   : > { %p795_p13 = scmp.ne.s32.totalorder %s409_s6, %s794_s7  ;;  %p1295_p3 = scmp.ne.s32.totalorder %s1288_s28, 0 }
  0x5d   : > { %s948_s25 = smov [#allocation7]  }
  0x5e   : > { %640 = vmatpush3.bf16.msra.mxu0 %v731_v2  ;;  %p796_p6 = pnand %p795_p13, %p1295_p3  ;;  %s798_s22 = sshll.u32 %s948_s25, 4  ;;  %s799_s22 = int_to_ptr.vmem [resolvable:$false] %s798_s22 }
  0x5f   : > { %641 = vmatprep.subr.bf16.mxu0 %v946_v0  ;;  %s800_s9 = scalar_lea.vmem %s799_s22, 64  ;;  %p801_p7 = scmp.lt.s32.totalorder %s409_s6, %s799_s22 }
  0x60   : > { %p797_p12 = pneg %p796_p6  ;;  %p802_p10 = scmp.lt.s32.totalorder %s800_s9, %s794_s7 }
  0x62   : > { %642 = vmatpush3.bf16.msra.mxu0 %v732_v3  ;;  %p803_p0 = por %p802_p10, %p801_p7 }
  0x63   : > { %643 = vmatprep.subr.bf16.mxu0 %v946_v0 }
  0x64   : > { %p804_p1 = pnand %p803_p0, %p797_p12 }
  0x66   : > { %644 = vmatpush3.bf16.msra.mxu0 %v733_v4 }
  0x69   : > { %646 = vmatmul.mubr.msk.bf16.vlgmr.msra.gmra.mrb[0].mxu0 %vm326_vm1, %v293_v5 }
 0x13c   : > { %v364_v6 = vpop.f32.mrb[0].mxu0 }
 0x13d   : > { %v381_v7 = vpack.c.bf16 %v364_v6, %v364_v6  ;;  %v647_v8 = vpop.f32.mrb[1].mxu0  ;;  %v371_v9 = vsel %vm370_vm2, %v364_v6, 0.0  ;;  %v376_v10 = vmul.f32 %v364_v6, %v364_v6 }
 0x13e   : > { %372 = vadd.xlane.f32.xlu0 %v371_v9  ;;  %v367_v11 = vpop.f32.mrb[2].mxu0 }
 0x13f   : > { %v648_v12 = vpop.f32.mrb[3].mxu0  ;;  %382 = vst [vmem:[%s277_s27] sm:$0x3] %v381_v7  ;;  %v377_v13 = vsel %vm370_vm2, %v376_v10, 0.0 }
 0x142   : > { %378 = vadd.xlane.f32.xlu0 %v377_v13 }
 0x143   : > { %807 = shalt.err (!%p804_p1)
}
 0x144   : > { %s808_s5 = scalar_lea.hbm %s1159_s14, 32  ;;  %s812_s27 = scalar_lea.hbm %s1280_s2, 128 }
 0x145   : > { %p809_p9 = scmp.ne.s32.totalorder %s1159_s14, %s808_s5  ;;  %p813_p5 = scmp.lt.u32.totalorder %s1159_s14, %s1280_s2 }
 0x146   : > { %p814_p4 = scmp.lt.u32.totalorder %s812_s27, %s808_s5  ;;  %p816_p13 = scmp.lt.u32.totalorder %s808_s5, %s1159_s14 }
 0x147   : > { %p810_p11 = pnand %p809_p9, %p1295_p3 }
 0x148   : > { %p815_p8 = por %p814_p4, %p813_p5 }
 0x149   : > { %p811_p2 = pneg %p810_p11 }
 0x14a   : > { %p817_p6 = por %p816_p13, %p815_p8 }
 0x14c   : > { %p818_p12 = pnand %p817_p6, %p811_p2 }
 0x14e   : > { %821 = shalt.err (!%p818_p12)
}
 0x14f   : > { %653 = dma.vmem_to_hbm [thread:$0]  (%p1295_p3), %s409_s6, 32, %s1159_s14, %s384_s12   ;;  %vm374_vm3 = vcmask 3072  }
 0x150   : > { %s616_s26 = sshll.u32 %s1137_s8, 2  ;;  %s388_s7 = sand.u32 1, %s1007_s21  }
 0x151   : > { %s627_s25 = sshll.u32 %s932_s18, 6  ;;  %s284_s22 = scalar_lea.vmem [#allocation8], %s616_s26 }
 0x152   : > { %s422_s9 = sshll.u32 %s284_s22, 4  ;;  %s1187_s24 = scalar_lea.hbm %s1281_s3, %s627_s25  ;;  %s1189_s9 = int_to_ptr.vmem [resolvable:$true] %s422_s9 }
 0x153   : > { %s1191_s6 = scalar_lea.vmem [#allocation10], %s616_s26  ;;  %s1195_s8 = scalar_lea.sflag [#allocation9], %s388_s7 }
 0x154   : > { %s436_s21 = sshll.u32 %s1191_s6, 4  ;;  %s822_s14 = scalar_lea.vmem %s1189_s9, 64  ;;  %s1228_s21 = int_to_ptr.vmem [resolvable:$true] %s436_s21 }
 0x155   : > { %p823_p7 = scmp.ne.s32.totalorder %s1189_s9, %s822_s14  ;;  %s949_s12 = smov [#allocation8]  }
 0x156   : > { %s826_s27 = sshll.u32 %s949_s12, 4  ;;  %s827_s27 = int_to_ptr.vmem [resolvable:$false] %s826_s27 }
 0x157   : > { %p824_p10 = pnand %p823_p7, %p1295_p3  ;;  %s828_s11 = scalar_lea.vmem %s827_s27, 128 }
 0x158   : > { %p829_p1 = scmp.lt.s32.totalorder %s1189_s9, %s827_s27  ;;  %p830_p9 = scmp.lt.s32.totalorder %s828_s11, %s822_s14 }
 0x159   : > { %p825_p0 = pneg %p824_p10 }
 0x15a   : > { %p831_p11 = por %p830_p9, %p829_p1 }
 0x15c   : > { %p832_p2 = pnand %p831_p11, %p825_p0 }
 0x1cb   : > { %v373_v14 = vpop.xlane.xlu0 %372 }
 0x1cc   : > { %375 = vst.msk [vmem:[%s284_s22] sm:$0xf] %vm374_vm3, %v373_v14 }
 0x1cd   : > { %835 = shalt.err (!%p832_p2)
}
 0x1ce   : > { %s836_s10 = scalar_lea.hbm %s1187_s24, 64  ;;  %s840_s22 = scalar_lea.hbm %s1281_s3, 256 }
 0x1cf   : > { %p837_p5 = scmp.ne.s32.totalorder %s1187_s24, %s836_s10  ;;  %p841_p13 = scmp.lt.u32.totalorder %s1187_s24, %s1281_s3 }
 0x1d0   : > { %p842_p6 = scmp.lt.u32.totalorder %s840_s22, %s836_s10  ;;  %p844_p7 = scmp.lt.u32.totalorder %s836_s10, %s1187_s24 }
 0x1d1   : > { %p838_p4 = pnand %p837_p5, %p1295_p3 }
 0x1d2   : > { %p843_p12 = por %p842_p6, %p841_p13 }
 0x1d3   : > { %p839_p8 = pneg %p838_p4 }
 0x1d4   : > { %p845_p10 = por %p844_p7, %p843_p12 }
 0x1d6   : > { %p846_p0 = pnand %p845_p10, %p839_p8 }
 0x1d8   : > { %849 = shalt.err (!%p846_p0)
}
 0x1d9   : > { %654 = dma.vmem_to_hbm [thread:$0]  (%p1295_p3), %s1189_s9, 64, %s1187_s24, %s1195_s8   ;;  %v379_v15 = vpop.xlane.xlu0 %378 }
 0x1da   : > { %s1224_s27 = scalar_lea.hbm %s1282_s4, %s627_s25  ;;  %380 = vst.msk [vmem:[%s1191_s6] sm:$0xf] %vm374_vm3, %v379_v15  ;;  %s850_s11 = scalar_lea.vmem %s1228_s21, 64 }
 0x1db   : > { %p851_p1 = scmp.ne.s32.totalorder %s1228_s21, %s850_s11  ;;  %s950_s18 = smov [#allocation10]  }
 0x1dc   : > { %s854_s9 = sshll.u32 %s950_s18, 4  ;;  %s855_s9 = int_to_ptr.vmem [resolvable:$false] %s854_s9 }
 0x1dd   : > { %p852_p9 = pnand %p851_p1, %p1295_p3  ;;  %s856_s24 = scalar_lea.vmem %s855_s9, 128 }
 0x1de   : > { %p857_p2 = scmp.lt.s32.totalorder %s1228_s21, %s855_s9  ;;  %p858_p5 = scmp.lt.s32.totalorder %s856_s24, %s850_s11 }
 0x1df   : > { %p853_p11 = pneg %p852_p9 }
 0x1e0   : > { %p859_p4 = por %p858_p5, %p857_p2 }
 0x1e2   : > { %p860_p8 = pnand %p859_p4, %p853_p11 }
 0x1e4   : > { %863 = shalt.err (!%p860_p8)
}
 0x1e5   : > { %s864_s25 = scalar_lea.hbm %s1224_s27, 64  ;;  %s868_s26 = scalar_lea.hbm %s1282_s4, 256 }
 0x1e6   : > { %p865_p13 = scmp.ne.s32.totalorder %s1224_s27, %s864_s25  ;;  %p869_p7 = scmp.lt.u32.totalorder %s1224_s27, %s1282_s4 }
 0x1e7   : > { %p870_p10 = scmp.lt.u32.totalorder %s868_s26, %s864_s25  ;;  %p872_p1 = scmp.lt.u32.totalorder %s864_s25, %s1224_s27 }
 0x1e8   : > { %p866_p6 = pnand %p865_p13, %p1295_p3 }
 0x1e9   : > { %p871_p0 = por %p870_p10, %p869_p7 }
 0x1ea   : > { %p867_p12 = pneg %p866_p6 }
 0x1eb   : > { %p873_p9 = por %p872_p1, %p871_p0 }
 0x1ed   : > { %p874_p11 = pnand %p873_p9, %p867_p12 }
 0x1ef   : > { %877 = shalt.err (!%p874_p11)
}
 0x1f0   : > { %655 = dma.vmem_to_hbm [thread:$0]  (%p1295_p3), %s1228_s21, 64, %s1224_s27, %s1195_s8  }
 0x1f1 PF: > { %p677_p2 = scmp.ge.s32.totalorder %s940_s20, 2  ;;  %s448_s5 = sand.u32 1, %s920_s15  }
 0x1f2   : > { %p1296_p5 = scmp.ne.s32.totalorder %s1289_s30, 0  ;;  %s449_s13 = scalar_lea.sflag [#allocation4], %s448_s5 }
 0x1f4   : > { %p667_p4 = pnand %p677_p2, %p1296_p5 }
 0x1f6   : > { %911 = dma.done.wait (!%p667_p4), %s449_s13, 32  }
 0x1f7   : > { %913 = vsyncadd (!%p667_p4), %s449_s13, 4294967264  ;;  %s1297_s14 = sadd.s32 4294967294, %s940_s20  }
 0x1f8   : > { %s457_s12 = sand.u32 1, %s1297_s14  }
 0x1f9   : > { %s458_s11 = scalar_lea.sflag [#allocation9], %s457_s12 }
 0x1fa   : > { %915 = dma.done.wait (!%p667_p4), %s458_s11, 128  }
 0x1fb   : > { %917 = vsyncadd (!%p667_p4), %s458_s11, 4294967168  ;;  %s27_s20 = sadd.s32 1, %s940_s20   ;;  %s1298_s15 = smov %s924_s16 }
 0x1fc   : > { %p24_p3 = scmp.ge.s32.totalorder %s27_s20, 6   ;;  %s1299_s16 = smov %s928_s17 }
 0x1fd   : > { %s1300_s17 = smov %s1038_s29  ;;  %s1301_s18 = smov %s936_s19 }
 0x1fe   : > { %s1302_s19 = smov %s1304_s23  ;;  %26 = sbr.rel (!%p24_p3) target bundleno = 10 (0xa), region = 118 }
 0x205   :  { %472 = vsyncpa [#allocation3], 1 }
 0x206   :  { %474 = vsyncpa [#allocation3 + $0x1], 1 }
 0x207   :  { %475 = vsyncpa [#allocation6], 1 }
 0x208   :  { %477 = vsyncpa [#allocation6 + $0x1], 1 }
 0x209   :  { %478 = vsyncpa [#allocation4], 1 }
 0x20a   :  { %480 = vsyncpa [#allocation4 + $0x1], 1 }
 0x20b   :  { %481 = vsyncpa [#allocation9], 1 }
 0x20c   :  { %483 = vsyncpa [#allocation9 + $0x1], 1 }

// kernel: _lambda_.19
= control target key start
LH: loop header
LB: loop body
LE: loop exit
PB: predicated region body
PF: predicated region fallthrough
CT: control target
= control target key end

     0   :  { %s1164_s0 = inlined_call_operand.hbm [shape: bf16[4,3,32], index: 0, kind: input, shape index: {}]   ;;  %s1165_s1 = inlined_call_operand.hbm [shape: bf16[4,32,512], index: 1, kind: input, shape index: {}]   ;;  %s1166_s2 = inlined_call_operand.hbm [shape: f32[3,1], index: 2, kind: input, shape index: {}]   ;;  %s1167_s3 = inlined_call_operand.hbm [shape: f32[4,3,512], index: 3, kind: output, shape index: {}]  }
   0x1   :  { %1172 = sst [smem:[#allocation13_spill]] %s1164_s0 }
   0x2   :  { %8 = vsyncpa [#allocation3], 0 }
   0x3   :  { %10 = vsyncpa [#allocation3 + $0x1], 0 }
   0x4   :  { %11 = vsyncpa [#allocation6], 0 }
   0x5   :  { %13 = vsyncpa [#allocation6 + $0x1], 0 }
   0x6   :  { %14 = vsyncpa [#allocation4], 0 }
   0x7   :  { %16 = vsyncpa [#allocation4 + $0x1], 0  ;;  %s888_s12 = smov 0   ;;  %s890_s13 = smov 0  }
   0x8   :  { %s892_s14 = smov 0   ;;  %s894_s15 = smov 0  }
   0x9   :  { %s896_s16 = smov 0   ;;  %s898_s17 = smov 0  }
   0xa LB: > { %s919_s18 = sadd.s32 4294967295, %s859_s17   ;;  %s548_s19 = sadd.s32 4294967294, %s859_s17   ;;  %s859_s17 = sphi %s898_s17, %s22_s17   ;;  %s855_s16 = sphi %s896_s16, %s1195_s16   ;;  %s851_s15 = sphi %s894_s15, %s1194_s15   ;;  %s847_s14 = sphi %s892_s14, %s1193_s14   ;;  %s843_s13 = sphi %s890_s13, %s1192_s13   ;;  %s839_s12 = sphi %s888_s12, %s1191_s12  }
   0xb   : > { %s41_s20 = sadd.s32 1, %s847_s14  ;;  %p48_p0 = scmp.ne.s32.totalorder %s847_s14, %s843_s13 }
   0xc   : > { %p54_p1 = scmp.ne.s32.totalorder %s843_s13, %s839_s12  ;;  %p1168_p2 = scmp.eq.s32.totalorder %s919_s18, 0 }
   0xd   : > { %p129_p3 = scmp.eq.s32.totalorder %s919_s18, 3  ;;  %p135_p4 = scmp.eq.s32.totalorder %s548_s19, 3 }
   0xe   : > { %p931_p5 = por %p1168_p2, %p54_p1  ;;  %p549_p6 = scmp.ge.s32.totalorder %s859_s17, 1 }
   0xf   : > { %p939_p7 = por %p129_p3, %p48_p0  ;;  %p943_p8 = por %p135_p4, %p54_p1 }
  0x10   : > { %s1173_s21 = scalar_select %p931_p5, 1, 0 }
  0x11   : > { %s1174_s22 = scalar_select %p939_p7, 1, 0 }
  0x12   : > { %s1175_s23 = scalar_select %p943_p8, 1, 0 }
  0x13   : > { %p142_p9 = scmp.lt.s32.totalorder %s859_s17, 5  ;;  %s861_s25 = smov [#allocation7]  }
  0x14   : > { %s155_s26 = sshll.u32 %s861_s25, 4  ;;  %s34_s27 = sadd.s32 1, %s855_s16  ;;  %s156_s26 = int_to_ptr.vmem [resolvable:$true] %s155_s26 }
  0x15   : > { %p948_p10 = pnand %p549_p6, %p142_p9  ;;  %p49_p12 = scmp.eq.s32.totalorder %s859_s17, 0 }
  0x16   : > { %p962_p1 = scmp.ge.s32.totalorder %s34_s27, 4  ;;  %s975_s4 = sand.u32 1, %s847_s14  }
  0x17   : > { %s1176_s24 = scalar_select %p948_p10, 1, 0 }
  0x18   : > { %p589_p11 = pneg %p948_p10  ;;  %p969_p3 = por %p49_p12, %p48_p0 }
  0x19   : > { %s1178_s29 = scalar_select %p962_p1, 1, 0 }
  0x1a   : > { %p958_p13 = pnand %p589_p11, %p1168_p2  ;;  %s681_s7 = scalar_lea.hbm %s1166_s2, 64 }
  0x1b   : > { %s1179_s30 = scalar_select %p969_p3, 1, 0 }
  0x1c   : > { %p682_p6 = scmp.ne.s32.totalorder %s1166_s2, %s681_s7  ;;  %p683_p9 = pneg %p958_p13 }
  0x1d   : > { %p688_p0 = scmp.lt.u32.totalorder %s681_s7, %s1166_s2 }
  0x1e   : > { %p684_p11 = pnand %p683_p9, %p682_p6 }
  0x20   : > { %p685_p2 = pneg %p684_p11 }
  0x22   : > { %p690_p12 = pnand %p688_p0, %p685_p2 }
  0x24   : > { %693 = shalt.err (!%p690_p12)
}
  0x25   : > { %s694_s19 = scalar_lea.vmem %s156_s26, 64  ;;  %p702_p5 = scmp.lt.s32.totalorder %s156_s26, %s156_s26 }
  0x26   : > { %p695_p4 = scmp.ne.s32.totalorder %s156_s26, %s694_s19  ;;  %p703_p10 = scmp.lt.s32.totalorder %s694_s19, %s694_s19 }
  0x28   : > { %p697_p8 = pnand %p695_p4, %p683_p9  ;;  %p704_p3 = por %p703_p10, %p702_p5 }
  0x2a   : > { %p698_p7 = pneg %p697_p8 }
  0x2c   : > { %p705_p1 = pnand %p704_p3, %p698_p7 }
  0x2e   : > { %708 = shalt.err (!%p705_p1)
}
  0x2f   : > { %592 = dma.hbm_to_vmem [thread:$0]  (!%p958_p13), %s1166_s2, 64, %s156_s26, [#allocation6]  }
  0x30   : > { %p1180_p2 = scmp.ne.s32.totalorder %s1178_s29, 0  ;;  %s552_s28 = sshll.u32 %s975_s4, 1 }
  0x31   : > { %s553_s7 = sshll.u32 %s855_s16, 5  ;;  %s1181_s0 = sld [smem:[#allocation13_spill]] }
  0x32   : > { %s1197_s27 = smov (%p1180_p2, %s34_s27), 0  ;;  %s170_s11 = scalar_lea.vmem [#allocation2], %s552_s28 }
  0x33   : > { %s38_s6 = ssub.s32 %s855_s16, %s1197_s27  ;;  %s177_s19 = sshll.u32 %s170_s11, 4  ;;  %s1011_s19 = int_to_ptr.vmem [resolvable:$true] %s177_s19 }
  0x34   : > { %p39_p5 = scmp.eq.s32.totalorder %s38_s6, 0  ;;  %p1182_p7 = scmp.ne.s32.totalorder %s1179_s30, 0 }
  0x35   : > { %p1183_p8 = scmp.lt.s32.totalorder %s859_s17, 4  ;;  %s554_s25 = sshll.u32 %s975_s4, 6 }
  0x36   : > { %s1009_s26 = scalar_select %p39_p5, %s847_s14, %s41_s20  }
  0x37   : > { %s1004_s10 = scalar_lea.hbm %s1181_s0, %s553_s7  ;;  %p1017_p10 = pnand %p1183_p8, %p1182_p7 }
  0x38   : > { %s577_s5 = sshll.u32 %s855_s16, 10  ;;  %s167_s6 = scalar_lea.sflag [#allocation3], %s975_s4 }
  0x39   : > { %s709_s7 = scalar_lea.hbm %s1004_s10, 32  ;;  %p711_p1 = pneg %p1017_p10 }
  0x3a   : > { %p710_p13 = scmp.ne.s32.totalorder %s1004_s10, %s709_s7  ;;  %s714_s28 = scalar_lea.hbm %s1181_s0, 128 }
  0x3b   : > { %p715_p6 = scmp.lt.u32.totalorder %s1004_s10, %s1181_s0  ;;  %p716_p9 = scmp.lt.u32.totalorder %s714_s28, %s709_s7 }
  0x3c   : > { %p712_p3 = pnand %p711_p1, %p710_p13  ;;  %p718_p0 = scmp.lt.u32.totalorder %s709_s7, %s1004_s10 }
  0x3d   : > { %p717_p11 = por %p716_p9, %p715_p6 }
  0x3e   : > { %p713_p4 = pneg %p712_p3 }
  0x3f   : > { %p719_p12 = por %p718_p0, %p717_p11 }
  0x41   : > { %p720_p2 = pnand %p719_p12, %p713_p4 }
  0x43   : > { %723 = shalt.err (!%p720_p2)
}
  0x44   : > { %s724_s11 = scalar_lea.vmem %s1011_s19, 32  ;;  %s862_s20 = smov [#allocation2]  }
  0x45   : > { %p725_p5 = scmp.ne.s32.totalorder %s1011_s19, %s724_s11  ;;  %s729_s30 = sshll.u32 %s862_s20, 4  ;;  %s730_s30 = int_to_ptr.vmem [resolvable:$false] %s729_s30 }
  0x46   : > { %s731_s8 = scalar_lea.vmem %s730_s30, 64  ;;  %p732_p13 = scmp.lt.s32.totalorder %s1011_s19, %s730_s30 }
  0x47   : > { %p727_p7 = pnand %p725_p5, %p711_p1  ;;  %p733_p3 = scmp.lt.s32.totalorder %s731_s8, %s724_s11 }
  0x49   : > { %p728_p8 = pneg %p727_p7  ;;  %p734_p6 = por %p733_p3, %p732_p13 }
  0x4b   : > { %p735_p9 = pnand %p734_p6, %p728_p8 }
  0x4d   : > { %738 = shalt.err (!%p735_p9)
}
  0x4e   : > { %596 = dma.hbm_to_vmem [thread:$0]  (!%p1017_p10), %s1004_s10, 32, %s1011_s19, %s167_s6  }
  0x4f   : > { %s188_s7 = scalar_lea.vmem [#allocation5], %s554_s25  ;;  %s184_s9 = sand.u32 1, %s859_s17  }
  0x50   : > { %s197_s28 = sshll.u32 %s188_s7, 4  ;;  %s1059_s30 = scalar_lea.hbm %s1165_s1, %s577_s5  ;;  %s1052_s28 = int_to_ptr.vmem [resolvable:$true] %s197_s28 }
  0x51   : > { %s1061_s8 = scalar_lea.sflag [#allocation6], %s184_s9  ;;  %s739_s0 = scalar_lea.hbm %s1059_s30, 1024 }
  0x52   : > { %p740_p4 = scmp.ne.s32.totalorder %s1059_s30, %s739_s0  ;;  %s744_s19 = scalar_lea.hbm %s1165_s1, 4096 }
  0x53   : > { %p745_p12 = scmp.lt.u32.totalorder %s1059_s30, %s1165_s1  ;;  %p746_p2 = scmp.lt.u32.totalorder %s744_s19, %s739_s0 }
  0x54   : > { %p742_p11 = pnand %p740_p4, %p711_p1  ;;  %p748_p7 = scmp.lt.u32.totalorder %s739_s0, %s1059_s30 }
  0x55   : > { %p747_p5 = por %p746_p2, %p745_p12 }
  0x56   : > { %p743_p0 = pneg %p742_p11 }
  0x57   : > { %p749_p8 = por %p748_p7, %p747_p5 }
  0x59   : > { %p750_p13 = pnand %p749_p8, %p743_p0 }
  0x5b   : > { %753 = shalt.err (!%p750_p13)
}
  0x5c   : > { %s754_s5 = scalar_lea.vmem %s1052_s28, 1024  ;;  %s863_s7 = smov [#allocation5]  }
  0x5d   : > { %p755_p3 = scmp.ne.s32.totalorder %s1052_s28, %s754_s5  ;;  %s759_s9 = sshll.u32 %s863_s7, 4  ;;  %s760_s9 = int_to_ptr.vmem [resolvable:$false] %s759_s9 }
  0x5e   : > { %s761_s11 = scalar_lea.vmem %s760_s9, 2048  ;;  %p762_p4 = scmp.lt.s32.totalorder %s1052_s28, %s760_s9 }
  0x5f   : > { %p757_p6 = pnand %p755_p3, %p711_p1  ;;  %p763_p11 = scmp.lt.s32.totalorder %s761_s11, %s754_s5 }
  0x61   : > { %p758_p9 = pneg %p757_p6  ;;  %p764_p12 = por %p763_p11, %p762_p4 }
  0x63   : > { %p765_p2 = pnand %p764_p12, %p758_p9 }
  0x65   : > { %768 = shalt.err (!%p765_p2)
}
  0x66   : > { %s864_s0 = smov 256   ;;  %s865_s20 = smov 16  }
  0x67   : > { %599 = dma.hbm_to_vmem [thread:$0]  (!%p1017_p10), %s1059_s30, 1024, %s1052_s28, %s1061_s8, %s864_s0, %s864_s0, %s865_s20  }
  0x68   : > { %p1185_p1 = scmp.ne.s32.totalorder %s1176_s24, 0 }
  0x69   : > { %s1090_s4 = sand.u32 (!%p1185_p1), 1, %s843_s13   ;;  %p1186_p0 = scmp.ne.s32.totalorder (!%p1185_p1), %s1173_s21, 0 }
  0x6a   : > { %209 = sbr.rel (%p1185_p1) target bundleno = 374 (0x176), region = 32  ;;  %s558_s10 = sshll.u32 (!%p1185_p1), %s1090_s4, 1 }
  0x6b   : > { %s212_s19 = scalar_lea.sflag (!%p1185_p1), [#allocation3], %s1090_s4  ;;  %s1094_s25 = scalar_lea.vmem (!%p1185_p1), [#allocation2], %s558_s10 }
  0x71   : > { %822 = dma.done.wait (%p1186_p0), %s212_s19, 32  }
  0x72   : > { %824 = vsyncadd (%p1186_p0), %s212_s19, 4294967264  ;;  %s220_s24 = sand.u32 1, %s919_s18   ;;  %s559_s29 = sshll.u32 %s1090_s4, 6 }
  0x73   : > { %s221_s28 = scalar_lea.sflag [#allocation6], %s220_s24  ;;  %s224_s30 = scalar_lea.vmem [#allocation5], %s559_s29 }
  0x74   : > { %826 = dma.done.wait (%p1186_p0), %s221_s28, 1024  }
  0x75   : > { %828 = vsyncadd (%p1186_p0), %s221_s28, 4294966272  ;;  %p1187_p10 = scmp.eq.s32.totalorder %s919_s18, 0 }
  0x77   : > { %830 = dma.done.wait (%p1187_p10), [#allocation6], 64   ;;  %p1188_p5 = pmov %p1187_p10 }
  0x78   : > { %v866_v0 = vmov 0   ;;  %v661_v1 = vld [vmem:[%s224_s30 + $0x4] ss:$16 sps:$4 sm:$0xff]   ;;  %v663_v2 = vld [vmem:[%s224_s30 + $0xc] ss:$16 sps:$4 sm:$0xff]   ;;  %vm314_vm0 = vcmask 261120  }
  0x79   : > { %832 = vsyncadd (%p1188_p5), [#allocation6], 4294967232  ;;  %350 = vmatprep.mubr.bf16.mxu0 %v866_v0  ;;  %391 = vmatprep.mubr.bf16.mxu1 %v866_v0  ;;  %v665_v3 = vld [vmem:[%s224_s30] ss:$16 sps:$4 sm:$0xff]   ;;  %v666_v4 = vld [vmem:[%s224_s30 + $0x8] ss:$16 sps:$4 sm:$0xff]  }
  0x7a   : > { %660 = vset.pattern.permute.xlu0 %v866_v0  ;;  %318 = vmatprep.subr.bf16.mxu0 %v661_v1  ;;  %v667_v5 = vld [vmem:[%s224_s30 + $0x24] ss:$16 sps:$4 sm:$0xff]   ;;  %v669_v6 = vld [vmem:[%s224_s30 + $0x2c] ss:$16 sps:$4 sm:$0xff]   ;;  %v671_v7 = vld [vmem:[%s224_s30 + $0x20] ss:$16 sps:$4 sm:$0xff]  }
  0x7b   : > { %359 = vmatprep.subr.bf16.mxu1 %v663_v2  ;;  %319 = vmatpush1.bf16.msra.mxu0 %v665_v3  ;;  %v672_v8 = vld [vmem:[%s224_s30 + $0x28] ss:$16 sps:$4 sm:$0xff]   ;;  %v268_v9 = vld [vmem:[#allocation7] sm:$0x7]  ;;  %v259_v10 = vld [vmem:[%s1094_s25] sm:$0x3] }
  0x7c   : > { %360 = vmatpush1.bf16.msra.mxu1 %v666_v4  ;;  %320 = vmatprep.subr.bf16.mxu0 %v667_v5  ;;  %s561_s18 = sshll.u32 %s1090_s4, 4  ;;  %s578_s21 = sshll.u32 %s851_s15, 8 }
  0x7d   : > { %361 = vmatprep.subr.bf16.mxu1 %v669_v6  ;;  %271 = vperm.xlu0 %660, %v268_v9   ;;  %s255_s8 = scalar_lea.vmem [#allocation8], %s561_s18  ;;  %s1116_s9 = scalar_lea.hbm %s1167_s3, %s578_s21 }
  0x7e   : > { %s431_s6 = sshll.u32 %s255_s8, 4  ;;  %s415_s11 = scalar_lea.sflag [#allocation4], %s1090_s4  ;;  %s1118_s6 = int_to_ptr.vmem [resolvable:$true] %s431_s6 }
  0x7f   : > { %321 = vmatpush1.bf16.msra.mxu0 %v671_v7  ;;  %s769_s15 = scalar_lea.vmem %s1118_s6, 256  ;;  %p1189_p8 = scmp.ne.s32.totalorder %s1174_s22, 0 }
  0x80   : > { %362 = vmatpush1.bf16.msra.mxu1 %v672_v8  ;;  %p770_p7 = scmp.ne.s32.totalorder %s1118_s6, %s769_s15  ;;  %s867_s0 = smov [#allocation8]  }
  0x81   : > { %s773_s20 = sshll.u32 %s867_s0, 4  ;;  %s774_s20 = int_to_ptr.vmem [resolvable:$false] %s773_s20 }
  0x82   : > { %570 = vmatmul.mubr.msk.bf16.vlgmr.msra.gmra.mrb[0].mxu0 %vm314_vm0, %v259_v10  ;;  %p771_p13 = pnand %p770_p7, %p1189_p8  ;;  %s775_s10 = scalar_lea.vmem %s774_s20, 512 }
  0x83   : > { %571 = vmatmul.mubr.msk.bf16.vlgmr.msra.gmra.mrb[0].mxu1 %vm314_vm0, %v259_v10  ;;  %p776_p6 = scmp.lt.s32.totalorder %s1118_s6, %s774_s20  ;;  %p777_p9 = scmp.lt.s32.totalorder %s775_s10, %s769_s15 }
  0x84   : > { %p772_p3 = pneg %p771_p13 }
  0x85   : > { %p778_p4 = por %p777_p9, %p776_p6 }
  0x87   : > { %p779_p11 = pnand %p778_p4, %p772_p3 }
  0xfc   : > { %v272_v11 = vpop.permute.xlu0 %271 }
 0x155   : > { %v352_v12 = vpop.f32.mrb[0].mxu0 }
 0x156   : > { %v393_v13 = vpop.f32.mrb[0].mxu1  ;;  %v353_v14 = vadd.f32 %v352_v12, %v272_v11  ;;  %v354_v16 = vpop.f32.mrb[1].mxu0 }
 0x157   : > { %v394_v15 = vadd.f32 %v393_v13, %v272_v11  ;;  %v395_v17 = vpop.f32.mrb[1].mxu1  ;;  %v355_v18 = vadd.f32 %v354_v16, %v272_v11  ;;  %v356_v20 = vpop.f32.mrb[2].mxu0 }
 0x158   : > { %v396_v19 = vadd.f32 %v395_v17, %v272_v11  ;;  %v397_v21 = vpop.f32.mrb[2].mxu1  ;;  %673 = vtanh.f32 %v353_v14  ;;  %v357_v22 = vpop.f32.mrb[3].mxu0 }
 0x159   : > { %v398_v23 = vpop.f32.mrb[3].mxu1  ;;  %675 = vtanh.f32 %v394_v15 }
 0x15a   : > { %677 = vtanh.f32 %v355_v18 }
 0x15b   : > { %679 = vtanh.f32 %v396_v19 }
 0x162   : > { %v674_v24 = vpop.eup %673 }
 0x163   : > { %v676_v25 = vpop.eup %675 }
 0x164   : > { %v678_v26 = vpop.eup %677 }
 0x165   : > { %v680_v27 = vpop.eup %679  ;;  %v408_v28 = vcombine.low %v674_v24, %v678_v26 }
 0x166   : > { %v409_v29 = vcombine.low %v676_v25, %v680_v27 }
 0x167   : > { %412 = vst [vmem:[%s255_s8] sm:$0x77] %v408_v28 }
 0x168   : > { %413 = vst [vmem:[%s255_s8 + $0x8] sm:$0x77] %v409_v29 }
 0x169   : > { %782 = shalt.err (!%p779_p11)
}
 0x16a   : > { %s783_s4 = scalar_lea.hbm %s1116_s9, 256  ;;  %s787_s24 = scalar_lea.hbm %s1167_s3, 1024 }
 0x16b   : > { %p784_p12 = scmp.ne.s32.totalorder %s1116_s9, %s783_s4  ;;  %p788_p0 = scmp.lt.u32.totalorder %s1116_s9, %s1167_s3 }
 0x16c   : > { %p789_p10 = scmp.lt.u32.totalorder %s787_s24, %s783_s4  ;;  %p791_p7 = scmp.lt.u32.totalorder %s783_s4, %s1116_s9 }
 0x16d   : > { %p785_p2 = pnand %p784_p12, %p1189_p8 }
 0x16e   : > { %p790_p5 = por %p789_p10, %p788_p0 }
 0x16f   : > { %p786_p1 = pneg %p785_p2 }
 0x170   : > { %p792_p13 = por %p791_p7, %p790_p5 }
 0x172   : > { %p793_p3 = pnand %p792_p13, %p786_p1 }
 0x174   : > { %796 = shalt.err (!%p793_p3)
}
 0x175   : > { %587 = dma.vmem_to_hbm [thread:$0]  (%p1189_p8), %s1118_s6, 256, %s1116_s9, %s415_s11  }
 0x176 PF: > { %p607_p6 = scmp.ge.s32.totalorder %s859_s17, 2  ;;  %s443_s30 = sand.u32 1, %s839_s12  }
 0x177   : > { %p1190_p9 = scmp.ne.s32.totalorder %s1175_s23, 0  ;;  %s444_s18 = scalar_lea.sflag [#allocation4], %s443_s30 }
 0x179   : > { %p601_p4 = pnand %p607_p6, %p1190_p9 }
 0x17b   : > { %834 = dma.done.wait (!%p601_p4), %s444_s18, 256  }
 0x17c   : > { %836 = vsyncadd (!%p601_p4), %s444_s18, 4294967040  ;;  %s22_s17 = sadd.s32 1, %s859_s17   ;;  %s1191_s12 = smov %s843_s13 }
 0x17d   : > { %p19_p11 = scmp.ge.s32.totalorder %s22_s17, 6   ;;  %s1192_s13 = smov %s847_s14 }
 0x17e   : > { %s1193_s14 = smov %s1009_s26  ;;  %s1194_s15 = smov %s855_s16 }
 0x17f   : > { %s1195_s16 = smov %s1197_s27  ;;  %21 = sbr.rel (!%p19_p11) target bundleno = 10 (0xa), region = 94 }
 0x186   :  { %449 = vsyncpa [#allocation3], 1 }
 0x187   :  { %451 = vsyncpa [#allocation3 + $0x1], 1 }
 0x188   :  { %452 = vsyncpa [#allocation6], 1 }
 0x189   :  { %454 = vsyncpa [#allocation6 + $0x1], 1 }
 0x18a   :  { %455 = vsyncpa [#allocation4], 1 }
 0x18b   :  { %457 = vsyncpa [#allocation4 + $0x1], 1 }

</bundles_post_ra>
